<compile_context>
chip_gen: v7x
topology: tpu7x:2x2x1
jax: 0.10.0
libtpu: 0.0.40
codegen_flags: <defaults>
</compile_context>

<pallas_src>
import math

import jax
import jax.numpy as jnp
import numpy as np
from jax import lax
from jax.experimental import pallas as pl
from jax.experimental.pallas import tpu as pltpu


def _round_up(v, m):
    return ((v + m - 1) // m) * m


# ------------------------- fused GRU-stack kernel -----------------------------
def make_fused_gru_kernel(num_layer, T, B_t, D_p, H_p, unroll):
    """Kernel ref order:
        x, (wi, wh, bi, bh_n) * num_layer, w_lin, b_lin, out, gx_scr, seq_scr
    Weights are pre-packed per layer as:
        wi: (D_l_p, 3*H_p)  wh: (H_p, 3*H_p)  bi: (1, 3*H_p)  bh_n: (1, H_p)
    gate order [r | z | n], each gate H_p lanes wide (lane-aligned slices).
    bi already contains bh_r / bh_z folded in.
    """
    H3 = 3 * H_p

    def kernel(*refs):
        x_ref = refs[0]
        layer_refs = refs[1:1 + 4 * num_layer]
        wlin_ref = refs[1 + 4 * num_layer]
        blin_ref = refs[2 + 4 * num_layer]
        out_ref = refs[3 + 4 * num_layer]
        gx_scr = refs[4 + 4 * num_layer]    # (T, B_t, 3*H_p) projected inputs
        seq_scr = refs[5 + 4 * num_layer]   # (T, B_t, H_p)   layer outputs

        h_last = None
        for l in range(num_layer):
            wi_ref, wh_ref, bi_ref, bhn_ref = layer_refs[4 * l:4 * l + 4]
            write_seq = l < num_layer - 1   # last layer's sequence is never read

            # ---- hoisted input projection: one wide MXU matmul over all T ----
            if l == 0:
                d_l = D_p
                inp = x_ref[...]                       # (T, B_t, D_p)
            else:
                d_l = H_p
                inp = seq_scr[...]                     # (T, B_t, H_p)
            gx = jnp.dot(inp.reshape(T * B_t, d_l), wi_ref[...],
                         preferred_element_type=jnp.float32) + bi_ref[...]
            gx_scr[...] = gx.reshape(T, B_t, H3)

            bh_n = bhn_ref[...]                        # (1, H_p) - tiny, hoist ok

            # ---- sequential part: one fused (B,H)x(H,3H) matmul per step ----
            # Wh is read from the VMEM ref inside the step (no 48-vreg hoist).
            def step(t, h, _write_seq=write_seq, _wh_ref=wh_ref, _bh_n=bh_n):
                g_x = gx_scr[t]                        # (B_t, 3*H_p), has biases
                g_h = jnp.dot(h, _wh_ref[...],
                              preferred_element_type=jnp.float32)
                r = jax.nn.sigmoid(g_x[:, 0:H_p] + g_h[:, 0:H_p])
                z = jax.nn.sigmoid(g_x[:, H_p:2 * H_p] + g_h[:, H_p:2 * H_p])
                n = jnp.tanh(g_x[:, 2 * H_p:H3]
                             + r * (g_h[:, 2 * H_p:H3] + _bh_n))
                h_new = n + z * (h - n)                # == (1-z)*n + z*h
                if _write_seq:
                    seq_scr[t] = h_new                 # next layer's input
                return h_new

            h0 = jnp.zeros((B_t, H_p), jnp.float32)
            h_last = lax.fori_loop(0, T, step, h0, unroll=unroll)

        # ---- fused final Linear on the last hidden state (lane-dense O_p) ----
        out_ref[...] = (jnp.dot(h_last, wlin_ref[...],
                                preferred_element_type=jnp.float32)
                        + blin_ref[...]).astype(out_ref.dtype)

    return kernel


# ----------------------------- parameter packing ------------------------------
def pack_params(gru_params, w_lin, b_lin):
    """Pad/concat per-gate weights into lane-dense [r|z|n] slabs (zero-padded).

    bh_r and bh_z are folded into the input-side bias; only bh_n is kept
    separate (it sits inside the r*(...) term of the PyTorch GRU formulation).
    """
    H = gru_params[0][1].shape[-1]
    H_p = _round_up(H, 128)
    packed = []
    for (wi, wh, bi, bh) in gru_params:
        d_in = wi.shape[1]
        D_l_p = _round_up(d_in, 128)
        wi_p = jnp.zeros((D_l_p, 3 * H_p), jnp.float32)
        wh_p = jnp.zeros((H_p, 3 * H_p), jnp.float32)
        bi_p = jnp.zeros((1, 3 * H_p), jnp.float32)
        bhn_p = jnp.zeros((1, H_p), jnp.float32).at[:, :H].set(bh[2])
        for g in range(3):                              # gate order r, z, n
            c0 = g * H_p
            wi_p = wi_p.at[:d_in, c0:c0 + H].set(wi[g])
            wh_p = wh_p.at[:H, c0:c0 + H].set(wh[g])
            if g < 2:
                bi_p = bi_p.at[:, c0:c0 + H].set(bi[g] + bh[g])   # fold bh_r/bh_z
            else:
                bi_p = bi_p.at[:, c0:c0 + H].set(bi[g])
        packed.append((wi_p, wh_p, bi_p, bhn_p))
    O = w_lin.shape[-1]
    O_p = _round_up(O, 128)                             # lane-dense output
    w_lin_p = jnp.zeros((H_p, O_p), jnp.float32).at[:H, :O].set(w_lin)
    b_lin_p = jnp.zeros((1, O_p), jnp.float32).at[:, :O].set(b_lin.reshape(1, O))
    return packed, w_lin_p, b_lin_p, H_p, O_p


# -------------------------------- forward -------------------------------------
def gru_model_forward(x_btd, gru_params, w_lin, b_lin):
    """Equivalent of GRU.forward: x (B, T, D) -> (B, 1, output_size)."""
    B, T, D = x_btd.shape
    num_layer = len(gru_params)
    O = w_lin.shape[-1]

    packed, w_lin_p, b_lin_p, H_p, O_p = pack_params(gru_params, w_lin, b_lin)

    B_TILE = 8                                  # one sublane tile per grid step
    B_p = _round_up(max(B, B_TILE), B_TILE)
    D_p = _round_up(D, 128)
    n_btiles = B_p // B_TILE

    # time-major, zero-padded to (T, B_p, D_p)
    x_tbd = jnp.transpose(x_btd, (1, 0, 2))
    x_pad = jnp.zeros((T, B_p, D_p), jnp.float32).at[:, :B, :D].set(x_tbd)

    args = [x_pad]
    in_specs = [pl.BlockSpec((T, B_TILE, D_p), lambda b: (0, b, 0))]
    for p in packed:
        for w in p:
            args.append(w)
            in_specs.append(pl.BlockSpec(w.shape, lambda b: (0, 0)))
    for w in (w_lin_p, b_lin_p):
        args.append(w)
        in_specs.append(pl.BlockSpec(w.shape, lambda b: (0, 0)))

    out_spec = pl.BlockSpec((B_TILE, O_p), lambda b: (b, 0))

    # explicit scoped-VMEM budget (default is 16/32 MiB depending on chip)
    est_bytes = 4 * (2 * T * B_TILE * D_p
                     + sum(int(np.prod(w.shape)) for p in packed for w in p)
                     + int(np.prod(w_lin_p.shape)) + int(np.prod(b_lin_p.shape))
                     + 2 * B_TILE * O_p
                     + T * B_TILE * 3 * H_p
                     + T * B_TILE * H_p)
    vmem_limit = int(min(max(2 * est_bytes, 32 * 1024 * 1024),
                         64 * 1024 * 1024))    # stay within v7x physical VMEM

    kernel = make_fused_gru_kernel(num_layer, T, B_TILE, D_p, H_p,
                                   unroll=min(T, 8))

    out = pl.pallas_call(
        kernel,
        out_shape=jax.ShapeDtypeStruct((B_p, O_p), jnp.float32),
        grid=(n_btiles,),
        in_specs=in_specs,
        out_specs=out_spec,
        scratch_shapes=[
            pltpu.VMEM((T, B_TILE, 3 * H_p), jnp.float32),  # gx: projected inputs
            pltpu.VMEM((T, B_TILE, H_p), jnp.float32),      # layer output sequence
        ],
        compiler_params=pltpu.CompilerParams(
            dimension_semantics=("parallel",),              # batch tiles -> TCs
            vmem_limit_bytes=vmem_limit),
    )(*args)

    return out[:B, :O][:, None, :]     # (B, 1, O)  ==  x.view(b, s, -1)


# ------------------------------ param init ------------------------------------
def init_params(key, input_size, hidden_size, output_size, num_layer):
    k = 1.0 / math.sqrt(hidden_size)
    gru_params = []
    d_in = input_size
    for _ in range(num_layer):
        key, k1, k2, k3, k4 = jax.random.split(key, 5)
        wi = jax.random.uniform(k1, (3, d_in, hidden_size), jnp.float32, -k, k)
        wh = jax.random.uniform(k2, (3, hidden_size, hidden_size), jnp.float32, -k, k)
        bi = jax.random.uniform(k3, (3, 1, hidden_size), jnp.float32, -k, k)
        bh = jax.random.uniform(k4, (3, 1, hidden_size), jnp.float32, -k, k)
        gru_params.append((wi, wh, bi, bh))
        d_in = hidden_size
    key, k5, k6 = jax.random.split(key, 3)
    kl = 1.0 / math.sqrt(hidden_size)
    w_lin = jax.random.uniform(k5, (hidden_size, output_size), jnp.float32, -kl, kl)
    b_lin = jax.random.uniform(k6, (1, output_size), jnp.float32, -kl, kl)
    return gru_params, w_lin, b_lin


# --------------------------- pure-JAX reference --------------------------------
def gru_model_ref(x_btd, gru_params, w_lin, b_lin):
    h_seq = x_btd
    for (wi, wh, bi, bh) in gru_params:
        B, T, _ = h_seq.shape
        H = wi.shape[-1]
        h = jnp.zeros((B, H), jnp.float32)
        outs = []
        for t in range(T):
            xt = h_seq[:, t, :]
            r = jax.nn.sigmoid(xt @ wi[0] + bi[0] + h @ wh[0] + bh[0])
            z = jax.nn.sigmoid(xt @ wi[1] + bi[1] + h @ wh[1] + bh[1])
            n = jnp.tanh(xt @ wi[2] + bi[2] + r * (h @ wh[2] + bh[2]))
            h = (1.0 - z) * n + z * h
            outs.append(h)
        h_seq = jnp.stack(outs, axis=1)
    return (h_seq[:, -1, :] @ w_lin + b_lin)[:, None, :]


# ----------------------------------- main --------------------------------------
if __name__ == "__main__":
    B, T = 4, 8
    input_size, hidden_size, output_size, num_layer = 8, 32, 4, 2

    key = jax.random.PRNGKey(0)
    key, kx, kp = jax.random.split(key, 3)
    x = jax.random.normal(kx, (B, T, input_size), jnp.float32)
    gru_params, w_lin, b_lin = init_params(kp, input_size, hidden_size,
                                           output_size, num_layer)

    y = gru_model_forward(x, gru_params, w_lin, b_lin)
    y = jax.block_until_ready(y)

    y_ref = jax.block_until_ready(gru_model_ref(x, gru_params, w_lin, b_lin))
    assert y.shape == (B, 1, output_size), y.shape
    np.testing.assert_allclose(np.asarray(y), np.asarray(y_ref),
                               rtol=1e-4, atol=1e-4)
    print("KERNEL_OK")
</pallas_src>

<mosaic_0001>
module attributes {stable_mosaic.version = 11 : i64} {
  func.func @kernel(%arg0: i32, %arg1: memref<8x8x128xf32, #tpu.memory_space<vmem>>, %arg2: memref<128x384xf32, #tpu.memory_space<vmem>>, %arg3: memref<128x384xf32, #tpu.memory_space<vmem>>, %arg4: memref<1x384xf32, #tpu.memory_space<vmem>>, %arg5: memref<1x128xf32, #tpu.memory_space<vmem>>, %arg6: memref<128x384xf32, #tpu.memory_space<vmem>>, %arg7: memref<128x384xf32, #tpu.memory_space<vmem>>, %arg8: memref<1x384xf32, #tpu.memory_space<vmem>>, %arg9: memref<1x128xf32, #tpu.memory_space<vmem>>, %arg10: memref<128x128xf32, #tpu.memory_space<vmem>>, %arg11: memref<1x128xf32, #tpu.memory_space<vmem>>, %arg12: memref<8x128xf32, #tpu.memory_space<vmem>>, %arg13: memref<8x8x384xf32, #tpu.memory_space<vmem>>, %arg14: memref<8x8x128xf32, #tpu.memory_space<vmem>>) attributes {dimension_semantics = [#tpu.dimension_semantics<parallel>], iteration_bounds = array<i64: 1>, scalar_prefetch = 0 : i64, scratch_operands = 2 : i64, tpu.core_type = #tpu.core_type<tc>, window_params = [{transform_indices = @transform_0, window_bounds = array<i64: 8, 8, 128>}, {pipeline_mode = #tpu.pipeline_mode<synchronous>, transform_indices = @transform_1, window_bounds = array<i64: 128, 384>}, {pipeline_mode = #tpu.pipeline_mode<synchronous>, transform_indices = @transform_2, window_bounds = array<i64: 128, 384>}, {pipeline_mode = #tpu.pipeline_mode<synchronous>, transform_indices = @transform_3, window_bounds = array<i64: 1, 384>}, {pipeline_mode = #tpu.pipeline_mode<synchronous>, transform_indices = @transform_4, window_bounds = array<i64: 1, 128>}, {pipeline_mode = #tpu.pipeline_mode<synchronous>, transform_indices = @transform_5, window_bounds = array<i64: 128, 384>}, {pipeline_mode = #tpu.pipeline_mode<synchronous>, transform_indices = @transform_6, window_bounds = array<i64: 128, 384>}, {pipeline_mode = #tpu.pipeline_mode<synchronous>, transform_indices = @transform_7, window_bounds = array<i64: 1, 384>}, {pipeline_mode = #tpu.pipeline_mode<synchronous>, transform_indices = @transform_8, window_bounds = array<i64: 1, 128>}, {pipeline_mode = #tpu.pipeline_mode<synchronous>, transform_indices = @transform_9, window_bounds = array<i64: 128, 128>}, {pipeline_mode = #tpu.pipeline_mode<synchronous>, transform_indices = @transform_10, window_bounds = array<i64: 1, 128>}, {transform_indices = @transform_11, window_bounds = array<i64: 8, 128>}]} {
    %c0 = arith.constant 0 : index
    %c0_0 = arith.constant 0 : index
    %c0_1 = arith.constant 0 : index
    %0 = vector.load %arg1[%c0, %c0_0, %c0_1] : memref<8x8x128xf32, #tpu.memory_space<vmem>>, vector<8x8x128xf32>
    %1 = vector.shape_cast %0 : vector<8x8x128xf32> to vector<64x128xf32>
    %c0_2 = arith.constant 0 : index
    %c0_3 = arith.constant 0 : index
    %2 = vector.load %arg2[%c0_2, %c0_3] : memref<128x384xf32, #tpu.memory_space<vmem>>, vector<128x384xf32>
    %cst = arith.constant dense<0.000000e+00> : vector<64x384xf32>
    %3 = tpu.matmul %1, %2, %cst {dimension_numbers = #tpu.dot_dimension_numbers<[1], [0], [0], [1], [0, 0, 1, 1], [], []>} : vector<64x128xf32>, vector<128x384xf32>, vector<64x384xf32> -> vector<64x384xf32>
    %c0_4 = arith.constant 0 : index
    %c0_5 = arith.constant 0 : index
    %4 = vector.load %arg4[%c0_4, %c0_5] : memref<1x384xf32, #tpu.memory_space<vmem>>, vector<1x384xf32>
    %5 = vector.broadcast %4 : vector<1x384xf32> to vector<64x384xf32>
    %6 = arith.addf %3, %5 : vector<64x384xf32>
    %7 = vector.shape_cast %6 : vector<64x384xf32> to vector<8x8x384xf32>
    %c0_6 = arith.constant 0 : index
    %c0_7 = arith.constant 0 : index
    %c0_8 = arith.constant 0 : index
    %8 = vector.load %arg13[%c0_6, %c0_7, %c0_8] : memref<8x8x384xf32, #tpu.memory_space<vmem>>, vector<8x8x384xf32>
    tpu.vector_store %arg13[%c0_6, %c0_7, %c0_8], %7 {strides = array<i32>} : memref<8x8x384xf32, #tpu.memory_space<vmem>>, vector<8x8x384xf32>,
    %c0_9 = arith.constant 0 : index
    %c0_10 = arith.constant 0 : index
    %9 = vector.load %arg5[%c0_9, %c0_10] : memref<1x128xf32, #tpu.memory_space<vmem>>, vector<1x128xf32>
    %cst_11 = arith.constant 0.000000e+00 : f32
    %10 = vector.broadcast %cst_11 : f32 to vector<8x128xf32>
    %c0_i32 = arith.constant 0 : i32
    %11 = arith.index_cast %c0_i32 : i32 to index
    %c0_12 = arith.constant 0 : index
    %c0_13 = arith.constant 0 : index
    %12 = vector.load %arg13[%11, %c0_12, %c0_13] : memref<8x8x384xf32, #tpu.memory_space<vmem>>, vector<1x8x384xf32>
    %13 = vector.shape_cast %12 : vector<1x8x384xf32> to vector<8x384xf32>
    %c0_14 = arith.constant 0 : index
    %c0_15 = arith.constant 0 : index
    %14 = vector.load %arg3[%c0_14, %c0_15] : memref<128x384xf32, #tpu.memory_space<vmem>>, vector<128x384xf32>
    %cst_16 = arith.constant dense<0.000000e+00> : vector<8x384xf32>
    %15 = tpu.matmul %10, %14, %cst_16 {dimension_numbers = #tpu.dot_dimension_numbers<[1], [0], [0], [1], [0, 0, 1, 1], [], []>} : vector<8x128xf32>, vector<128x384xf32>, vector<8x384xf32> -> vector<8x384xf32>
    %16 = vector.extract_strided_slice %13 {offsets = [0, 0], sizes = [8, 128], strides = [1, 1]} : vector<8x384xf32> to vector<8x128xf32>
    %17 = vector.extract_strided_slice %15 {offsets = [0, 0], sizes = [8, 128], strides = [1, 1]} : vector<8x384xf32> to vector<8x128xf32>
    %18 = arith.addf %16, %17 : vector<8x128xf32>
    %19 = arith.negf %18 : vector<8x128xf32>
    %20 = math.exp %19 : vector<8x128xf32>
    %cst_17 = arith.constant 1.000000e+00 : f32
    %21 = vector.broadcast %cst_17 : f32 to vector<8x128xf32>
    %22 = arith.addf %21, %20 : vector<8x128xf32>
    %23 = arith.divf %21, %22 : vector<8x128xf32>
    %24 = vector.extract_strided_slice %13 {offsets = [0, 128], sizes = [8, 128], strides = [1, 1]} : vector<8x384xf32> to vector<8x128xf32>
    %25 = vector.extract_strided_slice %15 {offsets = [0, 128], sizes = [8, 128], strides = [1, 1]} : vector<8x384xf32> to vector<8x128xf32>
    %26 = arith.addf %24, %25 : vector<8x128xf32>
    %27 = arith.negf %26 : vector<8x128xf32>
    %28 = math.exp %27 : vector<8x128xf32>
    %cst_18 = arith.constant 1.000000e+00 : f32
    %29 = vector.broadcast %cst_18 : f32 to vector<8x128xf32>
    %30 = arith.addf %29, %28 : vector<8x128xf32>
    %31 = arith.divf %29, %30 : vector<8x128xf32>
    %32 = vector.extract_strided_slice %13 {offsets = [0, 256], sizes = [8, 128], strides = [1, 1]} : vector<8x384xf32> to vector<8x128xf32>
    %33 = vector.extract_strided_slice %15 {offsets = [0, 256], sizes = [8, 128], strides = [1, 1]} : vector<8x384xf32> to vector<8x128xf32>
    %34 = vector.broadcast %9 : vector<1x128xf32> to vector<8x128xf32>
    %35 = arith.addf %33, %34 : vector<8x128xf32>
    %36 = arith.mulf %23, %35 : vector<8x128xf32>
    %37 = arith.addf %32, %36 : vector<8x128xf32>
    %38 = math.tanh %37 : vector<8x128xf32>
    %39 = arith.subf %10, %38 : vector<8x128xf32>
    %40 = arith.mulf %31, %39 : vector<8x128xf32>
    %41 = arith.addf %38, %40 : vector<8x128xf32>
    %42 = arith.index_cast %c0_i32 : i32 to index
    %c0_19 = arith.constant 0 : index
    %c0_20 = arith.constant 0 : index
    %43 = vector.load %arg14[%42, %c0_19, %c0_20] : memref<8x8x128xf32, #tpu.memory_space<vmem>>, vector<1x8x128xf32>
    %44 = vector.shape_cast %43 : vector<1x8x128xf32> to vector<8x128xf32>
    %45 = vector.shape_cast %41 : vector<8x128xf32> to vector<1x8x128xf32>
    tpu.vector_store %arg14[%42, %c0_19, %c0_20], %45 {strides = array<i32>} : memref<8x8x128xf32, #tpu.memory_space<vmem>>, vector<1x8x128xf32>,
    %c1_i32 = arith.constant 1 : i32
    %46 = arith.index_cast %c1_i32 : i32 to index
    %c0_21 = arith.constant 0 : index
    %c0_22 = arith.constant 0 : index
    %47 = vector.load %arg13[%46, %c0_21, %c0_22] : memref<8x8x384xf32, #tpu.memory_space<vmem>>, vector<1x8x384xf32>
    %48 = vector.shape_cast %47 : vector<1x8x384xf32> to vector<8x384xf32>
    %c0_23 = arith.constant 0 : index
    %c0_24 = arith.constant 0 : index
    %49 = vector.load %arg3[%c0_23, %c0_24] : memref<128x384xf32, #tpu.memory_space<vmem>>, vector<128x384xf32>
    %cst_25 = arith.constant dense<0.000000e+00> : vector<8x384xf32>
    %50 = tpu.matmul %41, %49, %cst_25 {dimension_numbers = #tpu.dot_dimension_numbers<[1], [0], [0], [1], [0, 0, 1, 1], [], []>} : vector<8x128xf32>, vector<128x384xf32>, vector<8x384xf32> -> vector<8x384xf32>
    %51 = vector.extract_strided_slice %48 {offsets = [0, 0], sizes = [8, 128], strides = [1, 1]} : vector<8x384xf32> to vector<8x128xf32>
    %52 = vector.extract_strided_slice %50 {offsets = [0, 0], sizes = [8, 128], strides = [1, 1]} : vector<8x384xf32> to vector<8x128xf32>
    %53 = arith.addf %51, %52 : vector<8x128xf32>
    %54 = arith.negf %53 : vector<8x128xf32>
    %55 = math.exp %54 : vector<8x128xf32>
    %cst_26 = arith.constant 1.000000e+00 : f32
    %56 = vector.broadcast %cst_26 : f32 to vector<8x128xf32>
    %57 = arith.addf %56, %55 : vector<8x128xf32>
    %58 = arith.divf %56, %57 : vector<8x128xf32>
    %59 = vector.extract_strided_slice %48 {offsets = [0, 128], sizes = [8, 128], strides = [1, 1]} : vector<8x384xf32> to vector<8x128xf32>
    %60 = vector.extract_strided_slice %50 {offsets = [0, 128], sizes = [8, 128], strides = [1, 1]} : vector<8x384xf32> to vector<8x128xf32>
    %61 = arith.addf %59, %60 : vector<8x128xf32>
    %62 = arith.negf %61 : vector<8x128xf32>
    %63 = math.exp %62 : vector<8x128xf32>
    %cst_27 = arith.constant 1.000000e+00 : f32
    %64 = vector.broadcast %cst_27 : f32 to vector<8x128xf32>
    %65 = arith.addf %64, %63 : vector<8x128xf32>
    %66 = arith.divf %64, %65 : vector<8x128xf32>
    %67 = vector.extract_strided_slice %48 {offsets = [0, 256], sizes = [8, 128], strides = [1, 1]} : vector<8x384xf32> to vector<8x128xf32>
    %68 = vector.extract_strided_slice %50 {offsets = [0, 256], sizes = [8, 128], strides = [1, 1]} : vector<8x384xf32> to vector<8x128xf32>
    %69 = vector.broadcast %9 : vector<1x128xf32> to vector<8x128xf32>
    %70 = arith.addf %68, %69 : vector<8x128xf32>
    %71 = arith.mulf %58, %70 : vector<8x128xf32>
    %72 = arith.addf %67, %71 : vector<8x128xf32>
    %73 = math.tanh %72 : vector<8x128xf32>
    %74 = arith.subf %41, %73 : vector<8x128xf32>
    %75 = arith.mulf %66, %74 : vector<8x128xf32>
    %76 = arith.addf %73, %75 : vector<8x128xf32>
    %77 = arith.index_cast %c1_i32 : i32 to index
    %c0_28 = arith.constant 0 : index
    %c0_29 = arith.constant 0 : index
    %78 = vector.load %arg14[%77, %c0_28, %c0_29] : memref<8x8x128xf32, #tpu.memory_space<vmem>>, vector<1x8x128xf32>
    %79 = vector.shape_cast %78 : vector<1x8x128xf32> to vector<8x128xf32>
    %80 = vector.shape_cast %76 : vector<8x128xf32> to vector<1x8x128xf32>
    tpu.vector_store %arg14[%77, %c0_28, %c0_29], %80 {strides = array<i32>} : memref<8x8x128xf32, #tpu.memory_space<vmem>>, vector<1x8x128xf32>,
    %c2_i32 = arith.constant 2 : i32
    %81 = arith.index_cast %c2_i32 : i32 to index
    %c0_30 = arith.constant 0 : index
    %c0_31 = arith.constant 0 : index
    %82 = vector.load %arg13[%81, %c0_30, %c0_31] : memref<8x8x384xf32, #tpu.memory_space<vmem>>, vector<1x8x384xf32>
    %83 = vector.shape_cast %82 : vector<1x8x384xf32> to vector<8x384xf32>
    %c0_32 = arith.constant 0 : index
    %c0_33 = arith.constant 0 : index
    %84 = vector.load %arg3[%c0_32, %c0_33] : memref<128x384xf32, #tpu.memory_space<vmem>>, vector<128x384xf32>
    %cst_34 = arith.constant dense<0.000000e+00> : vector<8x384xf32>
    %85 = tpu.matmul %76, %84, %cst_34 {dimension_numbers = #tpu.dot_dimension_numbers<[1], [0], [0], [1], [0, 0, 1, 1], [], []>} : vector<8x128xf32>, vector<128x384xf32>, vector<8x384xf32> -> vector<8x384xf32>
    %86 = vector.extract_strided_slice %83 {offsets = [0, 0], sizes = [8, 128], strides = [1, 1]} : vector<8x384xf32> to vector<8x128xf32>
    %87 = vector.extract_strided_slice %85 {offsets = [0, 0], sizes = [8, 128], strides = [1, 1]} : vector<8x384xf32> to vector<8x128xf32>
    %88 = arith.addf %86, %87 : vector<8x128xf32>
    %89 = arith.negf %88 : vector<8x128xf32>
    %90 = math.exp %89 : vector<8x128xf32>
    %cst_35 = arith.constant 1.000000e+00 : f32
    %91 = vector.broadcast %cst_35 : f32 to vector<8x128xf32>
    %92 = arith.addf %91, %90 : vector<8x128xf32>
    %93 = arith.divf %91, %92 : vector<8x128xf32>
    %94 = vector.extract_strided_slice %83 {offsets = [0, 128], sizes = [8, 128], strides = [1, 1]} : vector<8x384xf32> to vector<8x128xf32>
    %95 = vector.extract_strided_slice %85 {offsets = [0, 128], sizes = [8, 128], strides = [1, 1]} : vector<8x384xf32> to vector<8x128xf32>
    %96 = arith.addf %94, %95 : vector<8x128xf32>
    %97 = arith.negf %96 : vector<8x128xf32>
    %98 = math.exp %97 : vector<8x128xf32>
    %cst_36 = arith.constant 1.000000e+00 : f32
    %99 = vector.broadcast %cst_36 : f32 to vector<8x128xf32>
    %100 = arith.addf %99, %98 : vector<8x128xf32>
    %101 = arith.divf %99, %100 : vector<8x128xf32>
    %102 = vector.extract_strided_slice %83 {offsets = [0, 256], sizes = [8, 128], strides = [1, 1]} : vector<8x384xf32> to vector<8x128xf32>
    %103 = vector.extract_strided_slice %85 {offsets = [0, 256], sizes = [8, 128], strides = [1, 1]} : vector<8x384xf32> to vector<8x128xf32>
    %104 = vector.broadcast %9 : vector<1x128xf32> to vector<8x128xf32>
    %105 = arith.addf %103, %104 : vector<8x128xf32>
    %106 = arith.mulf %93, %105 : vector<8x128xf32>
    %107 = arith.addf %102, %106 : vector<8x128xf32>
    %108 = math.tanh %107 : vector<8x128xf32>
    %109 = arith.subf %76, %108 : vector<8x128xf32>
    %110 = arith.mulf %101, %109 : vector<8x128xf32>
    %111 = arith.addf %108, %110 : vector<8x128xf32>
    %112 = arith.index_cast %c2_i32 : i32 to index
    %c0_37 = arith.constant 0 : index
    %c0_38 = arith.constant 0 : index
    %113 = vector.load %arg14[%112, %c0_37, %c0_38] : memref<8x8x128xf32, #tpu.memory_space<vmem>>, vector<1x8x128xf32>
    %114 = vector.shape_cast %113 : vector<1x8x128xf32> to vector<8x128xf32>
    %115 = vector.shape_cast %111 : vector<8x128xf32> to vector<1x8x128xf32>
    tpu.vector_store %arg14[%112, %c0_37, %c0_38], %115 {strides = array<i32>} : memref<8x8x128xf32, #tpu.memory_space<vmem>>, vector<1x8x128xf32>,
    %c3_i32 = arith.constant 3 : i32
    %116 = arith.index_cast %c3_i32 : i32 to index
    %c0_39 = arith.constant 0 : index
    %c0_40 = arith.constant 0 : index
    %117 = vector.load %arg13[%116, %c0_39, %c0_40] : memref<8x8x384xf32, #tpu.memory_space<vmem>>, vector<1x8x384xf32>
    %118 = vector.shape_cast %117 : vector<1x8x384xf32> to vector<8x384xf32>
    %c0_41 = arith.constant 0 : index
    %c0_42 = arith.constant 0 : index
    %119 = vector.load %arg3[%c0_41, %c0_42] : memref<128x384xf32, #tpu.memory_space<vmem>>, vector<128x384xf32>
    %cst_43 = arith.constant dense<0.000000e+00> : vector<8x384xf32>
    %120 = tpu.matmul %111, %119, %cst_43 {dimension_numbers = #tpu.dot_dimension_numbers<[1], [0], [0], [1], [0, 0, 1, 1], [], []>} : vector<8x128xf32>, vector<128x384xf32>, vector<8x384xf32> -> vector<8x384xf32>
    %121 = vector.extract_strided_slice %118 {offsets = [0, 0], sizes = [8, 128], strides = [1, 1]} : vector<8x384xf32> to vector<8x128xf32>
    %122 = vector.extract_strided_slice %120 {offsets = [0, 0], sizes = [8, 128], strides = [1, 1]} : vector<8x384xf32> to vector<8x128xf32>
    %123 = arith.addf %121, %122 : vector<8x128xf32>
    %124 = arith.negf %123 : vector<8x128xf32>
    %125 = math.exp %124 : vector<8x128xf32>
    %cst_44 = arith.constant 1.000000e+00 : f32
    %126 = vector.broadcast %cst_44 : f32 to vector<8x128xf32>
    %127 = arith.addf %126, %125 : vector<8x128xf32>
    %128 = arith.divf %126, %127 : vector<8x128xf32>
    %129 = vector.extract_strided_slice %118 {offsets = [0, 128], sizes = [8, 128], strides = [1, 1]} : vector<8x384xf32> to vector<8x128xf32>
    %130 = vector.extract_strided_slice %120 {offsets = [0, 128], sizes = [8, 128], strides = [1, 1]} : vector<8x384xf32> to vector<8x128xf32>
    %131 = arith.addf %129, %130 : vector<8x128xf32>
    %132 = arith.negf %131 : vector<8x128xf32>
    %133 = math.exp %132 : vector<8x128xf32>
    %cst_45 = arith.constant 1.000000e+00 : f32
    %134 = vector.broadcast %cst_45 : f32 to vector<8x128xf32>
    %135 = arith.addf %134, %133 : vector<8x128xf32>
    %136 = arith.divf %134, %135 : vector<8x128xf32>
    %137 = vector.extract_strided_slice %118 {offsets = [0, 256], sizes = [8, 128], strides = [1, 1]} : vector<8x384xf32> to vector<8x128xf32>
    %138 = vector.extract_strided_slice %120 {offsets = [0, 256], sizes = [8, 128], strides = [1, 1]} : vector<8x384xf32> to vector<8x128xf32>
    %139 = vector.broadcast %9 : vector<1x128xf32> to vector<8x128xf32>
    %140 = arith.addf %138, %139 : vector<8x128xf32>
    %141 = arith.mulf %128, %140 : vector<8x128xf32>
    %142 = arith.addf %137, %141 : vector<8x128xf32>
    %143 = math.tanh %142 : vector<8x128xf32>
    %144 = arith.subf %111, %143 : vector<8x128xf32>
    %145 = arith.mulf %136, %144 : vector<8x128xf32>
    %146 = arith.addf %143, %145 : vector<8x128xf32>
    %147 = arith.index_cast %c3_i32 : i32 to index
    %c0_46 = arith.constant 0 : index
    %c0_47 = arith.constant 0 : index
    %148 = vector.load %arg14[%147, %c0_46, %c0_47] : memref<8x8x128xf32, #tpu.memory_space<vmem>>, vector<1x8x128xf32>
    %149 = vector.shape_cast %148 : vector<1x8x128xf32> to vector<8x128xf32>
    %150 = vector.shape_cast %146 : vector<8x128xf32> to vector<1x8x128xf32>
    tpu.vector_store %arg14[%147, %c0_46, %c0_47], %150 {strides = array<i32>} : memref<8x8x128xf32, #tpu.memory_space<vmem>>, vector<1x8x128xf32>,
    %c4_i32 = arith.constant 4 : i32
    %151 = arith.index_cast %c4_i32 : i32 to index
    %c0_48 = arith.constant 0 : index
    %c0_49 = arith.constant 0 : index
    %152 = vector.load %arg13[%151, %c0_48, %c0_49] : memref<8x8x384xf32, #tpu.memory_space<vmem>>, vector<1x8x384xf32>
    %153 = vector.shape_cast %152 : vector<1x8x384xf32> to vector<8x384xf32>
    %c0_50 = arith.constant 0 : index
    %c0_51 = arith.constant 0 : index
    %154 = vector.load %arg3[%c0_50, %c0_51] : memref<128x384xf32, #tpu.memory_space<vmem>>, vector<128x384xf32>
    %cst_52 = arith.constant dense<0.000000e+00> : vector<8x384xf32>
    %155 = tpu.matmul %146, %154, %cst_52 {dimension_numbers = #tpu.dot_dimension_numbers<[1], [0], [0], [1], [0, 0, 1, 1], [], []>} : vector<8x128xf32>, vector<128x384xf32>, vector<8x384xf32> -> vector<8x384xf32>
    %156 = vector.extract_strided_slice %153 {offsets = [0, 0], sizes = [8, 128], strides = [1, 1]} : vector<8x384xf32> to vector<8x128xf32>
    %157 = vector.extract_strided_slice %155 {offsets = [0, 0], sizes = [8, 128], strides = [1, 1]} : vector<8x384xf32> to vector<8x128xf32>
    %158 = arith.addf %156, %157 : vector<8x128xf32>
    %159 = arith.negf %158 : vector<8x128xf32>
    %160 = math.exp %159 : vector<8x128xf32>
    %cst_53 = arith.constant 1.000000e+00 : f32
    %161 = vector.broadcast %cst_53 : f32 to vector<8x128xf32>
    %162 = arith.addf %161, %160 : vector<8x128xf32>
    %163 = arith.divf %161, %162 : vector<8x128xf32>
    %164 = vector.extract_strided_slice %153 {offsets = [0, 128], sizes = [8, 128], strides = [1, 1]} : vector<8x384xf32> to vector<8x128xf32>
    %165 = vector.extract_strided_slice %155 {offsets = [0, 128], sizes = [8, 128], strides = [1, 1]} : vector<8x384xf32> to vector<8x128xf32>
    %166 = arith.addf %164, %165 : vector<8x128xf32>
    %167 = arith.negf %166 : vector<8x128xf32>
    %168 = math.exp %167 : vector<8x128xf32>
    %cst_54 = arith.constant 1.000000e+00 : f32
    %169 = vector.broadcast %cst_54 : f32 to vector<8x128xf32>
    %170 = arith.addf %169, %168 : vector<8x128xf32>
    %171 = arith.divf %169, %170 : vector<8x128xf32>
    %172 = vector.extract_strided_slice %153 {offsets = [0, 256], sizes = [8, 128], strides = [1, 1]} : vector<8x384xf32> to vector<8x128xf32>
    %173 = vector.extract_strided_slice %155 {offsets = [0, 256], sizes = [8, 128], strides = [1, 1]} : vector<8x384xf32> to vector<8x128xf32>
    %174 = vector.broadcast %9 : vector<1x128xf32> to vector<8x128xf32>
    %175 = arith.addf %173, %174 : vector<8x128xf32>
    %176 = arith.mulf %163, %175 : vector<8x128xf32>
    %177 = arith.addf %172, %176 : vector<8x128xf32>
    %178 = math.tanh %177 : vector<8x128xf32>
    %179 = arith.subf %146, %178 : vector<8x128xf32>
    %180 = arith.mulf %171, %179 : vector<8x128xf32>
    %181 = arith.addf %178, %180 : vector<8x128xf32>
    %182 = arith.index_cast %c4_i32 : i32 to index
    %c0_55 = arith.constant 0 : index
    %c0_56 = arith.constant 0 : index
    %183 = vector.load %arg14[%182, %c0_55, %c0_56] : memref<8x8x128xf32, #tpu.memory_space<vmem>>, vector<1x8x128xf32>
    %184 = vector.shape_cast %183 : vector<1x8x128xf32> to vector<8x128xf32>
    %185 = vector.shape_cast %181 : vector<8x128xf32> to vector<1x8x128xf32>
    tpu.vector_store %arg14[%182, %c0_55, %c0_56], %185 {strides = array<i32>} : memref<8x8x128xf32, #tpu.memory_space<vmem>>, vector<1x8x128xf32>,
    %c5_i32 = arith.constant 5 : i32
    %186 = arith.index_cast %c5_i32 : i32 to index
    %c0_57 = arith.constant 0 : index
    %c0_58 = arith.constant 0 : index
    %187 = vector.load %arg13[%186, %c0_57, %c0_58] : memref<8x8x384xf32, #tpu.memory_space<vmem>>, vector<1x8x384xf32>
    %188 = vector.shape_cast %187 : vector<1x8x384xf32> to vector<8x384xf32>
    %c0_59 = arith.constant 0 : index
    %c0_60 = arith.constant 0 : index
    %189 = vector.load %arg3[%c0_59, %c0_60] : memref<128x384xf32, #tpu.memory_space<vmem>>, vector<128x384xf32>
    %cst_61 = arith.constant dense<0.000000e+00> : vector<8x384xf32>
    %190 = tpu.matmul %181, %189, %cst_61 {dimension_numbers = #tpu.dot_dimension_numbers<[1], [0], [0], [1], [0, 0, 1, 1], [], []>} : vector<8x128xf32>, vector<128x384xf32>, vector<8x384xf32> -> vector<8x384xf32>
    %191 = vector.extract_strided_slice %188 {offsets = [0, 0], sizes = [8, 128], strides = [1, 1]} : vector<8x384xf32> to vector<8x128xf32>
    %192 = vector.extract_strided_slice %190 {offsets = [0, 0], sizes = [8, 128], strides = [1, 1]} : vector<8x384xf32> to vector<8x128xf32>
    %193 = arith.addf %191, %192 : vector<8x128xf32>
    %194 = arith.negf %193 : vector<8x128xf32>
    %195 = math.exp %194 : vector<8x128xf32>
    %cst_62 = arith.constant 1.000000e+00 : f32
    %196 = vector.broadcast %cst_62 : f32 to vector<8x128xf32>
    %197 = arith.addf %196, %195 : vector<8x128xf32>
    %198 = arith.divf %196, %197 : vector<8x128xf32>
    %199 = vector.extract_strided_slice %188 {offsets = [0, 128], sizes = [8, 128], strides = [1, 1]} : vector<8x384xf32> to vector<8x128xf32>
    %200 = vector.extract_strided_slice %190 {offsets = [0, 128], sizes = [8, 128], strides = [1, 1]} : vector<8x384xf32> to vector<8x128xf32>
    %201 = arith.addf %199, %200 : vector<8x128xf32>
    %202 = arith.negf %201 : vector<8x128xf32>
    %203 = math.exp %202 : vector<8x128xf32>
    %cst_63 = arith.constant 1.000000e+00 : f32
    %204 = vector.broadcast %cst_63 : f32 to vector<8x128xf32>
    %205 = arith.addf %204, %203 : vector<8x128xf32>
    %206 = arith.divf %204, %205 : vector<8x128xf32>
    %207 = vector.extract_strided_slice %188 {offsets = [0, 256], sizes = [8, 128], strides = [1, 1]} : vector<8x384xf32> to vector<8x128xf32>
    %208 = vector.extract_strided_slice %190 {offsets = [0, 256], sizes = [8, 128], strides = [1, 1]} : vector<8x384xf32> to vector<8x128xf32>
    %209 = vector.broadcast %9 : vector<1x128xf32> to vector<8x128xf32>
    %210 = arith.addf %208, %209 : vector<8x128xf32>
    %211 = arith.mulf %198, %210 : vector<8x128xf32>
    %212 = arith.addf %207, %211 : vector<8x128xf32>
    %213 = math.tanh %212 : vector<8x128xf32>
    %214 = arith.subf %181, %213 : vector<8x128xf32>
    %215 = arith.mulf %206, %214 : vector<8x128xf32>
    %216 = arith.addf %213, %215 : vector<8x128xf32>
    %217 = arith.index_cast %c5_i32 : i32 to index
    %c0_64 = arith.constant 0 : index
    %c0_65 = arith.constant 0 : index
    %218 = vector.load %arg14[%217, %c0_64, %c0_65] : memref<8x8x128xf32, #tpu.memory_space<vmem>>, vector<1x8x128xf32>
    %219 = vector.shape_cast %218 : vector<1x8x128xf32> to vector<8x128xf32>
    %220 = vector.shape_cast %216 : vector<8x128xf32> to vector<1x8x128xf32>
    tpu.vector_store %arg14[%217, %c0_64, %c0_65], %220 {strides = array<i32>} : memref<8x8x128xf32, #tpu.memory_space<vmem>>, vector<1x8x128xf32>,
    %c6_i32 = arith.constant 6 : i32
    %221 = arith.index_cast %c6_i32 : i32 to index
    %c0_66 = arith.constant 0 : index
    %c0_67 = arith.constant 0 : index
    %222 = vector.load %arg13[%221, %c0_66, %c0_67] : memref<8x8x384xf32, #tpu.memory_space<vmem>>, vector<1x8x384xf32>
    %223 = vector.shape_cast %222 : vector<1x8x384xf32> to vector<8x384xf32>
    %c0_68 = arith.constant 0 : index
    %c0_69 = arith.constant 0 : index
    %224 = vector.load %arg3[%c0_68, %c0_69] : memref<128x384xf32, #tpu.memory_space<vmem>>, vector<128x384xf32>
    %cst_70 = arith.constant dense<0.000000e+00> : vector<8x384xf32>
    %225 = tpu.matmul %216, %224, %cst_70 {dimension_numbers = #tpu.dot_dimension_numbers<[1], [0], [0], [1], [0, 0, 1, 1], [], []>} : vector<8x128xf32>, vector<128x384xf32>, vector<8x384xf32> -> vector<8x384xf32>
    %226 = vector.extract_strided_slice %223 {offsets = [0, 0], sizes = [8, 128], strides = [1, 1]} : vector<8x384xf32> to vector<8x128xf32>
    %227 = vector.extract_strided_slice %225 {offsets = [0, 0], sizes = [8, 128], strides = [1, 1]} : vector<8x384xf32> to vector<8x128xf32>
    %228 = arith.addf %226, %227 : vector<8x128xf32>
    %229 = arith.negf %228 : vector<8x128xf32>
    %230 = math.exp %229 : vector<8x128xf32>
    %cst_71 = arith.constant 1.000000e+00 : f32
    %231 = vector.broadcast %cst_71 : f32 to vector<8x128xf32>
    %232 = arith.addf %231, %230 : vector<8x128xf32>
    %233 = arith.divf %231, %232 : vector<8x128xf32>
    %234 = vector.extract_strided_slice %223 {offsets = [0, 128], sizes = [8, 128], strides = [1, 1]} : vector<8x384xf32> to vector<8x128xf32>
    %235 = vector.extract_strided_slice %225 {offsets = [0, 128], sizes = [8, 128], strides = [1, 1]} : vector<8x384xf32> to vector<8x128xf32>
    %236 = arith.addf %234, %235 : vector<8x128xf32>
    %237 = arith.negf %236 : vector<8x128xf32>
    %238 = math.exp %237 : vector<8x128xf32>
    %cst_72 = arith.constant 1.000000e+00 : f32
    %239 = vector.broadcast %cst_72 : f32 to vector<8x128xf32>
    %240 = arith.addf %239, %238 : vector<8x128xf32>
    %241 = arith.divf %239, %240 : vector<8x128xf32>
    %242 = vector.extract_strided_slice %223 {offsets = [0, 256], sizes = [8, 128], strides = [1, 1]} : vector<8x384xf32> to vector<8x128xf32>
    %243 = vector.extract_strided_slice %225 {offsets = [0, 256], sizes = [8, 128], strides = [1, 1]} : vector<8x384xf32> to vector<8x128xf32>
    %244 = vector.broadcast %9 : vector<1x128xf32> to vector<8x128xf32>
    %245 = arith.addf %243, %244 : vector<8x128xf32>
    %246 = arith.mulf %233, %245 : vector<8x128xf32>
    %247 = arith.addf %242, %246 : vector<8x128xf32>
    %248 = math.tanh %247 : vector<8x128xf32>
    %249 = arith.subf %216, %248 : vector<8x128xf32>
    %250 = arith.mulf %241, %249 : vector<8x128xf32>
    %251 = arith.addf %248, %250 : vector<8x128xf32>
    %252 = arith.index_cast %c6_i32 : i32 to index
    %c0_73 = arith.constant 0 : index
    %c0_74 = arith.constant 0 : index
    %253 = vector.load %arg14[%252, %c0_73, %c0_74] : memref<8x8x128xf32, #tpu.memory_space<vmem>>, vector<1x8x128xf32>
    %254 = vector.shape_cast %253 : vector<1x8x128xf32> to vector<8x128xf32>
    %255 = vector.shape_cast %251 : vector<8x128xf32> to vector<1x8x128xf32>
    tpu.vector_store %arg14[%252, %c0_73, %c0_74], %255 {strides = array<i32>} : memref<8x8x128xf32, #tpu.memory_space<vmem>>, vector<1x8x128xf32>,
    %c7_i32 = arith.constant 7 : i32
    %256 = arith.index_cast %c7_i32 : i32 to index
    %c0_75 = arith.constant 0 : index
    %c0_76 = arith.constant 0 : index
    %257 = vector.load %arg13[%256, %c0_75, %c0_76] : memref<8x8x384xf32, #tpu.memory_space<vmem>>, vector<1x8x384xf32>
    %258 = vector.shape_cast %257 : vector<1x8x384xf32> to vector<8x384xf32>
    %c0_77 = arith.constant 0 : index
    %c0_78 = arith.constant 0 : index
    %259 = vector.load %arg3[%c0_77, %c0_78] : memref<128x384xf32, #tpu.memory_space<vmem>>, vector<128x384xf32>
    %cst_79 = arith.constant dense<0.000000e+00> : vector<8x384xf32>
    %260 = tpu.matmul %251, %259, %cst_79 {dimension_numbers = #tpu.dot_dimension_numbers<[1], [0], [0], [1], [0, 0, 1, 1], [], []>} : vector<8x128xf32>, vector<128x384xf32>, vector<8x384xf32> -> vector<8x384xf32>
    %261 = vector.extract_strided_slice %258 {offsets = [0, 0], sizes = [8, 128], strides = [1, 1]} : vector<8x384xf32> to vector<8x128xf32>
    %262 = vector.extract_strided_slice %260 {offsets = [0, 0], sizes = [8, 128], strides = [1, 1]} : vector<8x384xf32> to vector<8x128xf32>
    %263 = arith.addf %261, %262 : vector<8x128xf32>
    %264 = arith.negf %263 : vector<8x128xf32>
    %265 = math.exp %264 : vector<8x128xf32>
    %cst_80 = arith.constant 1.000000e+00 : f32
    %266 = vector.broadcast %cst_80 : f32 to vector<8x128xf32>
    %267 = arith.addf %266, %265 : vector<8x128xf32>
    %268 = arith.divf %266, %267 : vector<8x128xf32>
    %269 = vector.extract_strided_slice %258 {offsets = [0, 128], sizes = [8, 128], strides = [1, 1]} : vector<8x384xf32> to vector<8x128xf32>
    %270 = vector.extract_strided_slice %260 {offsets = [0, 128], sizes = [8, 128], strides = [1, 1]} : vector<8x384xf32> to vector<8x128xf32>
    %271 = arith.addf %269, %270 : vector<8x128xf32>
    %272 = arith.negf %271 : vector<8x128xf32>
    %273 = math.exp %272 : vector<8x128xf32>
    %cst_81 = arith.constant 1.000000e+00 : f32
    %274 = vector.broadcast %cst_81 : f32 to vector<8x128xf32>
    %275 = arith.addf %274, %273 : vector<8x128xf32>
    %276 = arith.divf %274, %275 : vector<8x128xf32>
    %277 = vector.extract_strided_slice %258 {offsets = [0, 256], sizes = [8, 128], strides = [1, 1]} : vector<8x384xf32> to vector<8x128xf32>
    %278 = vector.extract_strided_slice %260 {offsets = [0, 256], sizes = [8, 128], strides = [1, 1]} : vector<8x384xf32> to vector<8x128xf32>
    %279 = vector.broadcast %9 : vector<1x128xf32> to vector<8x128xf32>
    %280 = arith.addf %278, %279 : vector<8x128xf32>
    %281 = arith.mulf %268, %280 : vector<8x128xf32>
    %282 = arith.addf %277, %281 : vector<8x128xf32>
    %283 = math.tanh %282 : vector<8x128xf32>
    %284 = arith.subf %251, %283 : vector<8x128xf32>
    %285 = arith.mulf %276, %284 : vector<8x128xf32>
    %286 = arith.addf %283, %285 : vector<8x128xf32>
    %287 = arith.index_cast %c7_i32 : i32 to index
    %c0_82 = arith.constant 0 : index
    %c0_83 = arith.constant 0 : index
    %288 = vector.load %arg14[%287, %c0_82, %c0_83] : memref<8x8x128xf32, #tpu.memory_space<vmem>>, vector<1x8x128xf32>
    %289 = vector.shape_cast %288 : vector<1x8x128xf32> to vector<8x128xf32>
    %290 = vector.shape_cast %286 : vector<8x128xf32> to vector<1x8x128xf32>
    tpu.vector_store %arg14[%287, %c0_82, %c0_83], %290 {strides = array<i32>} : memref<8x8x128xf32, #tpu.memory_space<vmem>>, vector<1x8x128xf32>,
    %c8_i32 = arith.constant 8 : i32
    %c0_84 = arith.constant 0 : index
    %c0_85 = arith.constant 0 : index
    %c0_86 = arith.constant 0 : index
    %291 = vector.load %arg14[%c0_84, %c0_85, %c0_86] : memref<8x8x128xf32, #tpu.memory_space<vmem>>, vector<8x8x128xf32>
    %292 = vector.shape_cast %291 : vector<8x8x128xf32> to vector<64x128xf32>
    %c0_87 = arith.constant 0 : index
    %c0_88 = arith.constant 0 : index
    %293 = vector.load %arg6[%c0_87, %c0_88] : memref<128x384xf32, #tpu.memory_space<vmem>>, vector<128x384xf32>
    %cst_89 = arith.constant dense<0.000000e+00> : vector<64x384xf32>
    %294 = tpu.matmul %292, %293, %cst_89 {dimension_numbers = #tpu.dot_dimension_numbers<[1], [0], [0], [1], [0, 0, 1, 1], [], []>} : vector<64x128xf32>, vector<128x384xf32>, vector<64x384xf32> -> vector<64x384xf32>
    %c0_90 = arith.constant 0 : index
    %c0_91 = arith.constant 0 : index
    %295 = vector.load %arg8[%c0_90, %c0_91] : memref<1x384xf32, #tpu.memory_space<vmem>>, vector<1x384xf32>
    %296 = vector.broadcast %295 : vector<1x384xf32> to vector<64x384xf32>
    %297 = arith.addf %294, %296 : vector<64x384xf32>
    %298 = vector.shape_cast %297 : vector<64x384xf32> to vector<8x8x384xf32>
    %c0_92 = arith.constant 0 : index
    %c0_93 = arith.constant 0 : index
    %c0_94 = arith.constant 0 : index
    %299 = vector.load %arg13[%c0_92, %c0_93, %c0_94] : memref<8x8x384xf32, #tpu.memory_space<vmem>>, vector<8x8x384xf32>
    tpu.vector_store %arg13[%c0_92, %c0_93, %c0_94], %298 {strides = array<i32>} : memref<8x8x384xf32, #tpu.memory_space<vmem>>, vector<8x8x384xf32>,
    %c0_95 = arith.constant 0 : index
    %c0_96 = arith.constant 0 : index
    %300 = vector.load %arg9[%c0_95, %c0_96] : memref<1x128xf32, #tpu.memory_space<vmem>>, vector<1x128xf32>
    %cst_97 = arith.constant 0.000000e+00 : f32
    %301 = vector.broadcast %cst_97 : f32 to vector<8x128xf32>
    %c0_i32_98 = arith.constant 0 : i32
    %302 = arith.index_cast %c0_i32_98 : i32 to index
    %c0_99 = arith.constant 0 : index
    %c0_100 = arith.constant 0 : index
    %303 = vector.load %arg13[%302, %c0_99, %c0_100] : memref<8x8x384xf32, #tpu.memory_space<vmem>>, vector<1x8x384xf32>
    %304 = vector.shape_cast %303 : vector<1x8x384xf32> to vector<8x384xf32>
    %c0_101 = arith.constant 0 : index
    %c0_102 = arith.constant 0 : index
    %305 = vector.load %arg7[%c0_101, %c0_102] : memref<128x384xf32, #tpu.memory_space<vmem>>, vector<128x384xf32>
    %cst_103 = arith.constant dense<0.000000e+00> : vector<8x384xf32>
    %306 = tpu.matmul %301, %305, %cst_103 {dimension_numbers = #tpu.dot_dimension_numbers<[1], [0], [0], [1], [0, 0, 1, 1], [], []>} : vector<8x128xf32>, vector<128x384xf32>, vector<8x384xf32> -> vector<8x384xf32>
    %307 = vector.extract_strided_slice %304 {offsets = [0, 0], sizes = [8, 128], strides = [1, 1]} : vector<8x384xf32> to vector<8x128xf32>
    %308 = vector.extract_strided_slice %306 {offsets = [0, 0], sizes = [8, 128], strides = [1, 1]} : vector<8x384xf32> to vector<8x128xf32>
    %309 = arith.addf %307, %308 : vector<8x128xf32>
    %310 = arith.negf %309 : vector<8x128xf32>
    %311 = math.exp %310 : vector<8x128xf32>
    %cst_104 = arith.constant 1.000000e+00 : f32
    %312 = vector.broadcast %cst_104 : f32 to vector<8x128xf32>
    %313 = arith.addf %312, %311 : vector<8x128xf32>
    %314 = arith.divf %312, %313 : vector<8x128xf32>
    %315 = vector.extract_strided_slice %304 {offsets = [0, 128], sizes = [8, 128], strides = [1, 1]} : vector<8x384xf32> to vector<8x128xf32>
    %316 = vector.extract_strided_slice %306 {offsets = [0, 128], sizes = [8, 128], strides = [1, 1]} : vector<8x384xf32> to vector<8x128xf32>
    %317 = arith.addf %315, %316 : vector<8x128xf32>
    %318 = arith.negf %317 : vector<8x128xf32>
    %319 = math.exp %318 : vector<8x128xf32>
    %cst_105 = arith.constant 1.000000e+00 : f32
    %320 = vector.broadcast %cst_105 : f32 to vector<8x128xf32>
    %321 = arith.addf %320, %319 : vector<8x128xf32>
    %322 = arith.divf %320, %321 : vector<8x128xf32>
    %323 = vector.extract_strided_slice %304 {offsets = [0, 256], sizes = [8, 128], strides = [1, 1]} : vector<8x384xf32> to vector<8x128xf32>
    %324 = vector.extract_strided_slice %306 {offsets = [0, 256], sizes = [8, 128], strides = [1, 1]} : vector<8x384xf32> to vector<8x128xf32>
    %325 = vector.broadcast %300 : vector<1x128xf32> to vector<8x128xf32>
    %326 = arith.addf %324, %325 : vector<8x128xf32>
    %327 = arith.mulf %314, %326 : vector<8x128xf32>
    %328 = arith.addf %323, %327 : vector<8x128xf32>
    %329 = math.tanh %328 : vector<8x128xf32>
    %330 = arith.subf %301, %329 : vector<8x128xf32>
    %331 = arith.mulf %322, %330 : vector<8x128xf32>
    %332 = arith.addf %329, %331 : vector<8x128xf32>
    %c1_i32_106 = arith.constant 1 : i32
    %333 = arith.index_cast %c1_i32_106 : i32 to index
    %c0_107 = arith.constant 0 : index
    %c0_108 = arith.constant 0 : index
    %334 = vector.load %arg13[%333, %c0_107, %c0_108] : memref<8x8x384xf32, #tpu.memory_space<vmem>>, vector<1x8x384xf32>
    %335 = vector.shape_cast %334 : vector<1x8x384xf32> to vector<8x384xf32>
    %c0_109 = arith.constant 0 : index
    %c0_110 = arith.constant 0 : index
    %336 = vector.load %arg7[%c0_109, %c0_110] : memref<128x384xf32, #tpu.memory_space<vmem>>, vector<128x384xf32>
    %cst_111 = arith.constant dense<0.000000e+00> : vector<8x384xf32>
    %337 = tpu.matmul %332, %336, %cst_111 {dimension_numbers = #tpu.dot_dimension_numbers<[1], [0], [0], [1], [0, 0, 1, 1], [], []>} : vector<8x128xf32>, vector<128x384xf32>, vector<8x384xf32> -> vector<8x384xf32>
    %338 = vector.extract_strided_slice %335 {offsets = [0, 0], sizes = [8, 128], strides = [1, 1]} : vector<8x384xf32> to vector<8x128xf32>
    %339 = vector.extract_strided_slice %337 {offsets = [0, 0], sizes = [8, 128], strides = [1, 1]} : vector<8x384xf32> to vector<8x128xf32>
    %340 = arith.addf %338, %339 : vector<8x128xf32>
    %341 = arith.negf %340 : vector<8x128xf32>
    %342 = math.exp %341 : vector<8x128xf32>
    %cst_112 = arith.constant 1.000000e+00 : f32
    %343 = vector.broadcast %cst_112 : f32 to vector<8x128xf32>
    %344 = arith.addf %343, %342 : vector<8x128xf32>
    %345 = arith.divf %343, %344 : vector<8x128xf32>
    %346 = vector.extract_strided_slice %335 {offsets = [0, 128], sizes = [8, 128], strides = [1, 1]} : vector<8x384xf32> to vector<8x128xf32>
    %347 = vector.extract_strided_slice %337 {offsets = [0, 128], sizes = [8, 128], strides = [1, 1]} : vector<8x384xf32> to vector<8x128xf32>
    %348 = arith.addf %346, %347 : vector<8x128xf32>
    %349 = arith.negf %348 : vector<8x128xf32>
    %350 = math.exp %349 : vector<8x128xf32>
    %cst_113 = arith.constant 1.000000e+00 : f32
    %351 = vector.broadcast %cst_113 : f32 to vector<8x128xf32>
    %352 = arith.addf %351, %350 : vector<8x128xf32>
    %353 = arith.divf %351, %352 : vector<8x128xf32>
    %354 = vector.extract_strided_slice %335 {offsets = [0, 256], sizes = [8, 128], strides = [1, 1]} : vector<8x384xf32> to vector<8x128xf32>
    %355 = vector.extract_strided_slice %337 {offsets = [0, 256], sizes = [8, 128], strides = [1, 1]} : vector<8x384xf32> to vector<8x128xf32>
    %356 = vector.broadcast %300 : vector<1x128xf32> to vector<8x128xf32>
    %357 = arith.addf %355, %356 : vector<8x128xf32>
    %358 = arith.mulf %345, %357 : vector<8x128xf32>
    %359 = arith.addf %354, %358 : vector<8x128xf32>
    %360 = math.tanh %359 : vector<8x128xf32>
    %361 = arith.subf %332, %360 : vector<8x128xf32>
    %362 = arith.mulf %353, %361 : vector<8x128xf32>
    %363 = arith.addf %360, %362 : vector<8x128xf32>
    %c2_i32_114 = arith.constant 2 : i32
    %364 = arith.index_cast %c2_i32_114 : i32 to index
    %c0_115 = arith.constant 0 : index
    %c0_116 = arith.constant 0 : index
    %365 = vector.load %arg13[%364, %c0_115, %c0_116] : memref<8x8x384xf32, #tpu.memory_space<vmem>>, vector<1x8x384xf32>
    %366 = vector.shape_cast %365 : vector<1x8x384xf32> to vector<8x384xf32>
    %c0_117 = arith.constant 0 : index
    %c0_118 = arith.constant 0 : index
    %367 = vector.load %arg7[%c0_117, %c0_118] : memref<128x384xf32, #tpu.memory_space<vmem>>, vector<128x384xf32>
    %cst_119 = arith.constant dense<0.000000e+00> : vector<8x384xf32>
    %368 = tpu.matmul %363, %367, %cst_119 {dimension_numbers = #tpu.dot_dimension_numbers<[1], [0], [0], [1], [0, 0, 1, 1], [], []>} : vector<8x128xf32>, vector<128x384xf32>, vector<8x384xf32> -> vector<8x384xf32>
    %369 = vector.extract_strided_slice %366 {offsets = [0, 0], sizes = [8, 128], strides = [1, 1]} : vector<8x384xf32> to vector<8x128xf32>
    %370 = vector.extract_strided_slice %368 {offsets = [0, 0], sizes = [8, 128], strides = [1, 1]} : vector<8x384xf32> to vector<8x128xf32>
    %371 = arith.addf %369, %370 : vector<8x128xf32>
    %372 = arith.negf %371 : vector<8x128xf32>
    %373 = math.exp %372 : vector<8x128xf32>
    %cst_120 = arith.constant 1.000000e+00 : f32
    %374 = vector.broadcast %cst_120 : f32 to vector<8x128xf32>
    %375 = arith.addf %374, %373 : vector<8x128xf32>
    %376 = arith.divf %374, %375 : vector<8x128xf32>
    %377 = vector.extract_strided_slice %366 {offsets = [0, 128], sizes = [8, 128], strides = [1, 1]} : vector<8x384xf32> to vector<8x128xf32>
    %378 = vector.extract_strided_slice %368 {offsets = [0, 128], sizes = [8, 128], strides = [1, 1]} : vector<8x384xf32> to vector<8x128xf32>
    %379 = arith.addf %377, %378 : vector<8x128xf32>
    %380 = arith.negf %379 : vector<8x128xf32>
    %381 = math.exp %380 : vector<8x128xf32>
    %cst_121 = arith.constant 1.000000e+00 : f32
    %382 = vector.broadcast %cst_121 : f32 to vector<8x128xf32>
    %383 = arith.addf %382, %381 : vector<8x128xf32>
    %384 = arith.divf %382, %383 : vector<8x128xf32>
    %385 = vector.extract_strided_slice %366 {offsets = [0, 256], sizes = [8, 128], strides = [1, 1]} : vector<8x384xf32> to vector<8x128xf32>
    %386 = vector.extract_strided_slice %368 {offsets = [0, 256], sizes = [8, 128], strides = [1, 1]} : vector<8x384xf32> to vector<8x128xf32>
    %387 = vector.broadcast %300 : vector<1x128xf32> to vector<8x128xf32>
    %388 = arith.addf %386, %387 : vector<8x128xf32>
    %389 = arith.mulf %376, %388 : vector<8x128xf32>
    %390 = arith.addf %385, %389 : vector<8x128xf32>
    %391 = math.tanh %390 : vector<8x128xf32>
    %392 = arith.subf %363, %391 : vector<8x128xf32>
    %393 = arith.mulf %384, %392 : vector<8x128xf32>
    %394 = arith.addf %391, %393 : vector<8x128xf32>
    %c3_i32_122 = arith.constant 3 : i32
    %395 = arith.index_cast %c3_i32_122 : i32 to index
    %c0_123 = arith.constant 0 : index
    %c0_124 = arith.constant 0 : index
    %396 = vector.load %arg13[%395, %c0_123, %c0_124] : memref<8x8x384xf32, #tpu.memory_space<vmem>>, vector<1x8x384xf32>
    %397 = vector.shape_cast %396 : vector<1x8x384xf32> to vector<8x384xf32>
    %c0_125 = arith.constant 0 : index
    %c0_126 = arith.constant 0 : index
    %398 = vector.load %arg7[%c0_125, %c0_126] : memref<128x384xf32, #tpu.memory_space<vmem>>, vector<128x384xf32>
    %cst_127 = arith.constant dense<0.000000e+00> : vector<8x384xf32>
    %399 = tpu.matmul %394, %398, %cst_127 {dimension_numbers = #tpu.dot_dimension_numbers<[1], [0], [0], [1], [0, 0, 1, 1], [], []>} : vector<8x128xf32>, vector<128x384xf32>, vector<8x384xf32> -> vector<8x384xf32>
    %400 = vector.extract_strided_slice %397 {offsets = [0, 0], sizes = [8, 128], strides = [1, 1]} : vector<8x384xf32> to vector<8x128xf32>
    %401 = vector.extract_strided_slice %399 {offsets = [0, 0], sizes = [8, 128], strides = [1, 1]} : vector<8x384xf32> to vector<8x128xf32>
    %402 = arith.addf %400, %401 : vector<8x128xf32>
    %403 = arith.negf %402 : vector<8x128xf32>
    %404 = math.exp %403 : vector<8x128xf32>
    %cst_128 = arith.constant 1.000000e+00 : f32
    %405 = vector.broadcast %cst_128 : f32 to vector<8x128xf32>
    %406 = arith.addf %405, %404 : vector<8x128xf32>
    %407 = arith.divf %405, %406 : vector<8x128xf32>
    %408 = vector.extract_strided_slice %397 {offsets = [0, 128], sizes = [8, 128], strides = [1, 1]} : vector<8x384xf32> to vector<8x128xf32>
    %409 = vector.extract_strided_slice %399 {offsets = [0, 128], sizes = [8, 128], strides = [1, 1]} : vector<8x384xf32> to vector<8x128xf32>
    %410 = arith.addf %408, %409 : vector<8x128xf32>
    %411 = arith.negf %410 : vector<8x128xf32>
    %412 = math.exp %411 : vector<8x128xf32>
    %cst_129 = arith.constant 1.000000e+00 : f32
    %413 = vector.broadcast %cst_129 : f32 to vector<8x128xf32>
    %414 = arith.addf %413, %412 : vector<8x128xf32>
    %415 = arith.divf %413, %414 : vector<8x128xf32>
    %416 = vector.extract_strided_slice %397 {offsets = [0, 256], sizes = [8, 128], strides = [1, 1]} : vector<8x384xf32> to vector<8x128xf32>
    %417 = vector.extract_strided_slice %399 {offsets = [0, 256], sizes = [8, 128], strides = [1, 1]} : vector<8x384xf32> to vector<8x128xf32>
    %418 = vector.broadcast %300 : vector<1x128xf32> to vector<8x128xf32>
    %419 = arith.addf %417, %418 : vector<8x128xf32>
    %420 = arith.mulf %407, %419 : vector<8x128xf32>
    %421 = arith.addf %416, %420 : vector<8x128xf32>
    %422 = math.tanh %421 : vector<8x128xf32>
    %423 = arith.subf %394, %422 : vector<8x128xf32>
    %424 = arith.mulf %415, %423 : vector<8x128xf32>
    %425 = arith.addf %422, %424 : vector<8x128xf32>
    %c4_i32_130 = arith.constant 4 : i32
    %426 = arith.index_cast %c4_i32_130 : i32 to index
    %c0_131 = arith.constant 0 : index
    %c0_132 = arith.constant 0 : index
    %427 = vector.load %arg13[%426, %c0_131, %c0_132] : memref<8x8x384xf32, #tpu.memory_space<vmem>>, vector<1x8x384xf32>
    %428 = vector.shape_cast %427 : vector<1x8x384xf32> to vector<8x384xf32>
    %c0_133 = arith.constant 0 : index
    %c0_134 = arith.constant 0 : index
    %429 = vector.load %arg7[%c0_133, %c0_134] : memref<128x384xf32, #tpu.memory_space<vmem>>, vector<128x384xf32>
    %cst_135 = arith.constant dense<0.000000e+00> : vector<8x384xf32>
    %430 = tpu.matmul %425, %429, %cst_135 {dimension_numbers = #tpu.dot_dimension_numbers<[1], [0], [0], [1], [0, 0, 1, 1], [], []>} : vector<8x128xf32>, vector<128x384xf32>, vector<8x384xf32> -> vector<8x384xf32>
    %431 = vector.extract_strided_slice %428 {offsets = [0, 0], sizes = [8, 128], strides = [1, 1]} : vector<8x384xf32> to vector<8x128xf32>
    %432 = vector.extract_strided_slice %430 {offsets = [0, 0], sizes = [8, 128], strides = [1, 1]} : vector<8x384xf32> to vector<8x128xf32>
    %433 = arith.addf %431, %432 : vector<8x128xf32>
    %434 = arith.negf %433 : vector<8x128xf32>
    %435 = math.exp %434 : vector<8x128xf32>
    %cst_136 = arith.constant 1.000000e+00 : f32
    %436 = vector.broadcast %cst_136 : f32 to vector<8x128xf32>
    %437 = arith.addf %436, %435 : vector<8x128xf32>
    %438 = arith.divf %436, %437 : vector<8x128xf32>
    %439 = vector.extract_strided_slice %428 {offsets = [0, 128], sizes = [8, 128], strides = [1, 1]} : vector<8x384xf32> to vector<8x128xf32>
    %440 = vector.extract_strided_slice %430 {offsets = [0, 128], sizes = [8, 128], strides = [1, 1]} : vector<8x384xf32> to vector<8x128xf32>
    %441 = arith.addf %439, %440 : vector<8x128xf32>
    %442 = arith.negf %441 : vector<8x128xf32>
    %443 = math.exp %442 : vector<8x128xf32>
    %cst_137 = arith.constant 1.000000e+00 : f32
    %444 = vector.broadcast %cst_137 : f32 to vector<8x128xf32>
    %445 = arith.addf %444, %443 : vector<8x128xf32>
    %446 = arith.divf %444, %445 : vector<8x128xf32>
    %447 = vector.extract_strided_slice %428 {offsets = [0, 256], sizes = [8, 128], strides = [1, 1]} : vector<8x384xf32> to vector<8x128xf32>
    %448 = vector.extract_strided_slice %430 {offsets = [0, 256], sizes = [8, 128], strides = [1, 1]} : vector<8x384xf32> to vector<8x128xf32>
    %449 = vector.broadcast %300 : vector<1x128xf32> to vector<8x128xf32>
    %450 = arith.addf %448, %449 : vector<8x128xf32>
    %451 = arith.mulf %438, %450 : vector<8x128xf32>
    %452 = arith.addf %447, %451 : vector<8x128xf32>
    %453 = math.tanh %452 : vector<8x128xf32>
    %454 = arith.subf %425, %453 : vector<8x128xf32>
    %455 = arith.mulf %446, %454 : vector<8x128xf32>
    %456 = arith.addf %453, %455 : vector<8x128xf32>
    %c5_i32_138 = arith.constant 5 : i32
    %457 = arith.index_cast %c5_i32_138 : i32 to index
    %c0_139 = arith.constant 0 : index
    %c0_140 = arith.constant 0 : index
    %458 = vector.load %arg13[%457, %c0_139, %c0_140] : memref<8x8x384xf32, #tpu.memory_space<vmem>>, vector<1x8x384xf32>
    %459 = vector.shape_cast %458 : vector<1x8x384xf32> to vector<8x384xf32>
    %c0_141 = arith.constant 0 : index
    %c0_142 = arith.constant 0 : index
    %460 = vector.load %arg7[%c0_141, %c0_142] : memref<128x384xf32, #tpu.memory_space<vmem>>, vector<128x384xf32>
    %cst_143 = arith.constant dense<0.000000e+00> : vector<8x384xf32>
    %461 = tpu.matmul %456, %460, %cst_143 {dimension_numbers = #tpu.dot_dimension_numbers<[1], [0], [0], [1], [0, 0, 1, 1], [], []>} : vector<8x128xf32>, vector<128x384xf32>, vector<8x384xf32> -> vector<8x384xf32>
    %462 = vector.extract_strided_slice %459 {offsets = [0, 0], sizes = [8, 128], strides = [1, 1]} : vector<8x384xf32> to vector<8x128xf32>
    %463 = vector.extract_strided_slice %461 {offsets = [0, 0], sizes = [8, 128], strides = [1, 1]} : vector<8x384xf32> to vector<8x128xf32>
    %464 = arith.addf %462, %463 : vector<8x128xf32>
    %465 = arith.negf %464 : vector<8x128xf32>
    %466 = math.exp %465 : vector<8x128xf32>
    %cst_144 = arith.constant 1.000000e+00 : f32
    %467 = vector.broadcast %cst_144 : f32 to vector<8x128xf32>
    %468 = arith.addf %467, %466 : vector<8x128xf32>
    %469 = arith.divf %467, %468 : vector<8x128xf32>
    %470 = vector.extract_strided_slice %459 {offsets = [0, 128], sizes = [8, 128], strides = [1, 1]} : vector<8x384xf32> to vector<8x128xf32>
    %471 = vector.extract_strided_slice %461 {offsets = [0, 128], sizes = [8, 128], strides = [1, 1]} : vector<8x384xf32> to vector<8x128xf32>
    %472 = arith.addf %470, %471 : vector<8x128xf32>
    %473 = arith.negf %472 : vector<8x128xf32>
    %474 = math.exp %473 : vector<8x128xf32>
    %cst_145 = arith.constant 1.000000e+00 : f32
    %475 = vector.broadcast %cst_145 : f32 to vector<8x128xf32>
    %476 = arith.addf %475, %474 : vector<8x128xf32>
    %477 = arith.divf %475, %476 : vector<8x128xf32>
    %478 = vector.extract_strided_slice %459 {offsets = [0, 256], sizes = [8, 128], strides = [1, 1]} : vector<8x384xf32> to vector<8x128xf32>
    %479 = vector.extract_strided_slice %461 {offsets = [0, 256], sizes = [8, 128], strides = [1, 1]} : vector<8x384xf32> to vector<8x128xf32>
    %480 = vector.broadcast %300 : vector<1x128xf32> to vector<8x128xf32>
    %481 = arith.addf %479, %480 : vector<8x128xf32>
    %482 = arith.mulf %469, %481 : vector<8x128xf32>
    %483 = arith.addf %478, %482 : vector<8x128xf32>
    %484 = math.tanh %483 : vector<8x128xf32>
    %485 = arith.subf %456, %484 : vector<8x128xf32>
    %486 = arith.mulf %477, %485 : vector<8x128xf32>
    %487 = arith.addf %484, %486 : vector<8x128xf32>
    %c6_i32_146 = arith.constant 6 : i32
    %488 = arith.index_cast %c6_i32_146 : i32 to index
    %c0_147 = arith.constant 0 : index
    %c0_148 = arith.constant 0 : index
    %489 = vector.load %arg13[%488, %c0_147, %c0_148] : memref<8x8x384xf32, #tpu.memory_space<vmem>>, vector<1x8x384xf32>
    %490 = vector.shape_cast %489 : vector<1x8x384xf32> to vector<8x384xf32>
    %c0_149 = arith.constant 0 : index
    %c0_150 = arith.constant 0 : index
    %491 = vector.load %arg7[%c0_149, %c0_150] : memref<128x384xf32, #tpu.memory_space<vmem>>, vector<128x384xf32>
    %cst_151 = arith.constant dense<0.000000e+00> : vector<8x384xf32>
    %492 = tpu.matmul %487, %491, %cst_151 {dimension_numbers = #tpu.dot_dimension_numbers<[1], [0], [0], [1], [0, 0, 1, 1], [], []>} : vector<8x128xf32>, vector<128x384xf32>, vector<8x384xf32> -> vector<8x384xf32>
    %493 = vector.extract_strided_slice %490 {offsets = [0, 0], sizes = [8, 128], strides = [1, 1]} : vector<8x384xf32> to vector<8x128xf32>
    %494 = vector.extract_strided_slice %492 {offsets = [0, 0], sizes = [8, 128], strides = [1, 1]} : vector<8x384xf32> to vector<8x128xf32>
    %495 = arith.addf %493, %494 : vector<8x128xf32>
    %496 = arith.negf %495 : vector<8x128xf32>
    %497 = math.exp %496 : vector<8x128xf32>
    %cst_152 = arith.constant 1.000000e+00 : f32
    %498 = vector.broadcast %cst_152 : f32 to vector<8x128xf32>
    %499 = arith.addf %498, %497 : vector<8x128xf32>
    %500 = arith.divf %498, %499 : vector<8x128xf32>
    %501 = vector.extract_strided_slice %490 {offsets = [0, 128], sizes = [8, 128], strides = [1, 1]} : vector<8x384xf32> to vector<8x128xf32>
    %502 = vector.extract_strided_slice %492 {offsets = [0, 128], sizes = [8, 128], strides = [1, 1]} : vector<8x384xf32> to vector<8x128xf32>
    %503 = arith.addf %501, %502 : vector<8x128xf32>
    %504 = arith.negf %503 : vector<8x128xf32>
    %505 = math.exp %504 : vector<8x128xf32>
    %cst_153 = arith.constant 1.000000e+00 : f32
    %506 = vector.broadcast %cst_153 : f32 to vector<8x128xf32>
    %507 = arith.addf %506, %505 : vector<8x128xf32>
    %508 = arith.divf %506, %507 : vector<8x128xf32>
    %509 = vector.extract_strided_slice %490 {offsets = [0, 256], sizes = [8, 128], strides = [1, 1]} : vector<8x384xf32> to vector<8x128xf32>
    %510 = vector.extract_strided_slice %492 {offsets = [0, 256], sizes = [8, 128], strides = [1, 1]} : vector<8x384xf32> to vector<8x128xf32>
    %511 = vector.broadcast %300 : vector<1x128xf32> to vector<8x128xf32>
    %512 = arith.addf %510, %511 : vector<8x128xf32>
    %513 = arith.mulf %500, %512 : vector<8x128xf32>
    %514 = arith.addf %509, %513 : vector<8x128xf32>
    %515 = math.tanh %514 : vector<8x128xf32>
    %516 = arith.subf %487, %515 : vector<8x128xf32>
    %517 = arith.mulf %508, %516 : vector<8x128xf32>
    %518 = arith.addf %515, %517 : vector<8x128xf32>
    %c7_i32_154 = arith.constant 7 : i32
    %519 = arith.index_cast %c7_i32_154 : i32 to index
    %c0_155 = arith.constant 0 : index
    %c0_156 = arith.constant 0 : index
    %520 = vector.load %arg13[%519, %c0_155, %c0_156] : memref<8x8x384xf32, #tpu.memory_space<vmem>>, vector<1x8x384xf32>
    %521 = vector.shape_cast %520 : vector<1x8x384xf32> to vector<8x384xf32>
    %c0_157 = arith.constant 0 : index
    %c0_158 = arith.constant 0 : index
    %522 = vector.load %arg7[%c0_157, %c0_158] : memref<128x384xf32, #tpu.memory_space<vmem>>, vector<128x384xf32>
    %cst_159 = arith.constant dense<0.000000e+00> : vector<8x384xf32>
    %523 = tpu.matmul %518, %522, %cst_159 {dimension_numbers = #tpu.dot_dimension_numbers<[1], [0], [0], [1], [0, 0, 1, 1], [], []>} : vector<8x128xf32>, vector<128x384xf32>, vector<8x384xf32> -> vector<8x384xf32>
    %524 = vector.extract_strided_slice %521 {offsets = [0, 0], sizes = [8, 128], strides = [1, 1]} : vector<8x384xf32> to vector<8x128xf32>
    %525 = vector.extract_strided_slice %523 {offsets = [0, 0], sizes = [8, 128], strides = [1, 1]} : vector<8x384xf32> to vector<8x128xf32>
    %526 = arith.addf %524, %525 : vector<8x128xf32>
    %527 = arith.negf %526 : vector<8x128xf32>
    %528 = math.exp %527 : vector<8x128xf32>
    %cst_160 = arith.constant 1.000000e+00 : f32
    %529 = vector.broadcast %cst_160 : f32 to vector<8x128xf32>
    %530 = arith.addf %529, %528 : vector<8x128xf32>
    %531 = arith.divf %529, %530 : vector<8x128xf32>
    %532 = vector.extract_strided_slice %521 {offsets = [0, 128], sizes = [8, 128], strides = [1, 1]} : vector<8x384xf32> to vector<8x128xf32>
    %533 = vector.extract_strided_slice %523 {offsets = [0, 128], sizes = [8, 128], strides = [1, 1]} : vector<8x384xf32> to vector<8x128xf32>
    %534 = arith.addf %532, %533 : vector<8x128xf32>
    %535 = arith.negf %534 : vector<8x128xf32>
    %536 = math.exp %535 : vector<8x128xf32>
    %cst_161 = arith.constant 1.000000e+00 : f32
    %537 = vector.broadcast %cst_161 : f32 to vector<8x128xf32>
    %538 = arith.addf %537, %536 : vector<8x128xf32>
    %539 = arith.divf %537, %538 : vector<8x128xf32>
    %540 = vector.extract_strided_slice %521 {offsets = [0, 256], sizes = [8, 128], strides = [1, 1]} : vector<8x384xf32> to vector<8x128xf32>
    %541 = vector.extract_strided_slice %523 {offsets = [0, 256], sizes = [8, 128], strides = [1, 1]} : vector<8x384xf32> to vector<8x128xf32>
    %542 = vector.broadcast %300 : vector<1x128xf32> to vector<8x128xf32>
    %543 = arith.addf %541, %542 : vector<8x128xf32>
    %544 = arith.mulf %531, %543 : vector<8x128xf32>
    %545 = arith.addf %540, %544 : vector<8x128xf32>
    %546 = math.tanh %545 : vector<8x128xf32>
    %547 = arith.subf %518, %546 : vector<8x128xf32>
    %548 = arith.mulf %539, %547 : vector<8x128xf32>
    %549 = arith.addf %546, %548 : vector<8x128xf32>
    %c8_i32_162 = arith.constant 8 : i32
    %c0_163 = arith.constant 0 : index
    %c0_164 = arith.constant 0 : index
    %550 = vector.load %arg10[%c0_163, %c0_164] : memref<128x128xf32, #tpu.memory_space<vmem>>, vector<128x128xf32>
    %cst_165 = arith.constant dense<0.000000e+00> : vector<8x128xf32>
    %551 = tpu.matmul %549, %550, %cst_165 {dimension_numbers = #tpu.dot_dimension_numbers<[1], [0], [0], [1], [0, 0, 1, 1], [], []>} : vector<8x128xf32>, vector<128x128xf32>, vector<8x128xf32> -> vector<8x128xf32>
    %c0_166 = arith.constant 0 : index
    %c0_167 = arith.constant 0 : index
    %552 = vector.load %arg11[%c0_166, %c0_167] : memref<1x128xf32, #tpu.memory_space<vmem>>, vector<1x128xf32>
    %553 = vector.broadcast %552 : vector<1x128xf32> to vector<8x128xf32>
    %554 = arith.addf %551, %553 : vector<8x128xf32>
    %c0_168 = arith.constant 0 : index
    %c0_169 = arith.constant 0 : index
    %555 = vector.load %arg12[%c0_168, %c0_169] : memref<8x128xf32, #tpu.memory_space<vmem>>, vector<8x128xf32>
    tpu.vector_store %arg12[%c0_168, %c0_169], %554 {strides = array<i32>} : memref<8x128xf32, #tpu.memory_space<vmem>>, vector<8x128xf32>,
    return
  }
  func.func @transform_0(%arg0: i32) -> (i32, i32, i32) {
    %c0_i32 = arith.constant 0 : i32
    %c0_i32_0 = arith.constant 0 : i32
    %c0_i32_1 = arith.constant 0 : i32
    return %c0_i32, %arg0, %c0_i32_0 : i32, i32, i32
  }
  func.func @transform_1(%arg0: i32) -> (i32, i32) {
    %c0_i32 = arith.constant 0 : i32
    %c0_i32_0 = arith.constant 0 : i32
    %c0_i32_1 = arith.constant 0 : i32
    return %c0_i32, %c0_i32_0 : i32, i32
  }
  func.func @transform_2(%arg0: i32) -> (i32, i32) {
    %c0_i32 = arith.constant 0 : i32
    %c0_i32_0 = arith.constant 0 : i32
    %c0_i32_1 = arith.constant 0 : i32
    return %c0_i32, %c0_i32_0 : i32, i32
  }
  func.func @transform_3(%arg0: i32) -> (i32, i32) {
    %c0_i32 = arith.constant 0 : i32
    %c0_i32_0 = arith.constant 0 : i32
    %c0_i32_1 = arith.constant 0 : i32
    return %c0_i32, %c0_i32_0 : i32, i32
  }
  func.func @transform_4(%arg0: i32) -> (i32, i32) {
    %c0_i32 = arith.constant 0 : i32
    %c0_i32_0 = arith.constant 0 : i32
    %c0_i32_1 = arith.constant 0 : i32
    return %c0_i32, %c0_i32_0 : i32, i32
  }
  func.func @transform_5(%arg0: i32) -> (i32, i32) {
    %c0_i32 = arith.constant 0 : i32
    %c0_i32_0 = arith.constant 0 : i32
    %c0_i32_1 = arith.constant 0 : i32
    return %c0_i32, %c0_i32_0 : i32, i32
  }
  func.func @transform_6(%arg0: i32) -> (i32, i32) {
    %c0_i32 = arith.constant 0 : i32
    %c0_i32_0 = arith.constant 0 : i32
    %c0_i32_1 = arith.constant 0 : i32
    return %c0_i32, %c0_i32_0 : i32, i32
  }
  func.func @transform_7(%arg0: i32) -> (i32, i32) {
    %c0_i32 = arith.constant 0 : i32
    %c0_i32_0 = arith.constant 0 : i32
    %c0_i32_1 = arith.constant 0 : i32
    return %c0_i32, %c0_i32_0 : i32, i32
  }
  func.func @transform_8(%arg0: i32) -> (i32, i32) {
    %c0_i32 = arith.constant 0 : i32
    %c0_i32_0 = arith.constant 0 : i32
    %c0_i32_1 = arith.constant 0 : i32
    return %c0_i32, %c0_i32_0 : i32, i32
  }
  func.func @transform_9(%arg0: i32) -> (i32, i32) {
    %c0_i32 = arith.constant 0 : i32
    %c0_i32_0 = arith.constant 0 : i32
    %c0_i32_1 = arith.constant 0 : i32
    return %c0_i32, %c0_i32_0 : i32, i32
  }
  func.func @transform_10(%arg0: i32) -> (i32, i32) {
    %c0_i32 = arith.constant 0 : i32
    %c0_i32_0 = arith.constant 0 : i32
    %c0_i32_1 = arith.constant 0 : i32
    return %c0_i32, %c0_i32_0 : i32, i32
  }
  func.func @transform_11(%arg0: i32) -> (i32, i32) {
    %c0_i32 = arith.constant 0 : i32
    %c0_i32_0 = arith.constant 0 : i32
    return %arg0, %c0_i32 : i32, i32
  }
}

</mosaic_0001>

<bundles_post_ra>
// kernel: tpu_custom_call.1
= control target key start
LH: loop header
LB: loop body
LE: loop exit
PB: predicated region body
PF: predicated region fallthrough
CT: control target
= control target key end

     0   :  { %16 = vsyncpa [#allocation5], 0  ;;  %s7619_s0 = inlined_call_operand.hbm [shape: f32[8,8,128], index: 0, kind: input, shape index: {}]   ;;  %s7620_s1 = inlined_call_operand.hbm [shape: f32[128,384], index: 1, kind: input, shape index: {}]   ;;  %s7621_s2 = inlined_call_operand.hbm [shape: f32[128,384], index: 2, kind: input, shape index: {}]   ;;  %s7622_s3 = inlined_call_operand.vmem [shape: f32[1,384], index: 3, kind: input, shape index: {}]   ;;  %s7623_s4 = inlined_call_operand.vmem [shape: f32[1,128], index: 4, kind: input, shape index: {}]   ;;  %s7624_s5 = inlined_call_operand.hbm [shape: f32[128,384], index: 5, kind: input, shape index: {}]   ;;  %s7625_s6 = inlined_call_operand.hbm [shape: f32[128,384], index: 6, kind: input, shape index: {}]   ;;  %s7626_s7 = inlined_call_operand.vmem [shape: f32[1,384], index: 7, kind: input, shape index: {}]   ;;  %s7627_s8 = inlined_call_operand.vmem [shape: f32[1,128], index: 8, kind: input, shape index: {}]   ;;  %s7628_s9 = inlined_call_operand.hbm [shape: f32[128,128], index: 9, kind: input, shape index: {}]   ;;  %s7629_s10 = inlined_call_operand.vmem [shape: f32[1,128], index: 10, kind: input, shape index: {}]   ;;  %s7630_s11 = inlined_call_operand.hbm [shape: f32[8,128], index: 11, kind: output, shape index: {}]  }
   0x1   :  { %17 = vsyncpa [#allocation8], 0 }
   0x2   :  { %18 = vsyncpa [#allocation11], 0 }
   0x3   :  { %19 = vsyncpa [#allocation14], 0 }
   0x4   :  { %20 = vsyncpa [#allocation6], 0  ;;  %s6477_s17 = smov [#allocation7]   ;;  %s6313_s21 = scalar_lea.hbm %s7620_s1, 6144 }
   0x5   :  { %s38_s18 = sshll.u32 %s6477_s17, 4  ;;  %p6314_p0 = scmp.ne.s32.totalorder %s7620_s1, %s6313_s21  ;;  %s39_s18 = int_to_ptr.vmem [resolvable:$true] %s38_s18 }
   0x6   :  { %p6317_p1 = scmp.lt.u32.totalorder %s6313_s21, %s7620_s1 }
   0x8   :  { %p6319_p2 = pnand %p6317_p1, %p6314_p0 }
   0xa   :  { %6322 = shalt.err (!%p6319_p2)
}
   0xb   :  { %s6323_s26 = scalar_lea.vmem %s39_s18, 6144  ;;  %p6328_p4 = scmp.lt.s32.totalorder %s39_s18, %s39_s18 }
   0xc   :  { %p6324_p3 = scmp.ne.s32.totalorder %s39_s18, %s6323_s26  ;;  %p6329_p5 = scmp.lt.s32.totalorder %s6323_s26, %s6323_s26 }
   0xe   :  { %p6330_p6 = por %p6329_p5, %p6328_p4 }
  0x10   :  { %p6331_p7 = pnand %p6330_p6, %p6324_p3 }
  0x12   :  { %6334 = shalt.err (!%p6331_p7)
}
  0x13   :  { %s6478_s27 = smov 384   ;;  %s6479_s28 = smov 24  }
  0x14   :  { %44 = dma.hbm_to_vmem [thread:$0]  %s7620_s1, 6144, %s39_s18, [#allocation8], %s6478_s27, %s6478_s27, %s6479_s28  }
  0x15   :  { %s6480_s12 = smov [#allocation10]   ;;  %s6481_s14 = smov [#allocation4]  }
  0x16   :  { %s66_s13 = sshll.u32 %s6480_s12, 4  ;;  %s26_s15 = sshll.u32 %s6481_s14, 4  ;;  %s67_s13 = int_to_ptr.vmem [resolvable:$true] %s66_s13  ;;  %s27_s15 = int_to_ptr.vmem [resolvable:$true] %s26_s15 }
  0x17   :  { %s6335_s19 = scalar_lea.hbm %s7624_s5, 6144 }
  0x18   :  { %p6336_p8 = scmp.ne.s32.totalorder %s7624_s5, %s6335_s19  ;;  %p6339_p9 = scmp.lt.u32.totalorder %s6335_s19, %s7624_s5 }
  0x1a   :  { %p6341_p10 = pnand %p6339_p9, %p6336_p8 }
  0x1c   :  { %6344 = shalt.err (!%p6341_p10)
}
  0x1d   :  { %s6345_s1 = scalar_lea.vmem %s67_s13, 6144  ;;  %p6350_p12 = scmp.lt.s32.totalorder %s67_s13, %s67_s13 }
  0x1e   :  { %p6346_p11 = scmp.ne.s32.totalorder %s67_s13, %s6345_s1  ;;  %p6351_p13 = scmp.lt.s32.totalorder %s6345_s1, %s6345_s1 }
  0x20   :  { %p6352_p0 = por %p6351_p13, %p6350_p12 }
  0x22   :  { %p6353_p1 = pnand %p6352_p0, %p6346_p11 }
  0x24   :  { %6356 = shalt.err (!%p6353_p1)
}
  0x25   :  { %72 = dma.hbm_to_vmem [thread:$0]  %s7624_s5, 6144, %s67_s13, [#allocation11], %s6478_s27, %s6478_s27, %s6479_s28  }
  0x26   :  { %s6357_s29 = scalar_lea.hbm %s7619_s0, 1024 }
  0x27   :  { %p6358_p2 = scmp.ne.s32.totalorder %s7619_s0, %s6357_s29  ;;  %p6361_p3 = scmp.lt.u32.totalorder %s6357_s29, %s7619_s0 }
  0x29   :  { %p6363_p4 = pnand %p6361_p3, %p6358_p2 }
  0x2b   :  { %6366 = shalt.err (!%p6363_p4)
}
  0x2c   :  { %s6367_s17 = scalar_lea.vmem %s27_s15, 1024  ;;  %p6372_p6 = scmp.lt.s32.totalorder %s27_s15, %s27_s15 }
  0x2d   :  { %p6368_p5 = scmp.ne.s32.totalorder %s27_s15, %s6367_s17  ;;  %p6373_p7 = scmp.lt.s32.totalorder %s6367_s17, %s6367_s17 }
  0x2f   :  { %p6374_p8 = por %p6373_p7, %p6372_p6 }
  0x31   :  { %p6375_p9 = pnand %p6374_p8, %p6368_p5 }
  0x33   :  { %6378 = shalt.err (!%p6375_p9)
}
  0x34   :  { %s6482_s5 = smov 128   ;;  %s6483_s13 = smov 8  }
  0x35   :  { %32 = dma.hbm_to_vmem [thread:$0]  %s7619_s0, 1024, %s27_s15, [#allocation5], %s6482_s5, %s6482_s5, %s6483_s13  }
  0x36   :  { %s6484_s21 = smov [#allocation9]   ;;  %s6485_s23 = smov [#allocation12]  }
  0x37   :  { %s50_s22 = sshll.u32 %s6484_s21, 4  ;;  %s78_s1 = sshll.u32 %s6485_s23, 4  ;;  %s51_s22 = int_to_ptr.vmem [resolvable:$true] %s50_s22  ;;  %s79_s1 = int_to_ptr.vmem [resolvable:$true] %s78_s1 }
  0x38   :  { %s6379_s25 = scalar_lea.hbm %s7621_s2, 6144 }
  0x39   :  { %p6380_p10 = scmp.ne.s32.totalorder %s7621_s2, %s6379_s25  ;;  %p6383_p11 = scmp.lt.u32.totalorder %s6379_s25, %s7621_s2 }
  0x3b   :  { %p6385_p12 = pnand %p6383_p11, %p6380_p10 }
  0x3d   :  { %6388 = shalt.err (!%p6385_p12)
}
  0x3e   :  { %s6389_s0 = scalar_lea.vmem %s51_s22, 6144  ;;  %p6394_p0 = scmp.lt.s32.totalorder %s51_s22, %s51_s22 }
  0x3f   :  { %p6390_p13 = scmp.ne.s32.totalorder %s51_s22, %s6389_s0  ;;  %p6395_p1 = scmp.lt.s32.totalorder %s6389_s0, %s6389_s0 }
  0x41   :  { %p6396_p2 = por %p6395_p1, %p6394_p0 }
  0x43   :  { %p6397_p3 = pnand %p6396_p2, %p6390_p13 }
  0x45   :  { %6400 = shalt.err (!%p6397_p3)
}
  0x46   :  { %56 = dma.hbm_to_vmem [thread:$0]  %s7621_s2, 6144, %s51_s22, [#allocation8], %s6478_s27, %s6478_s27, %s6479_s28  }
  0x47   :  { %s6401_s19 = scalar_lea.hbm %s7625_s6, 6144 }
  0x48   :  { %p6402_p4 = scmp.ne.s32.totalorder %s7625_s6, %s6401_s19  ;;  %p6405_p5 = scmp.lt.u32.totalorder %s6401_s19, %s7625_s6 }
  0x4a   :  { %p6407_p6 = pnand %p6405_p5, %p6402_p4 }
  0x4c   :  { %6410 = shalt.err (!%p6407_p6)
}
  0x4d   :  { %s6411_s24 = scalar_lea.vmem %s79_s1, 6144  ;;  %p6416_p8 = scmp.lt.s32.totalorder %s79_s1, %s79_s1 }
  0x4e   :  { %p6412_p7 = scmp.ne.s32.totalorder %s79_s1, %s6411_s24  ;;  %p6417_p9 = scmp.lt.s32.totalorder %s6411_s24, %s6411_s24 }
  0x50   :  { %p6418_p10 = por %p6417_p9, %p6416_p8 }
  0x52   :  { %p6419_p11 = pnand %p6418_p10, %p6412_p7 }
  0x54   :  { %6422 = shalt.err (!%p6419_p11)
}
  0x55   :  { %84 = dma.hbm_to_vmem [thread:$0]  %s7625_s6, 6144, %s79_s1, [#allocation11], %s6478_s27, %s6478_s27, %s6479_s28  }
  0x56   :  { %s6486_s25 = smov [#allocation13]   ;;  %s6423_s12 = scalar_lea.hbm %s7628_s9, 2048 }
  0x57   :  { %s94_s26 = sshll.u32 %s6486_s25, 4  ;;  %p6424_p12 = scmp.ne.s32.totalorder %s7628_s9, %s6423_s12  ;;  %s95_s26 = int_to_ptr.vmem [resolvable:$true] %s94_s26 }
  0x58   :  { %p6427_p13 = scmp.lt.u32.totalorder %s6423_s12, %s7628_s9 }
  0x5a   :  { %p6429_p0 = pnand %p6427_p13, %p6424_p12 }
  0x5c   :  { %6432 = shalt.err (!%p6429_p0)
}
  0x5d   :  { %s6433_s17 = scalar_lea.vmem %s95_s26, 2048  ;;  %p6438_p2 = scmp.lt.s32.totalorder %s95_s26, %s95_s26 }
  0x5e   :  { %p6434_p1 = scmp.ne.s32.totalorder %s95_s26, %s6433_s17  ;;  %p6439_p3 = scmp.lt.s32.totalorder %s6433_s17, %s6433_s17 }
  0x60   :  { %p6440_p4 = por %p6439_p3, %p6438_p2 }
  0x62   :  { %p6441_p5 = pnand %p6440_p4, %p6434_p1 }
  0x64   :  { %6444 = shalt.err (!%p6441_p5)
}
  0x65   :  { %100 = dma.hbm_to_vmem [thread:$0]  %s7628_s9, 2048, %s95_s26, [#allocation14], %s6482_s5, %s6482_s5, %s6483_s13  }
  0x66   :  { %6467 = dma.done.wait [#allocation5], 1024  }
  0x67   :  { %6468 = vsyncadd [#allocation5], 4294966272 }
  0x68   :  { %6469 = dma.done.wait [#allocation8], 12288  }
  0x69   :  { %6470 = vsyncadd [#allocation8], 4294955008 }
  0x6a   :  { %6471 = dma.done.wait [#allocation11], 12288  }
  0x6b   :  { %6472 = vsyncadd [#allocation11], 4294955008 }
  0x6c   :  { %6473 = dma.done.wait [#allocation14], 2048  }
  0x6d   :  { %6474 = vsyncadd [#allocation14], 4294965248  ;;  %v6487_v0 = vmov 0.0   ;;  %v130_v1 = vld [vmem:[#allocation7 + $0x8] sm:$0xff]  ;;  %v133_v2 = vld [vmem:[#allocation7 + $0x20] sm:$0xff]  ;;  %vm6489_vm0 = vmmov 0  }
  0x6e   :  { %258 = vmatprep.mubr.f32.mxu0 %v6487_v0  ;;  %v129_v3 = vld [vmem:[#allocation7] sm:$0xff]  ;;  %v5026_v4 = vpack.c.bf16 %v133_v2, %v130_v1  ;;  %v132_v5 = vld [vmem:[#allocation7 + $0x18] sm:$0xff]  ;;  %v139_v7 = vld [vmem:[#allocation7 + $0x50] sm:$0xff]  ;;  %s6490_s23 = smov [#allocation15]  }
  0x6f   :  { %v136_v6 = vld [vmem:[#allocation7 + $0x38] sm:$0xff]  ;;  %v5028_v8 = vpack.c.bf16 %v132_v5, %v129_v3  ;;  %v135_v10 = vld [vmem:[#allocation7 + $0x30] sm:$0xff]  ;;  %v138_v11 = vld [vmem:[#allocation7 + $0x48] sm:$0xff]  ;;  %s3959_s18 = sshll.u32 %s6490_s23, 4  ;;  %s3960_s18 = int_to_ptr.vmem [resolvable:$true] %s3959_s18 }
  0x70   :  { %v5030_v9 = vpack.c.bf16 %v139_v7, %v136_v6  ;;  %v142_v12 = vld [vmem:[#allocation7 + $0x68] sm:$0xff]  ;;  %5027 = vmatprep.subr.bf16.mxu0 %v5026_v4  ;;  %v145_v13 = vld [vmem:[#allocation7 + $0x80] sm:$0xff]  ;;  %v5032_v14 = vpack.c.bf16 %v138_v11, %v135_v10  ;;  %v144_v17 = vld [vmem:[#allocation7 + $0x78] sm:$0xff]  ;;  %s6445_s24 = scalar_lea.vmem %s3960_s18, 128  ;;  %p6450_p7 = scmp.lt.s32.totalorder %s3960_s18, %s3960_s18 }
  0x71   :  { %5029 = vmatpush1.bf16.msra.mxu0 %v5028_v8  ;;  %v5034_v15 = vpack.c.bf16 %v145_v13, %v142_v12  ;;  %v141_v16 = vld [vmem:[#allocation7 + $0x60] sm:$0xff]  ;;  %v148_v18 = vld [vmem:[#allocation7 + $0x98] sm:$0xff]  ;;  %v151_v19 = vld [vmem:[#allocation7 + $0xb0] sm:$0xff]  ;;  %p6446_p6 = scmp.ne.s32.totalorder %s3960_s18, %s6445_s24  ;;  %p6451_p8 = scmp.lt.s32.totalorder %s6445_s24, %s6445_s24 }
  0x72   :  { %5031 = vmatprep.subr.bf16.mxu0 %v5030_v9  ;;  %v5036_v20 = vpack.c.bf16 %v144_v17, %v141_v16  ;;  %v147_v21 = vld [vmem:[#allocation7 + $0x90] sm:$0xff]  ;;  %v5038_v22 = vpack.c.bf16 %v151_v19, %v148_v18  ;;  %v150_v23 = vld [vmem:[#allocation7 + $0xa8] sm:$0xff]  ;;  %v157_v27 = vld [vmem:[#allocation7 + $0xe0] sm:$0xff] }
  0x73   :  { %v131_v24 = vld [vmem:[#allocation7 + $0x10] sm:$0xff]  ;;  %v134_v25 = vld [vmem:[#allocation7 + $0x28] sm:$0xff]  ;;  %v137_v29 = vld [vmem:[#allocation7 + $0x40] sm:$0xff]  ;;  %v5040_v31 = vpack.c.bf16 %v150_v23, %v147_v21  ;;  %p6452_p9 = por %p6451_p8, %p6450_p7 }
  0x74   :  { %v154_v26 = vld [vmem:[#allocation7 + $0xc8] sm:$0xff]  ;;  %v5058_v28 = vpack.c.bf16 %v134_v25, %v131_v24  ;;  %v140_v30 = vld [vmem:[#allocation7 + $0x58] sm:$0xff]  ;;  %v153_v32 = vld [vmem:[#allocation7 + $0xc0] sm:$0xff] }
  0x75   :  { %5033 = vmatpush1.bf16.msra.mxu0 %v5032_v14  ;;  %v5062_v33 = vpack.c.bf16 %v140_v30, %v137_v29  ;;  %v5042_v34 = vpack.c.bf16 %v157_v27, %v154_v26  ;;  %v156_v35 = vld [vmem:[#allocation7 + $0xd8] sm:$0xff]  ;;  %v6642_v36 = vld [vmem:[#allocation4] sm:$0xff]  ;;  %v143_v37 = vld [vmem:[#allocation7 + $0x70] sm:$0xff]  ;;  %p6453_p10 = pnand %p6452_p9, %p6446_p6 }
  0x76   :  { %5035 = vmatprep.subr.bf16.mxu0 %v5034_v15  ;;  %5059 = vmatprep.subr.bf16.mxu1 %v5058_v28  ;;  %v160_v38 = vld [vmem:[#allocation7 + $0xf8] sm:$0xff]  ;;  %v163_v39 = vld [vmem:[#allocation7 + $0x110] sm:$0xff]  ;;  %v146_v40 = vld [vmem:[#allocation7 + $0x88] sm:$0xff]  ;;  %v5044_v42 = vpack.c.bf16 %v156_v35, %v153_v32 }
  0x77   :  { %5061 = vmatpush3.bf16.msra.mxu1 %v5058_v28  ;;  %4375 = vmatprep.mubr.f32.mxu1 %v6642_v36  ;;  %v5066_v41 = vpack.c.bf16 %v146_v40, %v143_v37  ;;  %v149_v43 = vld [vmem:[#allocation7 + $0xa0] sm:$0xff]  ;;  %v152_v44 = vld [vmem:[#allocation7 + $0xb8] sm:$0xff]  ;;  %v5046_v45 = vpack.c.bf16 %v163_v39, %v160_v38  ;;  %v159_v46 = vld [vmem:[#allocation7 + $0xf0] sm:$0xff]  ;;  %v6488_v40 = vmov 0.0|0.0  }
  0x78   :  { %5063 = vmatprep.subr.bf16.mxu1 %v5062_v33  ;;  %v162_v47 = vld [vmem:[#allocation7 + $0x108] sm:$0xff]  ;;  %v169_v49 = vld [vmem:[#allocation7 + $0x140] sm:$0xff]  ;;  %v5070_v50 = vpack.c.bf16 %v152_v44, %v149_v43  ;;  %v155_v51 = vld [vmem:[#allocation7 + $0xd0] sm:$0xff] }
  0x79   :  { %5037 = vmatpush1.bf16.msra.mxu0 %v5036_v20  ;;  %v166_v48 = vld [vmem:[#allocation7 + $0x128] sm:$0xff]  ;;  %v5048_v53 = vpack.c.bf16 %v162_v47, %v159_v46  ;;  %v165_v55 = vld [vmem:[#allocation7 + $0x120] sm:$0xff]  ;;  %v168_v56 = vld [vmem:[#allocation7 + $0x138] sm:$0xff] }
  0x7a   :  { %5039 = vmatprep.subr.bf16.mxu0 %v5038_v22  ;;  %v158_v52 = vld [vmem:[#allocation7 + $0xe8] sm:$0xff]  ;;  %v5050_v54 = vpack.c.bf16 %v169_v49, %v166_v48  ;;  %v172_v57 = vld [vmem:[#allocation7 + $0x158] sm:$0xff]  ;;  %v175_v58 = vld [vmem:[#allocation7 + $0x170] sm:$0xff]  ;;  %v5052_v62 = vpack.c.bf16 %v168_v56, %v165_v55 }
  0x7b   :  { %5065 = vmatpush3.bf16.msra.mxu1 %v5062_v33  ;;  %v5074_v59 = vpack.c.bf16 %v158_v52, %v155_v51  ;;  %v161_v60 = vld [vmem:[#allocation7 + $0x100] sm:$0xff]  ;;  %v164_v61 = vld [vmem:[#allocation7 + $0x118] sm:$0xff]  ;;  %v5054_v63 = vpack.c.bf16 %v175_v58, %v172_v57  ;;  %v171_v1 = vld [vmem:[#allocation7 + $0x150] sm:$0xff] }
  0x7c   :  { %5067 = vmatprep.subr.bf16.mxu1 %v5066_v41  ;;  %v174_v2 = vld [vmem:[#allocation7 + $0x168] sm:$0xff]  ;;  %v444_v4 = vld [vmem:[#allocation9 + $0x20] sm:$0xff]  ;;  %v5078_v5 = vpack.c.bf16 %v164_v61, %v161_v60  ;;  %v167_v6 = vld [vmem:[#allocation7 + $0x130] sm:$0xff] }
  0x7d   :  { %5041 = vmatpush1.bf16.msra.mxu0 %v5040_v31  ;;  %v441_v3 = vld [vmem:[#allocation9 + $0x8] sm:$0xff]  ;;  %v5056_v8 = vpack.c.bf16 %v174_v2, %v171_v1  ;;  %v440_v10 = vld [vmem:[#allocation9] sm:$0xff]  ;;  %v443_v11 = vld [vmem:[#allocation9 + $0x18] sm:$0xff] }
  0x7e   :  { %5043 = vmatprep.subr.bf16.mxu0 %v5042_v34  ;;  %v170_v7 = vld [vmem:[#allocation7 + $0x148] sm:$0xff]  ;;  %v6645_v9 = vpack.c.bf16 %v444_v4, %v441_v3  ;;  %v447_v12 = vld [vmem:[#allocation9 + $0x38] sm:$0xff]  ;;  %v450_v13 = vld [vmem:[#allocation9 + $0x50] sm:$0xff]  ;;  %v6647_v17 = vpack.c.bf16 %v443_v11, %v440_v10 }
  0x7f   :  { %5069 = vmatpush3.bf16.msra.mxu1 %v5066_v41  ;;  %v5082_v14 = vpack.c.bf16 %v170_v7, %v167_v6  ;;  %v173_v15 = vld [vmem:[#allocation7 + $0x160] sm:$0xff]  ;;  %v176_v16 = vld [vmem:[#allocation7 + $0x178] sm:$0xff]  ;;  %v6650_v18 = vpack.c.bf16 %v450_v13, %v447_v12  ;;  %v446_v19 = vld [vmem:[#allocation9 + $0x30] sm:$0xff] }
  0x80   :  { %5071 = vmatprep.subr.bf16.mxu1 %v5070_v50  ;;  %v449_v20 = vld [vmem:[#allocation9 + $0x48] sm:$0xff]  ;;  %v456_v22 = vld [vmem:[#allocation9 + $0x80] sm:$0xff]  ;;  %v5086_v23 = vpack.c.bf16 %v176_v16, %v173_v15  ;;  %v455_v28 = vld [vmem:[#allocation9 + $0x78] sm:$0xff] }
  0x81   :  { %5045 = vmatpush1.bf16.msra.mxu0 %v5044_v42  ;;  %v453_v21 = vld [vmem:[#allocation9 + $0x68] sm:$0xff]  ;;  %v6655_v25 = vpack.c.bf16 %v449_v20, %v446_v19  ;;  %v452_v27 = vld [vmem:[#allocation9 + $0x60] sm:$0xff]  ;;  %v459_v29 = vld [vmem:[#allocation9 + $0x98] sm:$0xff] }
  0x82   :  { %5047 = vmatprep.subr.bf16.mxu0 %v5046_v45  ;;  %v122_v24 = vld [vmem:[#allocation4 + $0x8] sm:$0xff]  ;;  %v6658_v26 = vpack.c.bf16 %v456_v22, %v453_v21  ;;  %v462_v30 = vld [vmem:[#allocation9 + $0xb0] sm:$0xff]  ;;  %v6662_v34 = vpack.c.bf16 %v455_v28, %v452_v27  ;;  %v468_v39 = vld [vmem:[#allocation9 + $0xe0] sm:$0xff] }
  0x83   :  { %5073 = vmatpush3.bf16.msra.mxu1 %v5070_v50  ;;  %v442_v31 = vld [vmem:[#allocation9 + $0x10] sm:$0xff]  ;;  %v445_v32 = vld [vmem:[#allocation9 + $0x28] sm:$0xff]  ;;  %v6665_v35 = vpack.c.bf16 %v462_v30, %v459_v29  ;;  %v448_v42 = vld [vmem:[#allocation9 + $0x40] sm:$0xff] }
  0x84   :  { %5075 = vmatprep.subr.bf16.mxu1 %v5074_v59  ;;  %v123_v33 = vld [vmem:[#allocation4 + $0x10] sm:$0xff]  ;;  %v461_v37 = vld [vmem:[#allocation9 + $0xa8] sm:$0xff]  ;;  %v6668_v41 = vpack.c.bf16 %v445_v32, %v442_v31  ;;  %v451_v43 = vld [vmem:[#allocation9 + $0x58] sm:$0xff] }
  0x85   :  { %5049 = vmatpush1.bf16.msra.mxu0 %v5048_v53  ;;  %v465_v38 = vld [vmem:[#allocation9 + $0xc8] sm:$0xff]  ;;  %v124_v44 = vld [vmem:[#allocation4 + $0x18] sm:$0xff]  ;;  %v464_v47 = vld [vmem:[#allocation9 + $0xc0] sm:$0xff]  ;;  %v6678_v51 = vpack.c.bf16 %v451_v43, %v448_v42 }
  0x86   :  { %5051 = vmatprep.subr.bf16.mxu0 %v5050_v54  ;;  %v6675_v46 = vpack.c.bf16 %v468_v39, %v465_v38  ;;  %v467_v48 = vld [vmem:[#allocation9 + $0xd8] sm:$0xff]  ;;  %v474_v50 = vld [vmem:[#allocation9 + $0x110] sm:$0xff]  ;;  %v457_v53 = vld [vmem:[#allocation9 + $0x88] sm:$0xff] }
  0x87   :  { %5077 = vmatpush3.bf16.msra.mxu1 %v5074_v59  ;;  %v471_v49 = vld [vmem:[#allocation9 + $0xf8] sm:$0xff]  ;;  %v454_v52 = vld [vmem:[#allocation9 + $0x70] sm:$0xff]  ;;  %v125_v54 = vld [vmem:[#allocation4 + $0x20] sm:$0xff]  ;;  %v6683_v55 = vpack.c.bf16 %v467_v48, %v464_v47 }
  0x88   :  { %5079 = vmatprep.subr.bf16.mxu1 %v5078_v5  ;;  %v6686_v56 = vpack.c.bf16 %v474_v50, %v471_v49  ;;  %v470_v57 = vld [vmem:[#allocation9 + $0xf0] sm:$0xff]  ;;  %v473_v58 = vld [vmem:[#allocation9 + $0x108] sm:$0xff]  ;;  %v480_v60 = vld [vmem:[#allocation9 + $0x140] sm:$0xff]  ;;  %v6689_v61 = vpack.c.bf16 %v457_v53, %v454_v52 }
  0x89   :  { %5053 = vmatpush1.bf16.msra.mxu0 %v5052_v62  ;;  %v477_v59 = vld [vmem:[#allocation9 + $0x128] sm:$0xff]  ;;  %v460_v62 = vld [vmem:[#allocation9 + $0xa0] sm:$0xff]  ;;  %v6694_v2 = vpack.c.bf16 %v473_v58, %v470_v57  ;;  %v127_v3 = vld [vmem:[#allocation4 + $0x30] sm:$0xff] }
  0x8a   :  { %5055 = vmatprep.subr.bf16.mxu0 %v5054_v63  ;;  %v463_v63 = vld [vmem:[#allocation9 + $0xb8] sm:$0xff]  ;;  %v126_v1 = vld [vmem:[#allocation4 + $0x28] sm:$0xff]  ;;  %v6697_v4 = vpack.c.bf16 %v480_v60, %v477_v59  ;;  %v466_v11 = vld [vmem:[#allocation9 + $0xd0] sm:$0xff] }
  0x8b   :  { %5081 = vmatpush3.bf16.msra.mxu1 %v5078_v5  ;;  %v476_v5 = vld [vmem:[#allocation9 + $0x120] sm:$0xff]  ;;  %v479_v6 = vld [vmem:[#allocation9 + $0x138] sm:$0xff]  ;;  %v6700_v10 = vpack.c.bf16 %v463_v63, %v460_v62  ;;  %v469_v12 = vld [vmem:[#allocation9 + $0xe8] sm:$0xff] }
  0x8c   :  { %5083 = vmatprep.subr.bf16.mxu1 %v5082_v14  ;;  %v483_v7 = vld [vmem:[#allocation9 + $0x158] sm:$0xff]  ;;  %v6705_v13 = vpack.c.bf16 %v479_v6, %v476_v5  ;;  %v482_v16 = vld [vmem:[#allocation9 + $0x150] sm:$0xff]  ;;  %v485_v19 = vld [vmem:[#allocation9 + $0x168] sm:$0xff]  ;;  %v6711_v20 = vpack.c.bf16 %v469_v12, %v466_v11 }
  0x8d   :  { %5057 = vmatpush1.bf16.msra.mxu0 %v5056_v8  ;;  %v486_v8 = vld [vmem:[#allocation9 + $0x170] sm:$0xff]  ;;  %v472_v21 = vld [vmem:[#allocation9 + $0x100] sm:$0xff]  ;;  %v475_v22 = vld [vmem:[#allocation9 + $0x118] sm:$0xff] }
  0x8e   :  { %5091 = vmatprep.subr.bf16.mxu0 %v6645_v9  ;;  %v6708_v15 = vpack.c.bf16 %v486_v8, %v483_v7  ;;  %v478_v27 = vld [vmem:[#allocation9 + $0x130] sm:$0xff]  ;;  %v481_v28 = vld [vmem:[#allocation9 + $0x148] sm:$0xff]  ;;  %v484_v30 = vld [vmem:[#allocation9 + $0x160] sm:$0xff] }
  0x8f   :  { %5085 = vmatpush3.bf16.msra.mxu1 %v5082_v14  ;;  %v128_v14 = vld [vmem:[#allocation4 + $0x38] sm:$0xff]  ;;  %v6729_v29 = vpack.c.bf16 %v481_v28, %v478_v27  ;;  %v177_v38 = vld [vmem:[%s7622_s3] sm:$0x7] }
  0x90   :  { %259 = vmatmul.mubr.f32.vlgmr.msra.gmra.mrb[0].mxu0 %v6642_v36  ;;  %5087 = vmatprep.subr.bf16.mxu1 %v5086_v23  ;;  %v458_v36 = vld [vmem:[#allocation9 + $0x90] sm:$0xff]  ;;  %v487_v31 = vld [vmem:[#allocation9 + $0x178] sm:$0xff]  ;;  %v6812_v27 = vld [vmem:[%s7623_s4] ss:$0 sm:$0xff] }
  0x91   :  { %5093 = vmatpush1.bf16.msra.mxu0 %v6647_v17  ;;  %264 = vmatprep.mubr.f32.mxu0 %v6487_v0  ;;  %v6672_v45 = vpack.c.bf16 %v461_v37, %v458_v36  ;;  %v6737_v32 = vpack.c.bf16 %v487_v31, %v484_v30 }
  0x92   :  { %5095 = vmatprep.subr.bf16.mxu0 %v6650_v18 }
  0x93   :  { %5089 = vmatpush3.bf16.msra.mxu1 %v5086_v23  ;;  %v6718_v23 = vpack.c.bf16 %v485_v19, %v482_v16 }
  0x94   :  { %265 = vmatmul.mubr.f32.gmra.mrb[2].mxu0 %v122_v24  ;;  %5122 = vmatprep.subr.bf16.mxu1 %v6488_v40 }
  0x95   :  { %5097 = vmatpush1.bf16.msra.mxu0 %v6655_v25  ;;  %270 = vmatprep.mubr.f32.mxu0 %v6487_v0 }
  0x96   :  { %5099 = vmatprep.subr.bf16.mxu0 %v6658_v26  ;;  %4376 = vmatmul.mubr.f32.vlgmr.msra.gmra.mrb[0].mxu1 %v122_v24  ;;  %v6722_v24 = vpack.c.bf16 %v475_v22, %v472_v21 }
  0x97   :  { %5124 = vmatpush3.bf16.msra.mxu1 %v6668_v41  ;;  %4378 = vmatprep.mubr.f32.mxu1 %v123_v33 }
  0x98   :  { %271 = vmatmul.mubr.f32.gmra.mrb[4].mxu0 %v123_v33  ;;  %5125 = vmatprep.subr.bf16.mxu1 %v6488_v40  ;;  %v179_v33 = vlaneseq }
  0x99   :  { %5101 = vmatpush1.bf16.msra.mxu0 %v6662_v34  ;;  %276 = vmatprep.mubr.f32.mxu0 %v6487_v0 }
  0x9a   :  { %5103 = vmatprep.subr.bf16.mxu0 %v6665_v35  ;;  %4379 = vmatmul.mubr.f32.gmra.mrb[2].mxu1 %v124_v44  ;;  %v6775_v36 = vshrl.u32 %v179_v33, 7 }
  0x9b   :  { %5127 = vmatpush3.bf16.msra.mxu1 %v6678_v51  ;;  %4381 = vmatprep.mubr.f32.mxu1 %v125_v54 }
  0x9c   :  { %277 = vmatmul.mubr.f32.gmra.mrb[6].mxu0 %v124_v44  ;;  %5128 = vmatprep.subr.bf16.mxu1 %v6488_v40  ;;  %v189_v37 = vsub.s32 2, %v6775_v36  ;;  %v181_v63 = vsub.s32 0, %v6775_v36  ;;  %v185_v6 = vsub.s32 1, %v6775_v36 }
  0x9d   :  { %5105 = vmatpush1.bf16.msra.mxu0 %v6672_v45  ;;  %282 = vmatprep.mubr.f32.mxu0 %v6487_v0 }
  0x9e   :  { %5107 = vmatprep.subr.bf16.mxu0 %v6675_v46  ;;  %4382 = vmatmul.mubr.f32.gmra.mrb[4].mxu1 %v126_v1  ;;  %v190_v39 = vrot.slane %v177_v38, %v189_v37  ;;  %v6806_v11 = vrot.slane %v177_v38, %v185_v6 }
  0x9f   :  { %5130 = vmatpush3.bf16.msra.mxu1 %v6689_v61  ;;  %4384 = vmatprep.mubr.f32.mxu1 %v127_v3 }
  0xa0   :  { %283 = vmatmul.mubr.f32.gmra.mrb[8].mxu0 %v125_v54  ;;  %5131 = vmatprep.subr.bf16.mxu1 %v6488_v40 }
  0xa1   :  { %5109 = vmatpush1.bf16.msra.mxu0 %v6683_v55  ;;  %288 = vmatprep.mubr.f32.mxu0 %v6487_v0 }
  0xa2   :  { %5111 = vmatprep.subr.bf16.mxu0 %v6686_v56  ;;  %4385 = vmatmul.mubr.f32.gmra.mrb[6].mxu1 %v128_v14 }
  0xa3   :  { %5133 = vmatpush3.bf16.msra.mxu1 %v6700_v10  ;;  %4419 = vmatprep.mubr.msk.f32.mxu1 %vm6489_vm0, %v6487_v0 }
  0xa4   :  { %289 = vmatmul.mubr.f32.gmra.mrb[10].mxu0 %v126_v1  ;;  %5134 = vmatprep.subr.bf16.mxu1 %v6488_v40  ;;  %v6800_v1 = vrot.slane %v177_v38, %v181_v63 }
  0xa5   :  { %5113 = vmatpush1.bf16.msra.mxu0 %v6694_v2  ;;  %294 = vmatprep.mubr.f32.mxu0 %v6487_v0 }
  0xa6   :  { %5115 = vmatprep.subr.bf16.mxu0 %v6697_v4 }
  0xa7   :  { %5136 = vmatpush3.bf16.msra.mxu1 %v6711_v20 }
  0xa8   :  { %295 = vmatmul.mubr.f32.gmra.mrb[12].mxu0 %v127_v3  ;;  %5137 = vmatprep.subr.bf16.mxu1 %v6488_v40 }
  0xa9   :  { %5117 = vmatpush1.bf16.msra.mxu0 %v6705_v13  ;;  %300 = vmatprep.mubr.f32.mxu0 %v6487_v0 }
  0xaa   :  { %5119 = vmatprep.subr.bf16.mxu0 %v6708_v15 }
  0xab   :  { %5139 = vmatpush3.bf16.msra.mxu1 %v6722_v24 }
  0xac   :  { %301 = vmatmul.mubr.f32.gmra.mrb[14].mxu0 %v128_v14  ;;  %5140 = vmatprep.subr.bf16.mxu1 %v6488_v40 }
  0xad   :  { %5121 = vmatpush1.bf16.msra.mxu0 %v6718_v23  ;;  %552 = vmatprep.mubr.f32.mxu0 %v6487_v0 }
  0xae   :  { %5147 = vmatprep.subr.bf16.mxu0 %v6645_v9 }
  0xaf   :  { %5142 = vmatpush3.bf16.msra.mxu1 %v6729_v29 }
  0xb0   :  { %553 = vmatmul.mubr.f32.vlgmr.msra.gmra.mrb[0].mxu0 %v6487_v0  ;;  %5143 = vmatprep.subr.bf16.mxu1 %v6488_v40 }
  0xb1   :  { %5149 = vmatpush1.bf16.msra.mxu0 %v6647_v17  ;;  %773 = vmatprep.mubr.f32.mxu0 %v6487_v0 }
  0xb2   :  { %5151 = vmatprep.subr.bf16.mxu0 %v6650_v18 }
  0xb3   :  { %5145 = vmatpush3.bf16.msra.mxu1 %v6737_v32 }
  0xb4   :  { %5178 = vmatprep.subr.bf16.mxu1 %v6488_v40 }
  0xb5   :  { %5153 = vmatpush1.bf16.msra.mxu0 %v6655_v25 }
  0xb6   :  { %5155 = vmatprep.subr.bf16.mxu0 %v6658_v26  ;;  %4420 = vmatmul.mubr.f32.vlgmr.msra.gmra.mrb[8].mxu1 %v6487_v0 }
  0xb7   :  { %5180 = vmatpush3.bf16.msra.mxu1 %v6668_v41  ;;  %4454 = vmatprep.mubr.msk.f32.mxu1 %vm6489_vm0, %v6487_v0 }
  0xb8   :  { %5181 = vmatprep.subr.bf16.mxu1 %v6488_v40 }
  0xb9   :  { %5157 = vmatpush1.bf16.msra.mxu0 %v6662_v34 }
  0xba   :  { %5159 = vmatprep.subr.bf16.mxu0 %v6665_v35 }
  0xbb   :  { %5183 = vmatpush3.bf16.msra.mxu1 %v6678_v51 }
  0xbc   :  { %5184 = vmatprep.subr.bf16.mxu1 %v6488_v40 }
  0xbd   :  { %5161 = vmatpush1.bf16.msra.mxu0 %v6672_v45 }
  0xbe   :  { %5163 = vmatprep.subr.bf16.mxu0 %v6675_v46 }
  0xbf   :  { %5186 = vmatpush3.bf16.msra.mxu1 %v6689_v61 }
  0xc0   :  { %5187 = vmatprep.subr.bf16.mxu1 %v6488_v40 }
  0xc1   :  { %5165 = vmatpush1.bf16.msra.mxu0 %v6683_v55 }
  0xc2   :  { %5167 = vmatprep.subr.bf16.mxu0 %v6686_v56 }
  0xc3   :  { %5189 = vmatpush3.bf16.msra.mxu1 %v6700_v10 }
  0xc4   :  { %5190 = vmatprep.subr.bf16.mxu1 %v6488_v40 }
  0xc5   :  { %5169 = vmatpush1.bf16.msra.mxu0 %v6694_v2 }
  0xc6   :  { %5171 = vmatprep.subr.bf16.mxu0 %v6697_v4 }
  0xc7   :  { %5192 = vmatpush3.bf16.msra.mxu1 %v6711_v20 }
  0xc8   :  { %5193 = vmatprep.subr.bf16.mxu1 %v6488_v40 }
  0xc9   :  { %5173 = vmatpush1.bf16.msra.mxu0 %v6705_v13 }
  0xca   :  { %5175 = vmatprep.subr.bf16.mxu0 %v6708_v15 }
  0xcb   :  { %5195 = vmatpush3.bf16.msra.mxu1 %v6722_v24 }
  0xcc   :  { %5196 = vmatprep.subr.bf16.mxu1 %v6488_v40 }
  0xcd   :  { %5177 = vmatpush1.bf16.msra.mxu0 %v6718_v23 }
  0xce   :  { %5203 = vmatprep.subr.bf16.mxu0 %v6645_v9 }
  0xcf   :  { %5198 = vmatpush3.bf16.msra.mxu1 %v6729_v29 }
  0xd0   :  { %5199 = vmatprep.subr.bf16.mxu1 %v6488_v40 }
  0xd3   :  { %5201 = vmatpush3.bf16.msra.mxu1 %v6737_v32 }
  0xd4   :  { %5234 = vmatprep.subr.bf16.mxu1 %v6488_v40 }
 0x169   :  { %v4377_v42 = vpop.f32.mrb[0].mxu1 }
 0x16a   :  { %v6783_v43 = vadd.f32 %v4377_v42, %v190_v39  ;;  %v373_v44 = vpop.f32.mrb[1].mxu1 }
 0x16b   :  { %v374_v33 = vadd.f32 %v373_v44, %v190_v39 }
 0x16d   :  { %v4380_v47 = vpop.f32.mrb[2].mxu1 }
 0x16e   :  { %v6785_v48 = vadd.f32 %v4380_v47, %v190_v39  ;;  %v383_v49 = vpop.f32.mrb[3].mxu1 }
 0x16f   :  { %v6787_v50 = vadd.f32 %v383_v49, %v190_v39 }
 0x171   :  { %v4383_v52 = vpop.f32.mrb[4].mxu1 }
 0x172   :  { %v6789_v53 = vadd.f32 %v4383_v52, %v190_v39  ;;  %v393_v54 = vpop.f32.mrb[5].mxu1 }
 0x173   :  { %v6791_v57 = vadd.f32 %v393_v54, %v190_v39 }
 0x175   :  { %v4386_v58 = vpop.f32.mrb[6].mxu1 }
 0x176   :  { %v6793_v59 = vadd.f32 %v4386_v58, %v190_v39  ;;  %v403_v60 = vpop.f32.mrb[7].mxu1 }
 0x177   :  { %v6795_v62 = vadd.f32 %v403_v60, %v190_v39 }
 0x183   :  { %v554_v3 = vpop.f32.mrb[0].mxu0 }
 0x184   :  { %v6074_v5 = vadd.f32 %v554_v3, %v6800_v1  ;;  %v556_v7 = vpop.f32.mrb[1].mxu0 }
 0x185   :  { %v6075_v12 = vadd.f32 %v556_v7, %v6806_v11 }
 0x186   :  { %v3971_v8 = vmul.f32 -1.442695, %v6074_v5 }
 0x187   :  { %v3972_v19 = vmul.f32 -1.442695, %v6075_v12 }
 0x188   :  { %6152 = vpow2.f32 %v3971_v8 }
 0x189   :  { %v625_v14 = vpop.f32.mrb[8].mxu1  ;;  %6154 = vpow2.f32 %v3972_v19 }
 0x18a   :  { %v4421_v16 = vpop.f32.mrb[9].mxu1  ;;  %v649_v28 = vadd.f32 %v6812_v27, %v625_v14 }
 0x192   :  { %v6153_v21 = vpop.eup %6152 }
 0x193   :  { %v633_v22 = vadd.f32 1.0, %v6153_v21  ;;  %v6155_v30 = vpop.eup %6154 }
 0x194   :  { %v640_v42 = vadd.f32 1.0, %v6155_v30 }
 0x195   :  { %6156 = vrcp.f32 %v633_v22 }
 0x19f   :  { %v6157_v31 = vpop.eup %6156 }
 0x1a0   :  { %v650_v38 = vmul.f32 %v6157_v31, %v649_v28 }
 0x1a2   :  { %v651_v47 = vadd.f32 %v650_v38, %v374_v33 }
 0x1a4   :  { %6158 = vtanh.f32 %v651_v47 }
 0x1a5   :  { %6160 = vrcp.f32 %v640_v42 }
 0x1ae   :  { %v6159_v49 = vpop.eup %6158 }
 0x1af   :  { %v653_v52 = vsub.f32 0.0, %v6159_v49  ;;  %v6161_v54 = vpop.eup %6160 }
 0x1b1   :  { %v654_v58 = vmul.f32 %v6161_v54, %v653_v52 }
 0x1b3   :  { %v6815_v60 = vadd.f32 %v6159_v49, %v654_v58  ;;  %v1309_v58 = vld [vmem:[#allocation9] sm:$0xff] }
 0x1b5   :  { %774 = vmatmul.mubr.f32.vlgmr.msra.gmra.mrb[2].mxu0 %v6815_v60  ;;  %4455 = vmatmul.mubr.f32.vlgmr.msra.gmra.mrb[10].mxu1 %v6815_v60 }
 0x1b6   :  { %5205 = vmatpush1.bf16.msra.mxu0 %v6647_v17  ;;  %5236 = vmatpush3.bf16.msra.mxu1 %v6668_v41 }
 0x1b7   :  { %5207 = vmatprep.subr.bf16.mxu0 %v6650_v18  ;;  %5237 = vmatprep.subr.bf16.mxu1 %v6488_v40 }
 0x1b8   :  { %989 = vmatprep.mubr.f32.mxu0 %v6487_v0  ;;  %4489 = vmatprep.mubr.msk.f32.mxu1 %vm6489_vm0, %v6487_v0 }
 0x1ba   :  { %5209 = vmatpush1.bf16.msra.mxu0 %v6655_v25  ;;  %5239 = vmatpush3.bf16.msra.mxu1 %v6678_v51 }
 0x1bb   :  { %5211 = vmatprep.subr.bf16.mxu0 %v6658_v26  ;;  %5240 = vmatprep.subr.bf16.mxu1 %v6488_v40 }
 0x1be   :  { %5213 = vmatpush1.bf16.msra.mxu0 %v6662_v34  ;;  %5242 = vmatpush3.bf16.msra.mxu1 %v6689_v61 }
 0x1bf   :  { %5215 = vmatprep.subr.bf16.mxu0 %v6665_v35  ;;  %5243 = vmatprep.subr.bf16.mxu1 %v6488_v40 }
 0x1c2   :  { %5217 = vmatpush1.bf16.msra.mxu0 %v6672_v45  ;;  %5245 = vmatpush3.bf16.msra.mxu1 %v6700_v10 }
 0x1c3   :  { %5219 = vmatprep.subr.bf16.mxu0 %v6675_v46  ;;  %5246 = vmatprep.subr.bf16.mxu1 %v6488_v40 }
 0x1c6   :  { %5221 = vmatpush1.bf16.msra.mxu0 %v6683_v55  ;;  %5248 = vmatpush3.bf16.msra.mxu1 %v6711_v20 }
 0x1c7   :  { %5223 = vmatprep.subr.bf16.mxu0 %v6686_v56  ;;  %5249 = vmatprep.subr.bf16.mxu1 %v6488_v40 }
 0x1ca   :  { %5225 = vmatpush1.bf16.msra.mxu0 %v6694_v2  ;;  %5251 = vmatpush3.bf16.msra.mxu1 %v6722_v24 }
 0x1cb   :  { %5227 = vmatprep.subr.bf16.mxu0 %v6697_v4  ;;  %5252 = vmatprep.subr.bf16.mxu1 %v6488_v40 }
 0x1ce   :  { %5229 = vmatpush1.bf16.msra.mxu0 %v6705_v13  ;;  %5254 = vmatpush3.bf16.msra.mxu1 %v6729_v29 }
 0x1cf   :  { %5231 = vmatprep.subr.bf16.mxu0 %v6708_v15  ;;  %5255 = vmatprep.subr.bf16.mxu1 %v6488_v40 }
 0x1d2   :  { %5233 = vmatpush1.bf16.msra.mxu0 %v6718_v23  ;;  %5257 = vmatpush3.bf16.msra.mxu1 %v6737_v32 }
 0x1d3   :  { %5259 = vmatprep.subr.bf16.mxu0 %v6645_v9  ;;  %5290 = vmatprep.subr.bf16.mxu1 %v6488_v40 }
 0x288   :  { %v775_v39 = vpop.f32.mrb[2].mxu0  ;;  %v846_v44 = vpop.f32.mrb[10].mxu1 }
 0x289   :  { %v6076_v3 = vadd.f32 %v775_v39, %v6800_v1  ;;  %v777_v5 = vpop.f32.mrb[3].mxu0  ;;  %v4456_v7 = vpop.f32.mrb[11].mxu1  ;;  %v864_v9 = vadd.f32 %v6812_v27, %v846_v44  ;;  %v1312_v39 = vld [vmem:[#allocation9 + $0x18] sm:$0xff] }
 0x28a   :  { %v6077_v12 = vadd.f32 %v777_v5, %v6806_v11  ;;  %v6919_v44 = vpack.c.bf16 %v1312_v39, %v1309_v58  ;;  %v1315_v5 = vld [vmem:[#allocation9 + $0x30] sm:$0xff]  ;;  %v1352_v58 = vld [vmem:[#allocation9 + $0x158] sm:$0xff] }
 0x28b   :  { %v3974_v8 = vmul.f32 -1.442695, %v6076_v3  ;;  %v1355_v39 = vld [vmem:[#allocation9 + $0x170] sm:$0xff] }
 0x28c   :  { %v3975_v14 = vmul.f32 -1.442695, %v6077_v12  ;;  %v1325_v12 = vld [vmem:[#allocation9 + $0x80] sm:$0xff] }
 0x28d   :  { %6162 = vpow2.f32 %v3974_v8  ;;  %v1322_v8 = vld [vmem:[#allocation9 + $0x68] sm:$0xff] }
 0x28e   :  { %6164 = vpow2.f32 %v3975_v14  ;;  %v6929_v14 = vpack.c.bf16 %v1325_v12, %v1322_v8  ;;  %v1354_v8 = vld [vmem:[#allocation9 + $0x168] sm:$0xff]  ;;  %v1353_v12 = vld [vmem:[#allocation9 + $0x160] sm:$0xff] }
 0x297   :  { %v6163_v16 = vpop.eup %6162 }
 0x298   :  { %v854_v19 = vadd.f32 1.0, %v6163_v16  ;;  %v6165_v21 = vpop.eup %6164  ;;  %v1321_v16 = vld [vmem:[#allocation9 + $0x60] sm:$0xff] }
 0x299   :  { %v861_v31 = vadd.f32 1.0, %v6165_v21 }
 0x29a   :  { %6166 = vrcp.f32 %v854_v19  ;;  %v1324_v19 = vld [vmem:[#allocation9 + $0x78] sm:$0xff] }
 0x29b   :  { %v6931_v21 = vpack.c.bf16 %v1324_v19, %v1321_v16  ;;  %v1356_v16 = vld [vmem:[#allocation9 + $0x178] sm:$0xff] }
 0x2a4   :  { %v6167_v22 = vpop.eup %6166 }
 0x2a5   :  { %v865_v28 = vmul.f32 %v6167_v22, %v864_v9  ;;  %v1328_v9 = vld [vmem:[#allocation9 + $0x98] sm:$0xff]  ;;  %v1331_v22 = vld [vmem:[#allocation9 + $0xb0] sm:$0xff] }
 0x2a7   :  { %v866_v30 = vadd.f32 %v865_v28, %v6783_v43  ;;  %v6935_v28 = vpack.c.bf16 %v1331_v22, %v1328_v9  ;;  %v6975_v9 = vpack.c.bf16 %v1356_v16, %v1353_v12  ;;  %v1539_v16 = vld [vmem:[#allocation9 + $0x70] sm:$0xff] }
 0x2a9   :  { %6168 = vtanh.f32 %v866_v30  ;;  %v1327_v30 = vld [vmem:[#allocation9 + $0x90] sm:$0xff] }
 0x2aa   :  { %6170 = vrcp.f32 %v861_v31  ;;  %v1330_v31 = vld [vmem:[#allocation9 + $0xa8] sm:$0xff] }
 0x2b3   :  { %v6169_v33 = vpop.eup %6168 }
 0x2b4   :  { %v868_v38 = vsub.f32 %v6815_v60, %v6169_v33  ;;  %v6171_v42 = vpop.eup %6170 }
 0x2b6   :  { %v869_v47 = vmul.f32 %v6171_v42, %v868_v38  ;;  %v1334_v38 = vld [vmem:[#allocation9 + $0xc8] sm:$0xff]  ;;  %v1337_v42 = vld [vmem:[#allocation9 + $0xe0] sm:$0xff] }
 0x2b8   :  { %v6859_v49 = vadd.f32 %v6169_v33, %v869_v47  ;;  %v6937_v33 = vpack.c.bf16 %v1330_v31, %v1327_v30  ;;  %v6941_v47 = vpack.c.bf16 %v1337_v42, %v1334_v38 }
 0x2ba   :  { %990 = vmatmul.mubr.f32.vlgmr.msra.gmra.mrb[4].mxu0 %v6859_v49  ;;  %4490 = vmatmul.mubr.f32.vlgmr.msra.gmra.mrb[12].mxu1 %v6859_v49 }
 0x2bb   :  { %5261 = vmatpush1.bf16.msra.mxu0 %v6647_v17  ;;  %5292 = vmatpush3.bf16.msra.mxu1 %v6668_v41 }
 0x2bc   :  { %5263 = vmatprep.subr.bf16.mxu0 %v6650_v18  ;;  %5293 = vmatprep.subr.bf16.mxu1 %v6488_v40 }
 0x2bd   :  { %1205 = vmatprep.mubr.f32.mxu0 %v6487_v0  ;;  %4524 = vmatprep.mubr.msk.f32.mxu1 %vm6489_vm0, %v6487_v0 }
 0x2bf   :  { %5265 = vmatpush1.bf16.msra.mxu0 %v6655_v25  ;;  %5295 = vmatpush3.bf16.msra.mxu1 %v6678_v51 }
 0x2c0   :  { %5267 = vmatprep.subr.bf16.mxu0 %v6658_v26  ;;  %5296 = vmatprep.subr.bf16.mxu1 %v6488_v40 }
 0x2c3   :  { %5269 = vmatpush1.bf16.msra.mxu0 %v6662_v34  ;;  %5298 = vmatpush3.bf16.msra.mxu1 %v6689_v61 }
 0x2c4   :  { %5271 = vmatprep.subr.bf16.mxu0 %v6665_v35  ;;  %5299 = vmatprep.subr.bf16.mxu1 %v6488_v40 }
 0x2c7   :  { %5273 = vmatpush1.bf16.msra.mxu0 %v6672_v45  ;;  %5301 = vmatpush3.bf16.msra.mxu1 %v6700_v10 }
 0x2c8   :  { %5275 = vmatprep.subr.bf16.mxu0 %v6675_v46  ;;  %5302 = vmatprep.subr.bf16.mxu1 %v6488_v40 }
 0x2cb   :  { %5277 = vmatpush1.bf16.msra.mxu0 %v6683_v55  ;;  %5304 = vmatpush3.bf16.msra.mxu1 %v6711_v20 }
 0x2cc   :  { %5279 = vmatprep.subr.bf16.mxu0 %v6686_v56  ;;  %5305 = vmatprep.subr.bf16.mxu1 %v6488_v40 }
 0x2cf   :  { %5281 = vmatpush1.bf16.msra.mxu0 %v6694_v2  ;;  %5307 = vmatpush3.bf16.msra.mxu1 %v6722_v24 }
 0x2d0   :  { %5283 = vmatprep.subr.bf16.mxu0 %v6697_v4  ;;  %5308 = vmatprep.subr.bf16.mxu1 %v6488_v40 }
 0x2d3   :  { %5285 = vmatpush1.bf16.msra.mxu0 %v6705_v13  ;;  %5310 = vmatpush3.bf16.msra.mxu1 %v6729_v29 }
 0x2d4   :  { %5287 = vmatprep.subr.bf16.mxu0 %v6708_v15  ;;  %5311 = vmatprep.subr.bf16.mxu1 %v6488_v40 }
 0x2d7   :  { %5289 = vmatpush1.bf16.msra.mxu0 %v6718_v23  ;;  %5313 = vmatpush3.bf16.msra.mxu1 %v6737_v32 }
 0x2d8   :  { %5346 = vmatprep.subr.bf16.mxu1 %v6488_v40 }
 0x38d   :  { %v991_v17 = vpop.f32.mrb[4].mxu0  ;;  %v1062_v18 = vpop.f32.mrb[12].mxu1 }
 0x38e   :  { %v6078_v25 = vadd.f32 %v991_v17, %v6800_v1  ;;  %v993_v26 = vpop.f32.mrb[5].mxu0  ;;  %v4491_v34 = vpop.f32.mrb[13].mxu1  ;;  %v1080_v4 = vadd.f32 %v6812_v27, %v1062_v18  ;;  %v1333_v17 = vld [vmem:[#allocation9 + $0xc0] sm:$0xff]  ;;  %v1336_v18 = vld [vmem:[#allocation9 + $0xd8] sm:$0xff] }
 0x38f   :  { %v6079_v45 = vadd.f32 %v993_v26, %v6806_v11  ;;  %v6943_v26 = vpack.c.bf16 %v1336_v18, %v1333_v17  ;;  %v1338_v34 = vld [vmem:[#allocation9 + $0xe8] sm:$0xff] }
 0x390   :  { %v3976_v35 = vmul.f32 -1.442695, %v6078_v25  ;;  %v1335_v25 = vld [vmem:[#allocation9 + $0xd0] sm:$0xff] }
 0x391   :  { %v3977_v46 = vmul.f32 -1.442695, %v6079_v45  ;;  %v1343_v45 = vld [vmem:[#allocation9 + $0x110] sm:$0xff] }
 0x392   :  { %6172 = vpow2.f32 %v3976_v35  ;;  %v1340_v35 = vld [vmem:[#allocation9 + $0xf8] sm:$0xff] }
 0x393   :  { %6174 = vpow2.f32 %v3977_v46  ;;  %v6946_v46 = vpack.c.bf16 %v1338_v34, %v1335_v25 }
 0x39c   :  { %v6173_v55 = vpop.eup %6172 }
 0x39d   :  { %v1070_v56 = vadd.f32 1.0, %v6173_v55  ;;  %v6175_v2 = vpop.eup %6174  ;;  %v6948_v55 = vpack.c.bf16 %v1343_v45, %v1340_v35 }
 0x39e   :  { %v1077_v23 = vadd.f32 1.0, %v6175_v2  ;;  %v1342_v2 = vld [vmem:[#allocation9 + $0x108] sm:$0xff] }
 0x39f   :  { %6176 = vrcp.f32 %v1070_v56  ;;  %v1339_v56 = vld [vmem:[#allocation9 + $0xf0] sm:$0xff] }
 0x3a9   :  { %v6177_v13 = vpop.eup %6176 }
 0x3aa   :  { %v1081_v15 = vmul.f32 %v6177_v13, %v1080_v4  ;;  %v1341_v4 = vld [vmem:[#allocation9 + $0x100] sm:$0xff]  ;;  %v6951_v13 = vpack.c.bf16 %v1342_v2, %v1339_v56 }
 0x3ac   :  { %v1082_v20 = vadd.f32 %v1081_v15, %v6787_v50  ;;  %v1313_v50 = vld [vmem:[#allocation9 + $0x20] sm:$0xff]  ;;  %v1344_v15 = vld [vmem:[#allocation9 + $0x118] sm:$0xff] }
 0x3ae   :  { %6178 = vtanh.f32 %v1082_v20  ;;  %v1346_v20 = vld [vmem:[#allocation9 + $0x128] sm:$0xff] }
 0x3af   :  { %6180 = vrcp.f32 %v1077_v23  ;;  %v1349_v23 = vld [vmem:[#allocation9 + $0x140] sm:$0xff] }
 0x3b8   :  { %v6179_v24 = vpop.eup %6178 }
 0x3b9   :  { %v1084_v29 = vsub.f32 %v6859_v49, %v6179_v24  ;;  %v6181_v32 = vpop.eup %6180 }
 0x3bb   :  { %v1085_v43 = vmul.f32 %v6181_v32, %v1084_v29  ;;  %v6957_v29 = vpack.c.bf16 %v1349_v23, %v1346_v20  ;;  %v1345_v32 = vld [vmem:[#allocation9 + $0x120] sm:$0xff] }
 0x3bd   :  { %v6902_v52 = vadd.f32 %v6179_v24, %v1085_v43  ;;  %v6955_v24 = vpack.c.bf16 %v1344_v15, %v1341_v4  ;;  %v1348_v43 = vld [vmem:[#allocation9 + $0x138] sm:$0xff] }
 0x3bf   :  { %1206 = vmatmul.mubr.f32.vlgmr.msra.gmra.mrb[6].mxu0 %v6902_v52  ;;  %4525 = vmatmul.mubr.f32.vlgmr.msra.gmra.mrb[14].mxu1 %v6902_v52 }
 0x3c0   :  { %5348 = vmatpush3.bf16.msra.mxu1 %v6668_v41  ;;  %1421 = vmatprep.mubr.f32.mxu0 %v6487_v0  ;;  %v1310_v41 = vld [vmem:[#allocation9 + $0x8] sm:$0xff] }
 0x3c1   :  { %5349 = vmatprep.subr.bf16.mxu1 %v6488_v40  ;;  %4559 = vmatprep.mubr.msk.f32.mxu1 %vm6489_vm0, %v6487_v0  ;;  %v6917_v54 = vpack.c.bf16 %v1313_v50, %v1310_v41  ;;  %v1347_v41 = vld [vmem:[#allocation9 + $0x130] sm:$0xff]  ;;  %v1350_v50 = vld [vmem:[#allocation9 + $0x148] sm:$0xff] }
 0x3c3   :  { %5315 = vmatprep.subr.bf16.mxu0 %v6917_v54 }
 0x3c4   :  { %5351 = vmatpush3.bf16.msra.mxu1 %v6678_v51  ;;  %5317 = vmatpush1.bf16.msra.mxu0 %v6919_v44  ;;  %v1316_v51 = vld [vmem:[#allocation9 + $0x38] sm:$0xff] }
 0x3c5   :  { %5352 = vmatprep.subr.bf16.mxu1 %v6488_v40 }
 0x3c8   :  { %5354 = vmatpush3.bf16.msra.mxu1 %v6689_v61  ;;  %v1319_v61 = vld [vmem:[#allocation9 + $0x50] sm:$0xff] }
 0x3c9   :  { %5355 = vmatprep.subr.bf16.mxu1 %v6488_v40  ;;  %v6923_v3 = vpack.c.bf16 %v1319_v61, %v1316_v51  ;;  %v6961_v51 = vpack.c.bf16 %v1348_v43, %v1345_v32  ;;  %v6965_v61 = vpack.c.bf16 %v1350_v50, %v1347_v41 }
 0x3cb   :  { %5319 = vmatprep.subr.bf16.mxu0 %v6923_v3 }
 0x3cc   :  { %5357 = vmatpush3.bf16.msra.mxu1 %v6700_v10  ;;  %v1318_v10 = vld [vmem:[#allocation9 + $0x48] sm:$0xff] }
 0x3cd   :  { %5358 = vmatprep.subr.bf16.mxu1 %v6488_v40  ;;  %v6925_v7 = vpack.c.bf16 %v1318_v10, %v1315_v5  ;;  %v6967_v5 = vpack.c.bf16 %v1355_v39, %v1352_v58  ;;  %v1351_v10 = vld [vmem:[#allocation9 + $0x150] sm:$0xff]  ;;  %v1530_v58 = vld [vmem:[#allocation9 + $0x28] sm:$0xff] }
 0x3ce   :  { %v6971_v19 = vpack.c.bf16 %v1354_v8, %v1351_v10  ;;  %v1533_v10 = vld [vmem:[#allocation9 + $0x40] sm:$0xff]  ;;  %v1536_v8 = vld [vmem:[#allocation9 + $0x58] sm:$0xff] }
 0x3cf   :  { %5321 = vmatpush1.bf16.msra.mxu0 %v6925_v7  ;;  %v7014_v12 = vpack.c.bf16 %v1536_v8, %v1533_v10 }
 0x3d0   :  { %5323 = vmatprep.subr.bf16.mxu0 %v6929_v14  ;;  %5360 = vmatpush3.bf16.msra.mxu1 %v6946_v46 }
 0x3d1   :  { %5361 = vmatprep.subr.bf16.mxu1 %v6488_v40 }
 0x3d3   :  { %5325 = vmatpush1.bf16.msra.mxu0 %v6931_v21 }
 0x3d4   :  { %5327 = vmatprep.subr.bf16.mxu0 %v6935_v28  ;;  %5363 = vmatpush3.bf16.msra.mxu1 %v6955_v24 }
 0x3d5   :  { %5364 = vmatprep.subr.bf16.mxu1 %v6488_v40 }
 0x3d7   :  { %5329 = vmatpush1.bf16.msra.mxu0 %v6937_v33 }
 0x3d8   :  { %5331 = vmatprep.subr.bf16.mxu0 %v6941_v47  ;;  %5366 = vmatpush3.bf16.msra.mxu1 %v6965_v61 }
 0x3d9   :  { %5367 = vmatprep.subr.bf16.mxu1 %v6488_v40 }
 0x3db   :  { %5333 = vmatpush1.bf16.msra.mxu0 %v6943_v26 }
 0x3dc   :  { %5335 = vmatprep.subr.bf16.mxu0 %v6948_v55  ;;  %5369 = vmatpush3.bf16.msra.mxu1 %v6975_v9 }
 0x3dd   :  { %5402 = vmatprep.subr.bf16.mxu1 %v6488_v40 }
 0x3df   :  { %5337 = vmatpush1.bf16.msra.mxu0 %v6951_v13 }
 0x3e0   :  { %5339 = vmatprep.subr.bf16.mxu0 %v6957_v29 }
 0x3e3   :  { %5341 = vmatpush1.bf16.msra.mxu0 %v6961_v51 }
 0x3e4   :  { %5343 = vmatprep.subr.bf16.mxu0 %v6967_v5 }
 0x3e7   :  { %5345 = vmatpush1.bf16.msra.mxu0 %v6971_v19 }
 0x3e8   :  { %5371 = vmatprep.subr.bf16.mxu0 %v6917_v54 }
 0x492   :  { %v1207_v22 = vpop.f32.mrb[6].mxu0  ;;  %v1278_v30 = vpop.f32.mrb[14].mxu1 }
 0x493   :  { %v6080_v31 = vadd.f32 %v1207_v22, %v6800_v1  ;;  %v1209_v38 = vpop.f32.mrb[7].mxu0  ;;  %v4526_v42 = vpop.f32.mrb[15].mxu1  ;;  %v1296_v56 = vadd.f32 %v6812_v27, %v1278_v30  ;;  %v1542_v22 = vld [vmem:[#allocation9 + $0x88] sm:$0xff] }
 0x494   :  { %v6081_v18 = vadd.f32 %v1209_v38, %v6806_v11  ;;  %v7018_v30 = vpack.c.bf16 %v1542_v22, %v1539_v16  ;;  %v1548_v38 = vld [vmem:[#allocation9 + $0xb8] sm:$0xff] }
 0x495   :  { %v3978_v17 = vmul.f32 -1.442695, %v6080_v31  ;;  %v1545_v31 = vld [vmem:[#allocation9 + $0xa0] sm:$0xff] }
 0x496   :  { %v3979_v25 = vmul.f32 -1.442695, %v6081_v18  ;;  %v7022_v42 = vpack.c.bf16 %v1548_v38, %v1545_v31 }
 0x497   :  { %6182 = vpow2.f32 %v3978_v17 }
 0x498   :  { %6184 = vpow2.f32 %v3979_v25 }
 0x4a1   :  { %v6183_v34 = vpop.eup %6182 }
 0x4a2   :  { %v1286_v35 = vadd.f32 1.0, %v6183_v34  ;;  %v6185_v45 = vpop.eup %6184 }
 0x4a3   :  { %v1293_v20 = vadd.f32 1.0, %v6185_v45 }
 0x4a4   :  { %6186 = vrcp.f32 %v1286_v35 }
 0x4ae   :  { %v6187_v2 = vpop.eup %6186 }
 0x4af   :  { %v1297_v4 = vmul.f32 %v6187_v2, %v1296_v56 }
 0x4b1   :  { %v1298_v15 = vadd.f32 %v1297_v4, %v6785_v48  ;;  %v1527_v48 = vld [vmem:[#allocation9 + $0x10] sm:$0xff] }
 0x4b2   :  { %v7010_v39 = vpack.c.bf16 %v1530_v58, %v1527_v48 }
 0x4b3   :  { %6188 = vtanh.f32 %v1298_v15 }
 0x4b4   :  { %6190 = vrcp.f32 %v1293_v20 }
 0x4bd   :  { %v6189_v23 = vpop.eup %6188 }
 0x4be   :  { %v1300_v32 = vsub.f32 %v6902_v52, %v6189_v23  ;;  %v6191_v43 = vpop.eup %6190 }
 0x4c0   :  { %v1301_v41 = vmul.f32 %v6191_v43, %v1300_v32 }
 0x4c2   :  { %v6987_v50 = vadd.f32 %v6189_v23, %v1301_v41 }
 0x4c4   :  { %1422 = vmatmul.mubr.f32.vlgmr.msra.gmra.mrb[8].mxu0 %v6987_v50  ;;  %4560 = vmatmul.mubr.f32.vlgmr.msra.gmra.mrb[16].mxu1 %v6987_v50 }
 0x4c5   :  { %5373 = vmatpush1.bf16.msra.mxu0 %v6919_v44  ;;  %1637 = vmatprep.mubr.f32.mxu0 %v6487_v0 }
 0x4c6   :  { %5375 = vmatprep.subr.bf16.mxu0 %v6923_v3  ;;  %4594 = vmatprep.mubr.msk.f32.mxu1 %vm6489_vm0, %v6487_v0 }
 0x4c7   :  { %5404 = vmatpush3.bf16.msra.mxu1 %v7010_v39 }
 0x4c8   :  { %5405 = vmatprep.subr.bf16.mxu1 %v6488_v40 }
 0x4c9   :  { %5377 = vmatpush1.bf16.msra.mxu0 %v6925_v7 }
 0x4ca   :  { %5379 = vmatprep.subr.bf16.mxu0 %v6929_v14 }
 0x4cb   :  { %5407 = vmatpush3.bf16.msra.mxu1 %v7014_v12 }
 0x4cc   :  { %5408 = vmatprep.subr.bf16.mxu1 %v6488_v40 }
 0x4cd   :  { %5381 = vmatpush1.bf16.msra.mxu0 %v6931_v21 }
 0x4ce   :  { %5383 = vmatprep.subr.bf16.mxu0 %v6935_v28 }
 0x4cf   :  { %5410 = vmatpush3.bf16.msra.mxu1 %v7018_v30 }
 0x4d0   :  { %5411 = vmatprep.subr.bf16.mxu1 %v6488_v40 }
 0x4d1   :  { %5385 = vmatpush1.bf16.msra.mxu0 %v6937_v33 }
 0x4d2   :  { %5387 = vmatprep.subr.bf16.mxu0 %v6941_v47 }
 0x4d3   :  { %5413 = vmatpush3.bf16.msra.mxu1 %v7022_v42 }
 0x4d4   :  { %5414 = vmatprep.subr.bf16.mxu1 %v6488_v40 }
 0x4d5   :  { %5389 = vmatpush1.bf16.msra.mxu0 %v6943_v26 }
 0x4d6   :  { %5391 = vmatprep.subr.bf16.mxu0 %v6948_v55 }
 0x4d7   :  { %5416 = vmatpush3.bf16.msra.mxu1 %v6946_v46 }
 0x4d8   :  { %5417 = vmatprep.subr.bf16.mxu1 %v6488_v40 }
 0x4d9   :  { %5393 = vmatpush1.bf16.msra.mxu0 %v6951_v13 }
 0x4da   :  { %5395 = vmatprep.subr.bf16.mxu0 %v6957_v29 }
 0x4db   :  { %5419 = vmatpush3.bf16.msra.mxu1 %v6955_v24 }
 0x4dc   :  { %5420 = vmatprep.subr.bf16.mxu1 %v6488_v40 }
 0x4dd   :  { %5397 = vmatpush1.bf16.msra.mxu0 %v6961_v51 }
 0x4de   :  { %5399 = vmatprep.subr.bf16.mxu0 %v6967_v5 }
 0x4df   :  { %5422 = vmatpush3.bf16.msra.mxu1 %v6965_v61 }
 0x4e0   :  { %5423 = vmatprep.subr.bf16.mxu1 %v6488_v40 }
 0x4e1   :  { %5401 = vmatpush1.bf16.msra.mxu0 %v6971_v19 }
 0x4e2   :  { %5427 = vmatprep.subr.bf16.mxu0 %v6917_v54 }
 0x4e3   :  { %5425 = vmatpush3.bf16.msra.mxu1 %v6975_v9 }
 0x4e4   :  { %5458 = vmatprep.subr.bf16.mxu1 %v6488_v40 }
 0x597   :  { %v1423_v17 = vpop.f32.mrb[8].mxu0  ;;  %v1494_v18 = vpop.f32.mrb[16].mxu1 }
 0x598   :  { %v6082_v25 = vadd.f32 %v1423_v17, %v6800_v1  ;;  %v1425_v34 = vpop.f32.mrb[9].mxu0  ;;  %v4561_v35 = vpop.f32.mrb[17].mxu1  ;;  %v1512_v23 = vadd.f32 %v6812_v27, %v1494_v18 }
 0x599   :  { %v6083_v56 = vadd.f32 %v1425_v34, %v6806_v11 }
 0x59a   :  { %v3980_v45 = vmul.f32 -1.442695, %v6082_v25 }
 0x59b   :  { %v3981_v2 = vmul.f32 -1.442695, %v6083_v56 }
 0x59c   :  { %6192 = vpow2.f32 %v3980_v45 }
 0x59d   :  { %6194 = vpow2.f32 %v3981_v2 }
 0x5a6   :  { %v6193_v4 = vpop.eup %6192 }
 0x5a7   :  { %v1502_v15 = vadd.f32 1.0, %v6193_v4  ;;  %v6195_v20 = vpop.eup %6194 }
 0x5a8   :  { %v1509_v48 = vadd.f32 1.0, %v6195_v20 }
 0x5a9   :  { %6196 = vrcp.f32 %v1502_v15 }
 0x5b3   :  { %v6197_v32 = vpop.eup %6196 }
 0x5b4   :  { %v1513_v43 = vmul.f32 %v6197_v32, %v1512_v23 }
 0x5b6   :  { %v1514_v41 = vadd.f32 %v1513_v43, %v6791_v57 }
 0x5b8   :  { %6198 = vtanh.f32 %v1514_v41 }
 0x5b9   :  { %6200 = vrcp.f32 %v1509_v48 }
 0x5c2   :  { %v6199_v58 = vpop.eup %6198 }
 0x5c3   :  { %v1516_v10 = vsub.f32 %v6987_v50, %v6199_v58  ;;  %v6201_v8 = vpop.eup %6200 }
 0x5c5   :  { %v1517_v16 = vmul.f32 %v6201_v8, %v1516_v10  ;;  %v2177_v10 = vld [vmem:[#allocation10] sm:$0xff]  ;;  %v2180_v8 = vld [vmem:[#allocation10 + $0x18] sm:$0xff] }
 0x5c7   :  { %v7039_v22 = vadd.f32 %v6199_v58, %v1517_v16 }
 0x5c9   :  { %1638 = vmatmul.mubr.f32.vlgmr.msra.gmra.mrb[10].mxu0 %v7039_v22  ;;  %4595 = vmatmul.mubr.f32.vlgmr.msra.gmra.mrb[18].mxu1 %v7039_v22 }
 0x5ca   :  { %5429 = vmatpush1.bf16.msra.mxu0 %v6919_v44  ;;  %5460 = vmatpush3.bf16.msra.mxu1 %v7010_v39 }
 0x5cb   :  { %5431 = vmatprep.subr.bf16.mxu0 %v6923_v3  ;;  %5461 = vmatprep.subr.bf16.mxu1 %v6488_v40 }
 0x5cc   :  { %1853 = vmatprep.mubr.f32.mxu0 %v6487_v0  ;;  %4629 = vmatprep.mubr.msk.f32.mxu1 %vm6489_vm0, %v6487_v0 }
 0x5ce   :  { %5433 = vmatpush1.bf16.msra.mxu0 %v6925_v7  ;;  %5463 = vmatpush3.bf16.msra.mxu1 %v7014_v12 }
 0x5cf   :  { %5435 = vmatprep.subr.bf16.mxu0 %v6929_v14  ;;  %5464 = vmatprep.subr.bf16.mxu1 %v6488_v40 }
 0x5d2   :  { %5437 = vmatpush1.bf16.msra.mxu0 %v6931_v21  ;;  %5466 = vmatpush3.bf16.msra.mxu1 %v7018_v30 }
 0x5d3   :  { %5439 = vmatprep.subr.bf16.mxu0 %v6935_v28  ;;  %5467 = vmatprep.subr.bf16.mxu1 %v6488_v40 }
 0x5d6   :  { %5441 = vmatpush1.bf16.msra.mxu0 %v6937_v33  ;;  %5469 = vmatpush3.bf16.msra.mxu1 %v7022_v42 }
 0x5d7   :  { %5443 = vmatprep.subr.bf16.mxu0 %v6941_v47  ;;  %5470 = vmatprep.subr.bf16.mxu1 %v6488_v40 }
 0x5da   :  { %5445 = vmatpush1.bf16.msra.mxu0 %v6943_v26  ;;  %5472 = vmatpush3.bf16.msra.mxu1 %v6946_v46 }
 0x5db   :  { %5447 = vmatprep.subr.bf16.mxu0 %v6948_v55  ;;  %5473 = vmatprep.subr.bf16.mxu1 %v6488_v40 }
 0x5de   :  { %5449 = vmatpush1.bf16.msra.mxu0 %v6951_v13  ;;  %5475 = vmatpush3.bf16.msra.mxu1 %v6955_v24 }
 0x5df   :  { %5451 = vmatprep.subr.bf16.mxu0 %v6957_v29  ;;  %5476 = vmatprep.subr.bf16.mxu1 %v6488_v40 }
 0x5e2   :  { %5453 = vmatpush1.bf16.msra.mxu0 %v6961_v51  ;;  %5478 = vmatpush3.bf16.msra.mxu1 %v6965_v61 }
 0x5e3   :  { %5455 = vmatprep.subr.bf16.mxu0 %v6967_v5  ;;  %5479 = vmatprep.subr.bf16.mxu1 %v6488_v40 }
 0x5e6   :  { %5457 = vmatpush1.bf16.msra.mxu0 %v6971_v19  ;;  %5481 = vmatpush3.bf16.msra.mxu1 %v6975_v9 }
 0x5e7   :  { %5483 = vmatprep.subr.bf16.mxu0 %v6917_v54  ;;  %5514 = vmatprep.subr.bf16.mxu1 %v6488_v40 }
 0x69c   :  { %v1639_v57 = vpop.f32.mrb[10].mxu0  ;;  %v1710_v31 = vpop.f32.mrb[18].mxu1 }
 0x69d   :  { %v6084_v38 = vadd.f32 %v1639_v57, %v6800_v1  ;;  %v1641_v17 = vpop.f32.mrb[11].mxu0  ;;  %v4596_v18 = vpop.f32.mrb[19].mxu1  ;;  %v1728_v54 = vadd.f32 %v6812_v27, %v1710_v31  ;;  %v2184_v57 = vld [vmem:[#allocation10 + $0x38] sm:$0xff]  ;;  %v2187_v31 = vld [vmem:[#allocation10 + $0x50] sm:$0xff] }
 0x69e   :  { %v6085_v34 = vadd.f32 %v1641_v17, %v6806_v11  ;;  %v2185_v17 = vld [vmem:[#allocation10 + $0x40] sm:$0xff]  ;;  %v2188_v18 = vld [vmem:[#allocation10 + $0x58] sm:$0xff] }
 0x69f   :  { %v3982_v25 = vmul.f32 -1.442695, %v6084_v38 }
 0x6a0   :  { %v3983_v35 = vmul.f32 -1.442695, %v6085_v34  ;;  %v5542_v34 = vpack.c.bf16 %v2187_v31, %v2184_v57  ;;  %v2215_v57 = vld [vmem:[#allocation10 + $0x130] sm:$0xff]  ;;  %v2218_v31 = vld [vmem:[#allocation10 + $0x148] sm:$0xff] }
 0x6a1   :  { %6202 = vpow2.f32 %v3982_v25  ;;  %v5540_v25 = vpack.c.bf16 %v2180_v8, %v2177_v10  ;;  %v2210_v10 = vld [vmem:[#allocation10 + $0x108] sm:$0xff] }
 0x6a2   :  { %6204 = vpow2.f32 %v3983_v35  ;;  %v2183_v35 = vld [vmem:[#allocation10 + $0x30] sm:$0xff]  ;;  %v2214_v8 = vld [vmem:[#allocation10 + $0x128] sm:$0xff] }
 0x6ab   :  { %v6203_v45 = vpop.eup %6202 }
 0x6ac   :  { %v1718_v56 = vadd.f32 1.0, %v6203_v45  ;;  %v6205_v2 = vpop.eup %6204  ;;  %v2190_v45 = vld [vmem:[#allocation10 + $0x68] sm:$0xff] }
 0x6ad   :  { %v1725_v23 = vadd.f32 1.0, %v6205_v2  ;;  %v2193_v2 = vld [vmem:[#allocation10 + $0x80] sm:$0xff] }
 0x6ae   :  { %6206 = vrcp.f32 %v1718_v56  ;;  %v5574_v56 = vpack.c.bf16 %v2188_v18, %v2185_v17  ;;  %v5594_v18 = vpack.c.bf16 %v2218_v31, %v2215_v57  ;;  %v2528_v57 = vld [vmem:[#allocation12 + $0x140] sm:$0xff] }
 0x6af   :  { %v2524_v31 = vld [vmem:[#allocation12 + $0x120] sm:$0xff] }
 0x6b8   :  { %v6207_v4 = vpop.eup %6206 }
 0x6b9   :  { %v1729_v15 = vmul.f32 %v6207_v4, %v1728_v54  ;;  %v2191_v54 = vld [vmem:[#allocation10 + $0x70] sm:$0xff]  ;;  %v2194_v4 = vld [vmem:[#allocation10 + $0x88] sm:$0xff] }
 0x6bb   :  { %v1730_v20 = vadd.f32 %v1729_v15, %v6789_v53  ;;  %v2178_v53 = vld [vmem:[#allocation10 + $0x8] sm:$0xff] }
 0x6bd   :  { %6208 = vtanh.f32 %v1730_v20  ;;  %v5546_v20 = vpack.c.bf16 %v2193_v2, %v2190_v45  ;;  %v2221_v45 = vld [vmem:[#allocation10 + $0x160] sm:$0xff] }
 0x6be   :  { %6210 = vrcp.f32 %v1725_v23  ;;  %v5578_v23 = vpack.c.bf16 %v2194_v4, %v2191_v54 }
 0x6c7   :  { %v6209_v32 = vpop.eup %6208 }
 0x6c8   :  { %v1732_v43 = vsub.f32 %v7039_v22, %v6209_v32  ;;  %v6211_v41 = vpop.eup %6210 }
 0x6ca   :  { %v1733_v48 = vmul.f32 %v6211_v41, %v1732_v43  ;;  %v2192_v43 = vld [vmem:[#allocation10 + $0x78] sm:$0xff] }
 0x6cb   :  { %v2196_v41 = vld [vmem:[#allocation10 + $0x98] sm:$0xff] }
 0x6cc   :  { %v7083_v58 = vadd.f32 %v6209_v32, %v1733_v48  ;;  %v2189_v32 = vld [vmem:[#allocation10 + $0x60] sm:$0xff]  ;;  %v2199_v48 = vld [vmem:[#allocation10 + $0xb0] sm:$0xff] }
 0x6ce   :  { %1854 = vmatmul.mubr.f32.vlgmr.msra.gmra.mrb[12].mxu0 %v7083_v58  ;;  %4630 = vmatmul.mubr.f32.vlgmr.msra.gmra.mrb[20].mxu1 %v7083_v58 }
 0x6cf   :  { %5485 = vmatpush1.bf16.msra.mxu0 %v6919_v44  ;;  %5516 = vmatpush3.bf16.msra.mxu1 %v7010_v39  ;;  %v2181_v44 = vld [vmem:[#allocation10 + $0x20] sm:$0xff] }
 0x6d0   :  { %5487 = vmatprep.subr.bf16.mxu0 %v6923_v3  ;;  %5517 = vmatprep.subr.bf16.mxu1 %v6488_v40  ;;  %v2179_v3 = vld [vmem:[#allocation10 + $0x10] sm:$0xff] }
 0x6d1   :  { %2069 = vmatprep.mubr.f32.mxu0 %v6487_v0  ;;  %4664 = vmatprep.mubr.msk.f32.mxu1 %vm6489_vm0, %v6487_v0 }
 0x6d3   :  { %5489 = vmatpush1.bf16.msra.mxu0 %v6925_v7  ;;  %5519 = vmatpush3.bf16.msra.mxu1 %v7014_v12  ;;  %v5538_v7 = vpack.c.bf16 %v2181_v44, %v2178_v53  ;;  %v2197_v53 = vld [vmem:[#allocation10 + $0xa0] sm:$0xff]  ;;  %v2200_v44 = vld [vmem:[#allocation10 + $0xb8] sm:$0xff] }
 0x6d4   :  { %5491 = vmatprep.subr.bf16.mxu0 %v6929_v14  ;;  %5520 = vmatprep.subr.bf16.mxu1 %v6488_v40  ;;  %v2182_v14 = vld [vmem:[#allocation10 + $0x28] sm:$0xff] }
 0x6d7   :  { %5493 = vmatpush1.bf16.msra.mxu0 %v6931_v21  ;;  %5522 = vmatpush3.bf16.msra.mxu1 %v7018_v30  ;;  %v5570_v21 = vpack.c.bf16 %v2182_v14, %v2179_v3  ;;  %v5548_v3 = vpack.c.bf16 %v2192_v43, %v2189_v32  ;;  %v5582_v14 = vpack.c.bf16 %v2200_v44, %v2197_v53  ;;  %v2488_v32 = vld [vmem:[#allocation12] sm:$0xff]  ;;  %v2497_v53 = vld [vmem:[#allocation12 + $0x48] sm:$0xff] }
 0x6d8   :  { %5495 = vmatprep.subr.bf16.mxu0 %v6935_v28  ;;  %5523 = vmatprep.subr.bf16.mxu1 %v6488_v40 }
 0x6db   :  { %5497 = vmatpush1.bf16.msra.mxu0 %v6937_v33  ;;  %5525 = vmatpush3.bf16.msra.mxu1 %v7022_v42 }
 0x6dc   :  { %5499 = vmatprep.subr.bf16.mxu0 %v6941_v47  ;;  %5526 = vmatprep.subr.bf16.mxu1 %v6488_v40 }
 0x6df   :  { %5501 = vmatpush1.bf16.msra.mxu0 %v6943_v26  ;;  %5528 = vmatpush3.bf16.msra.mxu1 %v6946_v46 }
 0x6e0   :  { %5503 = vmatprep.subr.bf16.mxu0 %v6948_v55  ;;  %5529 = vmatprep.subr.bf16.mxu1 %v6488_v40 }
 0x6e3   :  { %5505 = vmatpush1.bf16.msra.mxu0 %v6951_v13  ;;  %5531 = vmatpush3.bf16.msra.mxu1 %v6955_v24 }
 0x6e4   :  { %5507 = vmatprep.subr.bf16.mxu0 %v6957_v29  ;;  %5532 = vmatprep.subr.bf16.mxu1 %v6488_v40 }
 0x6e7   :  { %5509 = vmatpush1.bf16.msra.mxu0 %v6961_v51  ;;  %5534 = vmatpush3.bf16.msra.mxu1 %v6965_v61 }
 0x6e8   :  { %5511 = vmatprep.subr.bf16.mxu0 %v6967_v5  ;;  %5535 = vmatprep.subr.bf16.mxu1 %v6488_v40 }
 0x6eb   :  { %5513 = vmatpush1.bf16.msra.mxu0 %v6971_v19  ;;  %5537 = vmatpush3.bf16.msra.mxu1 %v6975_v9 }
 0x6ec   :  { %5539 = vmatprep.subr.bf16.mxu0 %v5538_v7  ;;  %5571 = vmatprep.subr.bf16.mxu1 %v5570_v21  ;;  %v5550_v7 = vpack.c.bf16 %v2199_v48, %v2196_v41  ;;  %v2494_v48 = vld [vmem:[#allocation12 + $0x30] sm:$0xff] }
 0x6ed   :  { %v7160_v44 = vpack.c.bf16 %v2497_v53, %v2494_v48  ;;  %v2514_v48 = vld [vmem:[#allocation12 + $0xd0] sm:$0xff]  ;;  %v2517_v53 = vld [vmem:[#allocation12 + $0xe8] sm:$0xff] }
 0x7a1   :  { %v1855_v28 = vpop.f32.mrb[12].mxu0  ;;  %v1926_v33 = vpop.f32.mrb[20].mxu1 }
 0x7a2   :  { %v6086_v47 = vadd.f32 %v1855_v28, %v6800_v1  ;;  %v1857_v26 = vpop.f32.mrb[13].mxu0  ;;  %v4631_v46 = vpop.f32.mrb[21].mxu1  ;;  %v1944_v5 = vadd.f32 %v6812_v27, %v1926_v33  ;;  %v2198_v28 = vld [vmem:[#allocation10 + $0xa8] sm:$0xff] }
 0x7a3   :  { %v6087_v13 = vadd.f32 %v1857_v26, %v6806_v11  ;;  %v2202_v33 = vld [vmem:[#allocation10 + $0xc8] sm:$0xff]  ;;  %v2203_v26 = vld [vmem:[#allocation10 + $0xd0] sm:$0xff] }
 0x7a4   :  { %v3984_v55 = vmul.f32 -1.442695, %v6086_v47  ;;  %v2205_v47 = vld [vmem:[#allocation10 + $0xe0] sm:$0xff]  ;;  %v2206_v46 = vld [vmem:[#allocation10 + $0xe8] sm:$0xff] }
 0x7a5   :  { %v3985_v24 = vmul.f32 -1.442695, %v6087_v13  ;;  %v5554_v13 = vpack.c.bf16 %v2205_v47, %v2202_v33  ;;  %v2507_v47 = vld [vmem:[#allocation12 + $0x98] sm:$0xff] }
 0x7a6   :  { %6212 = vpow2.f32 %v3984_v55 }
 0x7a7   :  { %6214 = vpow2.f32 %v3985_v24  ;;  %v5586_v24 = vpack.c.bf16 %v2206_v46, %v2203_v26  ;;  %v2510_v26 = vld [vmem:[#allocation12 + $0xb0] sm:$0xff] }
 0x7a8   :  { %v7170_v46 = vpack.c.bf16 %v2510_v26, %v2507_v47  ;;  %v2526_v47 = vld [vmem:[#allocation12 + $0x130] sm:$0xff]  ;;  %v2529_v26 = vld [vmem:[#allocation12 + $0x148] sm:$0xff] }
 0x7b0   :  { %v6213_v29 = vpop.eup %6212 }
 0x7b1   :  { %v1934_v51 = vadd.f32 1.0, %v6213_v29  ;;  %v6215_v61 = vpop.eup %6214  ;;  %v2201_v29 = vld [vmem:[#allocation10 + $0xc0] sm:$0xff] }
 0x7b2   :  { %v1941_v12 = vadd.f32 1.0, %v6215_v61  ;;  %v2208_v61 = vld [vmem:[#allocation10 + $0xf8] sm:$0xff] }
 0x7b3   :  { %6216 = vrcp.f32 %v1934_v51  ;;  %v2204_v51 = vld [vmem:[#allocation10 + $0xd8] sm:$0xff] }
 0x7bd   :  { %v6217_v19 = vpop.eup %6216 }
 0x7be   :  { %v1945_v9 = vmul.f32 %v6217_v19, %v1944_v5  ;;  %v2211_v5 = vld [vmem:[#allocation10 + $0x110] sm:$0xff]  ;;  %v2209_v19 = vld [vmem:[#allocation10 + $0x100] sm:$0xff] }
 0x7c0   :  { %v1946_v39 = vadd.f32 %v1945_v9, %v6795_v62  ;;  %v2186_v62 = vld [vmem:[#allocation10 + $0x48] sm:$0xff]  ;;  %v2212_v9 = vld [vmem:[#allocation10 + $0x118] sm:$0xff] }
 0x7c1   :  { %v5544_v15 = vpack.c.bf16 %v2186_v62, %v2183_v35  ;;  %v2220_v35 = vld [vmem:[#allocation10 + $0x158] sm:$0xff]  ;;  %v2223_v62 = vld [vmem:[#allocation10 + $0x170] sm:$0xff] }
 0x7c2   :  { %6218 = vtanh.f32 %v1946_v39  ;;  %v5556_v39 = vpack.c.bf16 %v2204_v51, %v2201_v29  ;;  %v5566_v54 = vpack.c.bf16 %v2223_v62, %v2220_v35  ;;  %v2513_v29 = vld [vmem:[#allocation12 + $0xc8] sm:$0xff]  ;;  %v2516_v51 = vld [vmem:[#allocation12 + $0xe0] sm:$0xff]  ;;  %v2531_v62 = vld [vmem:[#allocation12 + $0x158] sm:$0xff] }
 0x7c3   :  { %6220 = vrcp.f32 %v1941_v12  ;;  %v5558_v12 = vpack.c.bf16 %v2211_v5, %v2208_v61  ;;  %v7176_v61 = vpack.c.bf16 %v2516_v51, %v2513_v29  ;;  %v2512_v5 = vld [vmem:[#allocation12 + $0xc0] sm:$0xff]  ;;  %v2535_v29 = vld [vmem:[#allocation12 + $0x178] sm:$0xff] }
 0x7cc   :  { %v6219_v30 = vpop.eup %6218 }
 0x7cd   :  { %v1948_v42 = vsub.f32 %v7083_v58, %v6219_v30  ;;  %v6221_v16 = vpop.eup %6220 }
 0x7cf   :  { %v1949_v38 = vmul.f32 %v6221_v16, %v1948_v42  ;;  %v2207_v42 = vld [vmem:[#allocation10 + $0xf0] sm:$0xff]  ;;  %v2217_v16 = vld [vmem:[#allocation10 + $0x140] sm:$0xff] }
 0x7d0   :  { %v5562_v17 = vpack.c.bf16 %v2217_v16, %v2214_v8  ;;  %v2525_v16 = vld [vmem:[#allocation12 + $0x128] sm:$0xff] }
 0x7d1   :  { %v7125_v27 = vadd.f32 %v6219_v30, %v1949_v38  ;;  %v5590_v30 = vpack.c.bf16 %v2212_v9, %v2209_v19  ;;  %v5560_v38 = vpack.c.bf16 %v2210_v10, %v2207_v42  ;;  %v2515_v19 = vld [vmem:[#allocation12 + $0xd8] sm:$0xff]  ;;  %v2518_v42 = vld [vmem:[#allocation12 + $0xf0] sm:$0xff]  ;;  %v2521_v10 = vld [vmem:[#allocation12 + $0x108] sm:$0xff] }
 0x7d2   :  { %v7178_v9 = vpack.c.bf16 %v2515_v19, %v2512_v5  ;;  %v7184_v8 = vpack.c.bf16 %v2521_v10, %v2518_v42 }
 0x7d3   :  { %2070 = vmatmul.mubr.f32.vlgmr.msra.gmra.mrb[14].mxu0 %v7125_v27  ;;  %4665 = vmatmul.mubr.f32.vlgmr.msra.gmra.mrb[22].mxu1 %v7125_v27 }
 0x7d4   :  { %5541 = vmatpush1.bf16.msra.mxu0 %v5540_v25  ;;  %5573 = vmatpush3.bf16.msra.mxu1 %v5570_v21  ;;  %v2195_v21 = vld [vmem:[#allocation10 + $0x90] sm:$0xff]  ;;  %v2213_v25 = vld [vmem:[#allocation10 + $0x120] sm:$0xff] }
 0x7d5   :  { %4699 = vmatprep.mubr.f32.mxu1 %v6815_v60  ;;  %5543 = vmatprep.subr.bf16.mxu0 %v5542_v34  ;;  %v5552_v55 = vpack.c.bf16 %v2198_v28, %v2195_v21  ;;  %v2216_v34 = vld [vmem:[#allocation10 + $0x138] sm:$0xff]  ;;  %v2500_v21 = vld [vmem:[#allocation12 + $0x60] sm:$0xff] }
 0x7d6   :  { %5575 = vmatprep.subr.bf16.mxu1 %v5574_v56  ;;  %2306 = vmatprep.mubr.f32.mxu0 %v6487_v0  ;;  %v5564_v2 = vpack.c.bf16 %v2216_v34, %v2213_v25  ;;  %v2503_v28 = vld [vmem:[#allocation12 + $0x78] sm:$0xff]  ;;  %v2493_v25 = vld [vmem:[#allocation12 + $0x28] sm:$0xff] }
 0x7d7   :  { %v7166_v33 = vpack.c.bf16 %v2503_v28, %v2500_v21  ;;  %v2523_v21 = vld [vmem:[#allocation12 + $0x118] sm:$0xff] }
 0x7d8   :  { %5545 = vmatpush1.bf16.msra.mxu0 %v5544_v15  ;;  %5577 = vmatpush3.bf16.msra.mxu1 %v5574_v56  ;;  %v2224_v56 = vld [vmem:[#allocation10 + $0x178] sm:$0xff]  ;;  %v2219_v15 = vld [vmem:[#allocation10 + $0x150] sm:$0xff] }
 0x7d9   :  { %5547 = vmatprep.subr.bf16.mxu0 %v5546_v20  ;;  %5579 = vmatprep.subr.bf16.mxu1 %v5578_v23  ;;  %v5598_v4 = vpack.c.bf16 %v2224_v56, %v2221_v45  ;;  %v2222_v20 = vld [vmem:[#allocation10 + $0x168] sm:$0xff]  ;;  %v2534_v45 = vld [vmem:[#allocation12 + $0x170] sm:$0xff] }
 0x7da   :  { %v7198_v56 = vpack.c.bf16 %v2534_v45, %v2531_v62 }
 0x7dc   :  { %5549 = vmatpush1.bf16.msra.mxu0 %v5548_v3  ;;  %5581 = vmatpush3.bf16.msra.mxu1 %v5578_v23  ;;  %v5568_v23 = vpack.c.bf16 %v2222_v20, %v2219_v15  ;;  %v2501_v3 = vld [vmem:[#allocation12 + $0x68] sm:$0xff]  ;;  %v2496_v15 = vld [vmem:[#allocation12 + $0x40] sm:$0xff]  ;;  %v2499_v20 = vld [vmem:[#allocation12 + $0x58] sm:$0xff] }
 0x7dd   :  { %5551 = vmatprep.subr.bf16.mxu0 %v5550_v7  ;;  %5583 = vmatprep.subr.bf16.mxu1 %v5582_v14  ;;  %v2504_v7 = vld [vmem:[#allocation12 + $0x80] sm:$0xff] }
 0x7e0   :  { %5553 = vmatpush1.bf16.msra.mxu0 %v5552_v55  ;;  %5585 = vmatpush3.bf16.msra.mxu1 %v5582_v14  ;;  %v7164_v14 = vpack.c.bf16 %v2504_v7, %v2501_v3  ;;  %v2506_v55 = vld [vmem:[#allocation12 + $0x90] sm:$0xff]  ;;  %v7216_v3 = vpack.c.bf16 %v2517_v53, %v2514_v48  ;;  %v2520_v7 = vld [vmem:[#allocation12 + $0x100] sm:$0xff] }
 0x7e1   :  { %5555 = vmatprep.subr.bf16.mxu0 %v5554_v13  ;;  %5587 = vmatprep.subr.bf16.mxu1 %v5586_v24  ;;  %v2509_v13 = vld [vmem:[#allocation12 + $0xa8] sm:$0xff]  ;;  %v7220_v28 = vpack.c.bf16 %v2523_v21, %v2520_v7 }
 0x7e4   :  { %5557 = vmatpush1.bf16.msra.mxu0 %v5556_v39  ;;  %5589 = vmatpush3.bf16.msra.mxu1 %v5586_v24  ;;  %v7172_v24 = vpack.c.bf16 %v2509_v13, %v2506_v55  ;;  %v2519_v39 = vld [vmem:[#allocation12 + $0xf8] sm:$0xff]  ;;  %v7224_v55 = vpack.c.bf16 %v2529_v26, %v2526_v47  ;;  %v2532_v13 = vld [vmem:[#allocation12 + $0x160] sm:$0xff] }
 0x7e5   :  { %5559 = vmatprep.subr.bf16.mxu0 %v5558_v12  ;;  %5591 = vmatprep.subr.bf16.mxu1 %v5590_v30  ;;  %v2522_v12 = vld [vmem:[#allocation12 + $0x110] sm:$0xff]  ;;  %v7228_v51 = vpack.c.bf16 %v2535_v29, %v2532_v13 }
 0x7e8   :  { %5561 = vmatpush1.bf16.msra.mxu0 %v5560_v38  ;;  %5593 = vmatpush3.bf16.msra.mxu1 %v5590_v30  ;;  %v7182_v30 = vpack.c.bf16 %v2522_v12, %v2519_v39  ;;  %v7187_v38 = vpack.c.bf16 %v2528_v57, %v2525_v16 }
 0x7e9   :  { %5563 = vmatprep.subr.bf16.mxu0 %v5562_v17  ;;  %5595 = vmatprep.subr.bf16.mxu1 %v5594_v18  ;;  %v2527_v17 = vld [vmem:[#allocation12 + $0x138] sm:$0xff] }
 0x7ea   :  { %v7190_v34 = vpack.c.bf16 %v2527_v17, %v2524_v31 }
 0x7ec   :  { %5565 = vmatpush1.bf16.msra.mxu0 %v5564_v2  ;;  %5597 = vmatpush3.bf16.msra.mxu1 %v5594_v18  ;;  %v2490_v18 = vld [vmem:[#allocation12 + $0x10] sm:$0xff] }
 0x7ed   :  { %5567 = vmatprep.subr.bf16.mxu0 %v5566_v54  ;;  %5599 = vmatprep.subr.bf16.mxu1 %v5598_v4  ;;  %v7192_v35 = vpack.c.bf16 %v2493_v25, %v2490_v18  ;;  %v2530_v2 = vld [vmem:[#allocation12 + $0x150] sm:$0xff]  ;;  %v2533_v54 = vld [vmem:[#allocation12 + $0x168] sm:$0xff]  ;;  %v6312_v25 = vld [vmem:[%s7623_s4] ss:$0 sm:$0xff] }
 0x7f0   :  { %5569 = vmatpush1.bf16.msra.mxu0 %v5568_v23  ;;  %5601 = vmatpush3.bf16.msra.mxu1 %v5598_v4  ;;  %v7200_v4 = vpack.c.bf16 %v2533_v54, %v2530_v2  ;;  %v7203_v23 = vpack.c.bf16 %v2499_v20, %v2496_v15 }
 0x7f1   :  { %5634 = vmatprep.subr.bf16.mxu1 %v6488_v40 }
 0x7f3   :  { %2307 = vmatmul.mubr.f32.vlgmr.msra.gmra.mrb[16].mxu0 %v6815_v60  ;;  %4700 = vmatmul.mubr.f32.vlgmr.msra.gmra.mrb[24].mxu1 %v6859_v49  ;;  %v2489_v60 = vld [vmem:[#allocation12 + $0x8] sm:$0xff] }
 0x7f4   :  { %4702 = vmatprep.mubr.f32.mxu1 %v6902_v52  ;;  %2312 = vmatprep.mubr.f32.mxu0 %v6487_v0 }
 0x7f5   :  { %5636 = vmatpush3.bf16.msra.mxu1 %v7192_v35 }
 0x7f6   :  { %5637 = vmatprep.subr.bf16.mxu1 %v6488_v40 }
 0x7f7   :  { %2313 = vmatmul.mubr.f32.gmra.mrb[18].mxu0 %v6859_v49  ;;  %4703 = vmatmul.mubr.f32.gmra.mrb[26].mxu1 %v6987_v50  ;;  %v2492_v49 = vld [vmem:[#allocation12 + $0x20] sm:$0xff] }
 0x7f8   :  { %4705 = vmatprep.mubr.f32.mxu1 %v7039_v22  ;;  %2318 = vmatprep.mubr.f32.mxu0 %v6487_v0 }
 0x7f9   :  { %5639 = vmatpush3.bf16.msra.mxu1 %v7203_v23 }
 0x7fa   :  { %5640 = vmatprep.subr.bf16.mxu1 %v6488_v40 }
 0x7fb   :  { %2319 = vmatmul.mubr.f32.gmra.mrb[20].mxu0 %v6902_v52  ;;  %4706 = vmatmul.mubr.f32.gmra.mrb[28].mxu1 %v7083_v58  ;;  %v7152_v52 = vpack.c.bf16 %v2492_v49, %v2489_v60  ;;  %v2502_v60 = vld [vmem:[#allocation12 + $0x70] sm:$0xff]  ;;  %v2505_v49 = vld [vmem:[#allocation12 + $0x88] sm:$0xff] }
 0x7fc   :  { %4708 = vmatprep.mubr.f32.mxu1 %v7125_v27  ;;  %2324 = vmatprep.mubr.f32.mxu0 %v6487_v0 }
 0x7fd   :  { %5603 = vmatprep.subr.bf16.mxu0 %v7152_v52 }
 0x7ff   :  { %2325 = vmatmul.mubr.f32.gmra.mrb[22].mxu0 %v6987_v50  ;;  %v2491_v50 = vld [vmem:[#allocation12 + $0x18] sm:$0xff] }
 0x800   :  { %2330 = vmatprep.mubr.f32.mxu0 %v6487_v0  ;;  %v7154_v43 = vpack.c.bf16 %v2491_v50, %v2488_v32  ;;  %v2508_v32 = vld [vmem:[#allocation12 + $0xa0] sm:$0xff]  ;;  %v7209_v50 = vpack.c.bf16 %v2505_v49, %v2502_v60 }
 0x802   :  { %5605 = vmatpush1.bf16.msra.mxu0 %v7154_v43  ;;  %5642 = vmatpush3.bf16.msra.mxu1 %v7209_v50 }
 0x803   :  { %2331 = vmatmul.mubr.f32.gmra.mrb[24].mxu0 %v7039_v22  ;;  %v2495_v22 = vld [vmem:[#allocation12 + $0x38] sm:$0xff]  ;;  %5643 = vmatprep.subr.bf16.mxu1 %v6488_v40 }
 0x804   :  { %2336 = vmatprep.mubr.f32.mxu0 %v6487_v0 }
 0x807   :  { %2337 = vmatmul.mubr.f32.gmra.mrb[26].mxu0 %v7083_v58  ;;  %v2498_v58 = vld [vmem:[#allocation12 + $0x50] sm:$0xff] }
 0x808   :  { %2342 = vmatprep.mubr.f32.mxu0 %v6487_v0  ;;  %v7158_v41 = vpack.c.bf16 %v2498_v58, %v2495_v22  ;;  %v2511_v22 = vld [vmem:[#allocation12 + $0xb8] sm:$0xff] }
 0x809   :  { %v7212_v58 = vpack.c.bf16 %v2511_v22, %v2508_v32 }
 0x80a   :  { %5607 = vmatprep.subr.bf16.mxu0 %v7158_v41 }
 0x80b   :  { %2343 = vmatmul.mubr.f32.gmra.mrb[28].mxu0 %v7125_v27  ;;  %5645 = vmatpush3.bf16.msra.mxu1 %v7212_v58 }
 0x80c   :  { %2348 = vmatprep.mubr.f32.mxu0 %v6487_v0  ;;  %5609 = vmatpush1.bf16.msra.mxu0 %v7160_v44 }
 0x80d   :  { %5611 = vmatprep.subr.bf16.mxu0 %v7164_v14  ;;  %5646 = vmatprep.subr.bf16.mxu1 %v6488_v40 }
 0x80f   :  { %5648 = vmatpush3.bf16.msra.mxu1 %v7216_v3 }
 0x810   :  { %5613 = vmatpush1.bf16.msra.mxu0 %v7166_v33  ;;  %5649 = vmatprep.subr.bf16.mxu1 %v6488_v40 }
 0x811   :  { %5615 = vmatprep.subr.bf16.mxu0 %v7170_v46 }
 0x813   :  { %5651 = vmatpush3.bf16.msra.mxu1 %v7220_v28 }
 0x814   :  { %5617 = vmatpush1.bf16.msra.mxu0 %v7172_v24  ;;  %5652 = vmatprep.subr.bf16.mxu1 %v6488_v40 }
 0x815   :  { %5619 = vmatprep.subr.bf16.mxu0 %v7176_v61 }
 0x817   :  { %5654 = vmatpush3.bf16.msra.mxu1 %v7224_v55 }
 0x818   :  { %5621 = vmatpush1.bf16.msra.mxu0 %v7178_v9  ;;  %5655 = vmatprep.subr.bf16.mxu1 %v6488_v40 }
 0x819   :  { %5623 = vmatprep.subr.bf16.mxu0 %v7182_v30 }
 0x81b   :  { %5657 = vmatpush3.bf16.msra.mxu1 %v7228_v51 }
 0x81c   :  { %5625 = vmatpush1.bf16.msra.mxu0 %v7184_v8  ;;  %5690 = vmatprep.subr.bf16.mxu1 %v6488_v40 }
 0x81d   :  { %5627 = vmatprep.subr.bf16.mxu0 %v7187_v38 }
 0x820   :  { %5629 = vmatpush1.bf16.msra.mxu0 %v7190_v34 }
 0x821   :  { %5631 = vmatprep.subr.bf16.mxu0 %v7198_v56 }
 0x824   :  { %5633 = vmatpush1.bf16.msra.mxu0 %v7200_v4 }
 0x825   :  { %5659 = vmatprep.subr.bf16.mxu0 %v7152_v52 }
 0x8a6   :  { %v2071_v5 = vpop.f32.mrb[14].mxu0  ;;  %v2142_v19 = vpop.f32.mrb[22].mxu1 }
 0x8a7   :  { %v6088_v39 = vadd.f32 %v2071_v5, %v6800_v1  ;;  %v2073_v12 = vpop.f32.mrb[15].mxu0  ;;  %v4666_v42 = vpop.f32.mrb[23].mxu1  ;;  %v2160_v62 = vadd.f32 %v6312_v25, %v2142_v19 }
 0x8a8   :  { %v6089_v16 = vadd.f32 %v2073_v12, %v6806_v11 }
 0x8a9   :  { %v3986_v10 = vmul.f32 -1.442695, %v6088_v39 }
 0x8aa   :  { %v3987_v57 = vmul.f32 -1.442695, %v6089_v16 }
 0x8ab   :  { %6222 = vpow2.f32 %v3986_v10 }
 0x8ac   :  { %6224 = vpow2.f32 %v3987_v57 }
 0x8b5   :  { %v6223_v31 = vpop.eup %6222 }
 0x8b6   :  { %v2150_v17 = vadd.f32 1.0, %v6223_v31  ;;  %v6225_v18 = vpop.eup %6224 }
 0x8b7   :  { %v2157_v54 = vadd.f32 1.0, %v6225_v18 }
 0x8b8   :  { %6226 = vrcp.f32 %v2150_v17 }
 0x8c2   :  { %v6227_v45 = vpop.eup %6226 }
 0x8c3   :  { %v2161_v2 = vmul.f32 %v6227_v45, %v2160_v62 }
 0x8c5   :  { %v2162_v1 = vadd.f32 %v2161_v2, %v6793_v59 }
 0x8c6   :  { %v7239_v15 = vpop.f32.mrb[24].mxu1 }
 0x8c7   :  { %6228 = vtanh.f32 %v2162_v1  ;;  %v7241_v11 = vpop.f32.mrb[25].mxu1 }
 0x8c8   :  { %6230 = vrcp.f32 %v2157_v54 }
 0x8ca   :  { %v7243_v20 = vpop.f32.mrb[26].mxu1 }
 0x8cb   :  { %v7245_v60 = vpop.f32.mrb[27].mxu1 }
 0x8ce   :  { %v7247_v49 = vpop.f32.mrb[28].mxu1 }
 0x8cf   :  { %v7249_v32 = vpop.f32.mrb[29].mxu1 }
 0x8d1   :  { %v6229_v22 = vpop.eup %6228 }
 0x8d2   :  { %v2164_v48 = vsub.f32 %v7125_v27, %v6229_v22  ;;  %v6231_v53 = vpop.eup %6230  ;;  %v2225_v27 = vld [vmem:[%s7626_s7] sm:$0x7] }
 0x8d3   :  { %v7301_v26 = vrot.slane %v2225_v27, %v181_v63  ;;  %v7306_v42 = vrot.slane %v2225_v27, %v185_v6  ;;  %v7312_v63 = vld [vmem:[%s7627_s8] ss:$0 sm:$0xff]  ;;  %v7316_v17 = vrot.slane %v2225_v27, %v189_v37 }
 0x8d4   :  { %v2165_v59 = vmul.f32 %v6231_v53, %v2164_v48 }
 0x8d5   :  { %v2422_v62 = vadd.f32 %v7241_v11, %v7316_v17 }
 0x8d6   :  { %v2166_v7 = vadd.f32 %v6229_v22, %v2165_v59 }
 0x8d8   :  { %2349 = vmatmul.mubr.f32.gmra.mrb[30].mxu0 %v2166_v7  ;;  %4709 = vmatmul.mubr.f32.gmra.mrb[30].mxu1 %v2166_v7 }
 0x8d9   :  { %2600 = vmatprep.mubr.f32.mxu0 %v6487_v0  ;;  %4743 = vmatprep.mubr.msk.f32.mxu1 %vm6489_vm0, %v6487_v0 }
 0x8dc   :  { %2601 = vmatmul.mubr.f32.vlgmr.msra.gmra.mrb[16].mxu0 %v6487_v0  ;;  %4744 = vmatmul.mubr.f32.vlgmr.msra.gmra.mrb[32].mxu1 %v6487_v0 }
 0x8dd   :  { %5661 = vmatpush1.bf16.msra.mxu0 %v7154_v43  ;;  %5692 = vmatpush3.bf16.msra.mxu1 %v7192_v35 }
 0x8de   :  { %5663 = vmatprep.subr.bf16.mxu0 %v7158_v41  ;;  %5693 = vmatprep.subr.bf16.mxu1 %v6488_v40 }
 0x8df   :  { %2771 = vmatprep.mubr.f32.mxu0 %v6487_v0  ;;  %4778 = vmatprep.mubr.msk.f32.mxu1 %vm6489_vm0, %v6487_v0 }
 0x8e1   :  { %5665 = vmatpush1.bf16.msra.mxu0 %v7160_v44  ;;  %5695 = vmatpush3.bf16.msra.mxu1 %v7203_v23 }
 0x8e2   :  { %5667 = vmatprep.subr.bf16.mxu0 %v7164_v14  ;;  %5696 = vmatprep.subr.bf16.mxu1 %v6488_v40 }
 0x8e5   :  { %5669 = vmatpush1.bf16.msra.mxu0 %v7166_v33  ;;  %5698 = vmatpush3.bf16.msra.mxu1 %v7209_v50 }
 0x8e6   :  { %5671 = vmatprep.subr.bf16.mxu0 %v7170_v46  ;;  %5699 = vmatprep.subr.bf16.mxu1 %v6488_v40 }
 0x8e9   :  { %5673 = vmatpush1.bf16.msra.mxu0 %v7172_v24  ;;  %5701 = vmatpush3.bf16.msra.mxu1 %v7212_v58 }
 0x8ea   :  { %5675 = vmatprep.subr.bf16.mxu0 %v7176_v61  ;;  %5702 = vmatprep.subr.bf16.mxu1 %v6488_v40 }
 0x8ed   :  { %5677 = vmatpush1.bf16.msra.mxu0 %v7178_v9  ;;  %5704 = vmatpush3.bf16.msra.mxu1 %v7216_v3 }
 0x8ee   :  { %5679 = vmatprep.subr.bf16.mxu0 %v7182_v30  ;;  %5705 = vmatprep.subr.bf16.mxu1 %v6488_v40 }
 0x8f1   :  { %5681 = vmatpush1.bf16.msra.mxu0 %v7184_v8  ;;  %5707 = vmatpush3.bf16.msra.mxu1 %v7220_v28 }
 0x8f2   :  { %5683 = vmatprep.subr.bf16.mxu0 %v7187_v38  ;;  %5708 = vmatprep.subr.bf16.mxu1 %v6488_v40 }
 0x8f5   :  { %5685 = vmatpush1.bf16.msra.mxu0 %v7190_v34  ;;  %5710 = vmatpush3.bf16.msra.mxu1 %v7224_v55 }
 0x8f6   :  { %5687 = vmatprep.subr.bf16.mxu0 %v7198_v56  ;;  %5711 = vmatprep.subr.bf16.mxu1 %v6488_v40 }
 0x8f9   :  { %5689 = vmatpush1.bf16.msra.mxu0 %v7200_v4  ;;  %5713 = vmatpush3.bf16.msra.mxu1 %v7228_v51 }
 0x8fa   :  { %5715 = vmatprep.subr.bf16.mxu0 %v7152_v52  ;;  %5746 = vmatprep.subr.bf16.mxu1 %v6488_v40 }
 0x9ab   :  { %v7295_v21 = vpop.f32.mrb[30].mxu1 }
 0x9ac   :  { %v7297_v47 = vpop.f32.mrb[31].mxu1 }
 0x9af   :  { %v2602_v13 = vpop.f32.mrb[16].mxu0  ;;  %v2673_v29 = vpop.f32.mrb[32].mxu1 }
 0x9b0   :  { %v6090_v5 = vadd.f32 %v2602_v13, %v7301_v26  ;;  %v2604_v19 = vpop.f32.mrb[17].mxu0  ;;  %v4745_v39 = vpop.f32.mrb[33].mxu1  ;;  %v2697_v18 = vadd.f32 %v7312_v63, %v2673_v29 }
 0x9b1   :  { %v6091_v10 = vadd.f32 %v2604_v19, %v7306_v42 }
 0x9b2   :  { %v3988_v12 = vmul.f32 -1.442695, %v6090_v5 }
 0x9b3   :  { %v3989_v16 = vmul.f32 -1.442695, %v6091_v10 }
 0x9b4   :  { %6232 = vpow2.f32 %v3988_v12 }
 0x9b5   :  { %6234 = vpow2.f32 %v3989_v16 }
 0x9be   :  { %v6233_v57 = vpop.eup %6232 }
 0x9bf   :  { %v2681_v31 = vadd.f32 1.0, %v6233_v57  ;;  %v6235_v6 = vpop.eup %6234  ;;  %v2427_v57 = vadd.f32 %v7239_v15, %v7316_v17 }
 0x9c0   :  { %v2688_v2 = vadd.f32 1.0, %v6235_v6 }
 0x9c1   :  { %6236 = vrcp.f32 %v2681_v31 }
 0x9cb   :  { %v6237_v25 = vpop.eup %6236 }
 0x9cc   :  { %v2698_v45 = vmul.f32 %v6237_v25, %v2697_v18 }
 0x9ce   :  { %v2699_v1 = vadd.f32 %v2698_v45, %v2422_v62 }
 0x9d0   :  { %6238 = vtanh.f32 %v2699_v1 }
 0x9d1   :  { %6240 = vrcp.f32 %v2688_v2 }
 0x9da   :  { %v6239_v54 = vpop.eup %6238 }
 0x9db   :  { %v2701_v22 = vsub.f32 0.0, %v6239_v54  ;;  %v6241_v48 = vpop.eup %6240 }
 0x9dd   :  { %v2702_v53 = vmul.f32 %v6241_v48, %v2701_v22 }
 0x9df   :  { %v7321_v59 = vadd.f32 %v6239_v54, %v2702_v53 }
 0x9e1   :  { %2772 = vmatmul.mubr.f32.vlgmr.msra.gmra.mrb[18].mxu0 %v7321_v59  ;;  %4779 = vmatmul.mubr.f32.vlgmr.msra.gmra.mrb[34].mxu1 %v7321_v59 }
 0x9e2   :  { %5717 = vmatpush1.bf16.msra.mxu0 %v7154_v43  ;;  %5748 = vmatpush3.bf16.msra.mxu1 %v7192_v35 }
 0x9e3   :  { %5719 = vmatprep.subr.bf16.mxu0 %v7158_v41  ;;  %5749 = vmatprep.subr.bf16.mxu1 %v6488_v40 }
 0x9e4   :  { %2936 = vmatprep.mubr.f32.mxu0 %v6487_v0  ;;  %4813 = vmatprep.mubr.msk.f32.mxu1 %vm6489_vm0, %v6487_v0 }
 0x9e6   :  { %5721 = vmatpush1.bf16.msra.mxu0 %v7160_v44  ;;  %5751 = vmatpush3.bf16.msra.mxu1 %v7203_v23 }
 0x9e7   :  { %5723 = vmatprep.subr.bf16.mxu0 %v7164_v14  ;;  %5752 = vmatprep.subr.bf16.mxu1 %v6488_v40 }
 0x9ea   :  { %5725 = vmatpush1.bf16.msra.mxu0 %v7166_v33  ;;  %5754 = vmatpush3.bf16.msra.mxu1 %v7209_v50 }
 0x9eb   :  { %5727 = vmatprep.subr.bf16.mxu0 %v7170_v46  ;;  %5755 = vmatprep.subr.bf16.mxu1 %v6488_v40 }
 0x9ee   :  { %5729 = vmatpush1.bf16.msra.mxu0 %v7172_v24  ;;  %5757 = vmatpush3.bf16.msra.mxu1 %v7212_v58 }
 0x9ef   :  { %5731 = vmatprep.subr.bf16.mxu0 %v7176_v61  ;;  %5758 = vmatprep.subr.bf16.mxu1 %v6488_v40 }
 0x9f2   :  { %5733 = vmatpush1.bf16.msra.mxu0 %v7178_v9  ;;  %5760 = vmatpush3.bf16.msra.mxu1 %v7216_v3 }
 0x9f3   :  { %5735 = vmatprep.subr.bf16.mxu0 %v7182_v30  ;;  %5761 = vmatprep.subr.bf16.mxu1 %v6488_v40 }
 0x9f6   :  { %5737 = vmatpush1.bf16.msra.mxu0 %v7184_v8  ;;  %5763 = vmatpush3.bf16.msra.mxu1 %v7220_v28 }
 0x9f7   :  { %5739 = vmatprep.subr.bf16.mxu0 %v7187_v38  ;;  %5764 = vmatprep.subr.bf16.mxu1 %v6488_v40 }
 0x9fa   :  { %5741 = vmatpush1.bf16.msra.mxu0 %v7190_v34  ;;  %5766 = vmatpush3.bf16.msra.mxu1 %v7224_v55 }
 0x9fb   :  { %5743 = vmatprep.subr.bf16.mxu0 %v7198_v56  ;;  %5767 = vmatprep.subr.bf16.mxu1 %v6488_v40 }
 0x9fe   :  { %5745 = vmatpush1.bf16.msra.mxu0 %v7200_v4  ;;  %5769 = vmatpush3.bf16.msra.mxu1 %v7228_v51 }
 0x9ff   :  { %5771 = vmatprep.subr.bf16.mxu0 %v7152_v52  ;;  %5802 = vmatprep.subr.bf16.mxu1 %v6488_v40 }
 0xab4   :  { %v2773_v36 = vpop.f32.mrb[18].mxu0  ;;  %v2844_v37 = vpop.f32.mrb[34].mxu1 }
 0xab5   :  { %v6092_v11 = vadd.f32 %v2773_v36, %v7301_v26  ;;  %v2775_v7 = vpop.f32.mrb[19].mxu0  ;;  %v4780_v27 = vpop.f32.mrb[35].mxu1  ;;  %v2862_v10 = vadd.f32 %v7312_v63, %v2844_v37 }
 0xab6   :  { %v6093_v29 = vadd.f32 %v2775_v7, %v7306_v42 }
 0xab7   :  { %v3991_v13 = vmul.f32 -1.442695, %v6092_v11 }
 0xab8   :  { %v3992_v5 = vmul.f32 -1.442695, %v6093_v29 }
 0xab9   :  { %6242 = vpow2.f32 %v3991_v13 }
 0xaba   :  { %6244 = vpow2.f32 %v3992_v5  ;;  %v2432_v5 = vadd.f32 %v7245_v60, %v7316_v17 }
 0xac3   :  { %v6243_v19 = vpop.eup %6242 }
 0xac4   :  { %v2852_v39 = vadd.f32 1.0, %v6243_v19  ;;  %v6245_v12 = vpop.eup %6244 }
 0xac5   :  { %v2859_v6 = vadd.f32 1.0, %v6245_v12 }
 0xac6   :  { %6246 = vrcp.f32 %v2852_v39 }
 0xad0   :  { %v6247_v16 = vpop.eup %6246 }
 0xad1   :  { %v2863_v31 = vmul.f32 %v6247_v16, %v2862_v10 }
 0xad3   :  { %v2864_v18 = vadd.f32 %v2863_v31, %v2427_v57 }
 0xad5   :  { %6248 = vtanh.f32 %v2864_v18 }
 0xad6   :  { %6250 = vrcp.f32 %v2859_v6 }
 0xadf   :  { %v6249_v25 = vpop.eup %6248 }
 0xae0   :  { %v2866_v62 = vsub.f32 %v7321_v59, %v6249_v25  ;;  %v6251_v45 = vpop.eup %6250 }
 0xae2   :  { %v2867_v2 = vmul.f32 %v6251_v45, %v2866_v62 }
 0xae4   :  { %v7366_v1 = vadd.f32 %v6249_v25, %v2867_v2 }
 0xae6   :  { %2937 = vmatmul.mubr.f32.vlgmr.msra.gmra.mrb[20].mxu0 %v7366_v1  ;;  %4814 = vmatmul.mubr.f32.vlgmr.msra.gmra.mrb[36].mxu1 %v7366_v1 }
 0xae7   :  { %5773 = vmatpush1.bf16.msra.mxu0 %v7154_v43  ;;  %5804 = vmatpush3.bf16.msra.mxu1 %v7192_v35 }
 0xae8   :  { %5775 = vmatprep.subr.bf16.mxu0 %v7158_v41  ;;  %5805 = vmatprep.subr.bf16.mxu1 %v6488_v40 }
 0xae9   :  { %3101 = vmatprep.mubr.f32.mxu0 %v6487_v0  ;;  %4848 = vmatprep.mubr.msk.f32.mxu1 %vm6489_vm0, %v6487_v0 }
 0xaeb   :  { %5777 = vmatpush1.bf16.msra.mxu0 %v7160_v44  ;;  %5807 = vmatpush3.bf16.msra.mxu1 %v7203_v23 }
 0xaec   :  { %5779 = vmatprep.subr.bf16.mxu0 %v7164_v14  ;;  %5808 = vmatprep.subr.bf16.mxu1 %v6488_v40 }
 0xaef   :  { %5781 = vmatpush1.bf16.msra.mxu0 %v7166_v33  ;;  %5810 = vmatpush3.bf16.msra.mxu1 %v7209_v50 }
 0xaf0   :  { %5783 = vmatprep.subr.bf16.mxu0 %v7170_v46  ;;  %5811 = vmatprep.subr.bf16.mxu1 %v6488_v40 }
 0xaf3   :  { %5785 = vmatpush1.bf16.msra.mxu0 %v7172_v24  ;;  %5813 = vmatpush3.bf16.msra.mxu1 %v7212_v58 }
 0xaf4   :  { %5787 = vmatprep.subr.bf16.mxu0 %v7176_v61  ;;  %5814 = vmatprep.subr.bf16.mxu1 %v6488_v40 }
 0xaf7   :  { %5789 = vmatpush1.bf16.msra.mxu0 %v7178_v9  ;;  %5816 = vmatpush3.bf16.msra.mxu1 %v7216_v3 }
 0xaf8   :  { %5791 = vmatprep.subr.bf16.mxu0 %v7182_v30  ;;  %5817 = vmatprep.subr.bf16.mxu1 %v6488_v40 }
 0xafb   :  { %5793 = vmatpush1.bf16.msra.mxu0 %v7184_v8  ;;  %5819 = vmatpush3.bf16.msra.mxu1 %v7220_v28 }
 0xafc   :  { %5795 = vmatprep.subr.bf16.mxu0 %v7187_v38  ;;  %5820 = vmatprep.subr.bf16.mxu1 %v6488_v40 }
 0xaff   :  { %5797 = vmatpush1.bf16.msra.mxu0 %v7190_v34  ;;  %5822 = vmatpush3.bf16.msra.mxu1 %v7224_v55 }
 0xb00   :  { %5799 = vmatprep.subr.bf16.mxu0 %v7198_v56  ;;  %5823 = vmatprep.subr.bf16.mxu1 %v6488_v40 }
 0xb03   :  { %5801 = vmatpush1.bf16.msra.mxu0 %v7200_v4  ;;  %5825 = vmatpush3.bf16.msra.mxu1 %v7228_v51 }
 0xb04   :  { %5827 = vmatprep.subr.bf16.mxu0 %v7152_v52  ;;  %5858 = vmatprep.subr.bf16.mxu1 %v6488_v40 }
 0xbb9   :  { %v2938_v15 = vpop.f32.mrb[20].mxu0  ;;  %v3009_v54 = vpop.f32.mrb[36].mxu1 }
 0xbba   :  { %v6094_v22 = vadd.f32 %v2938_v15, %v7301_v26  ;;  %v2940_v48 = vpop.f32.mrb[21].mxu0  ;;  %v4815_v53 = vpop.f32.mrb[37].mxu1  ;;  %v3027_v13 = vadd.f32 %v7312_v63, %v3009_v54 }
 0xbbb   :  { %v6095_v36 = vadd.f32 %v2940_v48, %v7306_v42 }
 0xbbc   :  { %v3993_v59 = vmul.f32 -1.442695, %v6094_v22 }
 0xbbd   :  { %v3994_v37 = vmul.f32 -1.442695, %v6095_v36  ;;  %v2437_v36 = vadd.f32 %v7243_v20, %v7316_v17 }
 0xbbe   :  { %6252 = vpow2.f32 %v3993_v59 }
 0xbbf   :  { %6254 = vpow2.f32 %v3994_v37 }
 0xbc8   :  { %v6253_v11 = vpop.eup %6252 }
 0xbc9   :  { %v3017_v7 = vadd.f32 1.0, %v6253_v11  ;;  %v6255_v27 = vpop.eup %6254 }
 0xbca   :  { %v3024_v12 = vadd.f32 1.0, %v6255_v27 }
 0xbcb   :  { %6256 = vrcp.f32 %v3017_v7 }
 0xbd5   :  { %v6257_v29 = vpop.eup %6256 }
 0xbd6   :  { %v3028_v19 = vmul.f32 %v6257_v29, %v3027_v13 }
 0xbd8   :  { %v3029_v39 = vadd.f32 %v3028_v19, %v2432_v5 }
 0xbda   :  { %6258 = vtanh.f32 %v3029_v39 }
 0xbdb   :  { %6260 = vrcp.f32 %v3024_v12 }
 0xbe4   :  { %v6259_v10 = vpop.eup %6258 }
 0xbe5   :  { %v3031_v16 = vsub.f32 %v7366_v1, %v6259_v10  ;;  %v6261_v57 = vpop.eup %6260 }
 0xbe7   :  { %v3032_v31 = vmul.f32 %v6261_v57, %v3031_v16 }
 0xbe9   :  { %v7411_v18 = vadd.f32 %v6259_v10, %v3032_v31 }
 0xbeb   :  { %3102 = vmatmul.mubr.f32.vlgmr.msra.gmra.mrb[22].mxu0 %v7411_v18  ;;  %4849 = vmatmul.mubr.f32.vlgmr.msra.gmra.mrb[38].mxu1 %v7411_v18 }
 0xbec   :  { %5829 = vmatpush1.bf16.msra.mxu0 %v7154_v43  ;;  %5860 = vmatpush3.bf16.msra.mxu1 %v7192_v35 }
 0xbed   :  { %5831 = vmatprep.subr.bf16.mxu0 %v7158_v41  ;;  %5861 = vmatprep.subr.bf16.mxu1 %v6488_v40 }
 0xbee   :  { %3266 = vmatprep.mubr.f32.mxu0 %v6487_v0  ;;  %4883 = vmatprep.mubr.msk.f32.mxu1 %vm6489_vm0, %v6487_v0 }
 0xbf0   :  { %5833 = vmatpush1.bf16.msra.mxu0 %v7160_v44  ;;  %5863 = vmatpush3.bf16.msra.mxu1 %v7203_v23 }
 0xbf1   :  { %5835 = vmatprep.subr.bf16.mxu0 %v7164_v14  ;;  %5864 = vmatprep.subr.bf16.mxu1 %v6488_v40 }
 0xbf4   :  { %5837 = vmatpush1.bf16.msra.mxu0 %v7166_v33  ;;  %5866 = vmatpush3.bf16.msra.mxu1 %v7209_v50 }
 0xbf5   :  { %5839 = vmatprep.subr.bf16.mxu0 %v7170_v46  ;;  %5867 = vmatprep.subr.bf16.mxu1 %v6488_v40 }
 0xbf8   :  { %5841 = vmatpush1.bf16.msra.mxu0 %v7172_v24  ;;  %5869 = vmatpush3.bf16.msra.mxu1 %v7212_v58 }
 0xbf9   :  { %5843 = vmatprep.subr.bf16.mxu0 %v7176_v61  ;;  %5870 = vmatprep.subr.bf16.mxu1 %v6488_v40 }
 0xbfc   :  { %5845 = vmatpush1.bf16.msra.mxu0 %v7178_v9  ;;  %5872 = vmatpush3.bf16.msra.mxu1 %v7216_v3 }
 0xbfd   :  { %5847 = vmatprep.subr.bf16.mxu0 %v7182_v30  ;;  %5873 = vmatprep.subr.bf16.mxu1 %v6488_v40 }
 0xc00   :  { %5849 = vmatpush1.bf16.msra.mxu0 %v7184_v8  ;;  %5875 = vmatpush3.bf16.msra.mxu1 %v7220_v28 }
 0xc01   :  { %5851 = vmatprep.subr.bf16.mxu0 %v7187_v38  ;;  %5876 = vmatprep.subr.bf16.mxu1 %v6488_v40 }
 0xc04   :  { %5853 = vmatpush1.bf16.msra.mxu0 %v7190_v34  ;;  %5878 = vmatpush3.bf16.msra.mxu1 %v7224_v55 }
 0xc05   :  { %5855 = vmatprep.subr.bf16.mxu0 %v7198_v56  ;;  %5879 = vmatprep.subr.bf16.mxu1 %v6488_v40 }
 0xc08   :  { %5857 = vmatpush1.bf16.msra.mxu0 %v7200_v4  ;;  %5881 = vmatpush3.bf16.msra.mxu1 %v7228_v51 }
 0xc09   :  { %5883 = vmatprep.subr.bf16.mxu0 %v7152_v52  ;;  %5914 = vmatprep.subr.bf16.mxu1 %v6488_v40 }
 0xcbe   :  { %v3103_v60 = vpop.f32.mrb[22].mxu0  ;;  %v3174_v6 = vpop.f32.mrb[38].mxu1 }
 0xcbf   :  { %v6096_v25 = vadd.f32 %v3103_v60, %v7301_v26  ;;  %v3105_v62 = vpop.f32.mrb[23].mxu0  ;;  %v4850_v45 = vpop.f32.mrb[39].mxu1  ;;  %v3192_v53 = vadd.f32 %v7312_v63, %v3174_v6 }
 0xcc0   :  { %v6097_v1 = vadd.f32 %v3105_v62, %v7306_v42 }
 0xcc1   :  { %v3995_v2 = vmul.f32 -1.442695, %v6096_v25 }
 0xcc2   :  { %v3996_v15 = vmul.f32 -1.442695, %v6097_v1 }
 0xcc3   :  { %6262 = vpow2.f32 %v3995_v2  ;;  %v2442_v2 = vadd.f32 %v7249_v32, %v7316_v17 }
 0xcc4   :  { %6264 = vpow2.f32 %v3996_v15 }
 0xccd   :  { %v6263_v54 = vpop.eup %6262 }
 0xcce   :  { %v3182_v22 = vadd.f32 1.0, %v6263_v54  ;;  %v6265_v48 = vpop.eup %6264 }
 0xccf   :  { %v3189_v7 = vadd.f32 1.0, %v6265_v48 }
 0xcd0   :  { %6266 = vrcp.f32 %v3182_v22 }
 0xcda   :  { %v6267_v59 = vpop.eup %6266 }
 0xcdb   :  { %v3193_v37 = vmul.f32 %v6267_v59, %v3192_v53 }
 0xcdd   :  { %v3194_v11 = vadd.f32 %v3193_v37, %v2437_v36 }
 0xcdf   :  { %6268 = vtanh.f32 %v3194_v11 }
 0xce0   :  { %6270 = vrcp.f32 %v3189_v7 }
 0xce9   :  { %v6269_v27 = vpop.eup %6268 }
 0xcea   :  { %v3196_v13 = vsub.f32 %v7411_v18, %v6269_v27  ;;  %v6271_v29 = vpop.eup %6270 }
 0xcec   :  { %v3197_v5 = vmul.f32 %v6271_v29, %v3196_v13 }
 0xcee   :  { %v7456_v19 = vadd.f32 %v6269_v27, %v3197_v5 }
 0xcf0   :  { %3267 = vmatmul.mubr.f32.vlgmr.msra.gmra.mrb[24].mxu0 %v7456_v19  ;;  %4884 = vmatmul.mubr.f32.vlgmr.msra.gmra.mrb[40].mxu1 %v7456_v19 }
 0xcf1   :  { %5885 = vmatpush1.bf16.msra.mxu0 %v7154_v43  ;;  %5916 = vmatpush3.bf16.msra.mxu1 %v7192_v35 }
 0xcf2   :  { %5887 = vmatprep.subr.bf16.mxu0 %v7158_v41  ;;  %5917 = vmatprep.subr.bf16.mxu1 %v6488_v40 }
 0xcf3   :  { %3431 = vmatprep.mubr.f32.mxu0 %v6487_v0  ;;  %4918 = vmatprep.mubr.msk.f32.mxu1 %vm6489_vm0, %v6487_v0 }
 0xcf5   :  { %5889 = vmatpush1.bf16.msra.mxu0 %v7160_v44  ;;  %5919 = vmatpush3.bf16.msra.mxu1 %v7203_v23 }
 0xcf6   :  { %5891 = vmatprep.subr.bf16.mxu0 %v7164_v14  ;;  %5920 = vmatprep.subr.bf16.mxu1 %v6488_v40 }
 0xcf9   :  { %5893 = vmatpush1.bf16.msra.mxu0 %v7166_v33  ;;  %5922 = vmatpush3.bf16.msra.mxu1 %v7209_v50 }
 0xcfa   :  { %5895 = vmatprep.subr.bf16.mxu0 %v7170_v46  ;;  %5923 = vmatprep.subr.bf16.mxu1 %v6488_v40 }
 0xcfd   :  { %5897 = vmatpush1.bf16.msra.mxu0 %v7172_v24  ;;  %5925 = vmatpush3.bf16.msra.mxu1 %v7212_v58 }
 0xcfe   :  { %5899 = vmatprep.subr.bf16.mxu0 %v7176_v61  ;;  %5926 = vmatprep.subr.bf16.mxu1 %v6488_v40 }
 0xd01   :  { %5901 = vmatpush1.bf16.msra.mxu0 %v7178_v9  ;;  %5928 = vmatpush3.bf16.msra.mxu1 %v7216_v3 }
 0xd02   :  { %5903 = vmatprep.subr.bf16.mxu0 %v7182_v30  ;;  %5929 = vmatprep.subr.bf16.mxu1 %v6488_v40 }
 0xd05   :  { %5905 = vmatpush1.bf16.msra.mxu0 %v7184_v8  ;;  %5931 = vmatpush3.bf16.msra.mxu1 %v7220_v28 }
 0xd06   :  { %5907 = vmatprep.subr.bf16.mxu0 %v7187_v38  ;;  %5932 = vmatprep.subr.bf16.mxu1 %v6488_v40 }
 0xd09   :  { %5909 = vmatpush1.bf16.msra.mxu0 %v7190_v34  ;;  %5934 = vmatpush3.bf16.msra.mxu1 %v7224_v55 }
 0xd0a   :  { %5911 = vmatprep.subr.bf16.mxu0 %v7198_v56  ;;  %5935 = vmatprep.subr.bf16.mxu1 %v6488_v40 }
 0xd0d   :  { %5913 = vmatpush1.bf16.msra.mxu0 %v7200_v4  ;;  %5937 = vmatpush3.bf16.msra.mxu1 %v7228_v51 }
 0xd0e   :  { %5939 = vmatprep.subr.bf16.mxu0 %v7152_v52  ;;  %5970 = vmatprep.subr.bf16.mxu1 %v6488_v40 }
 0xdc3   :  { %v3268_v20 = vpop.f32.mrb[24].mxu0  ;;  %v3339_v39 = vpop.f32.mrb[40].mxu1 }
 0xdc4   :  { %v6098_v12 = vadd.f32 %v3268_v20, %v7301_v26  ;;  %v3270_v10 = vpop.f32.mrb[25].mxu0  ;;  %v4885_v16 = vpop.f32.mrb[41].mxu1  ;;  %v3357_v62 = vadd.f32 %v7312_v63, %v3339_v39 }
 0xdc5   :  { %v6099_v31 = vadd.f32 %v3270_v10, %v7306_v42  ;;  %v2447_v10 = vadd.f32 %v7247_v49, %v7316_v17  ;;  %v3860_v49 = vld [vmem:[#allocation13 + $0x8] sm:$0xff] }
 0xdc6   :  { %v3997_v57 = vmul.f32 -1.442695, %v6098_v12 }
 0xdc7   :  { %v3998_v18 = vmul.f32 -1.442695, %v6099_v31 }
 0xdc8   :  { %6272 = vpow2.f32 %v3997_v57 }
 0xdc9   :  { %6274 = vpow2.f32 %v3998_v18 }
 0xdd2   :  { %v6273_v60 = vpop.eup %6272 }
 0xdd3   :  { %v3347_v6 = vadd.f32 1.0, %v6273_v60  ;;  %v6275_v25 = vpop.eup %6274 }
 0xdd4   :  { %v3354_v54 = vadd.f32 1.0, %v6275_v25 }
 0xdd5   :  { %6276 = vrcp.f32 %v3347_v6 }
 0xddf   :  { %v6277_v45 = vpop.eup %6276 }
 0xde0   :  { %v3358_v1 = vmul.f32 %v6277_v45, %v3357_v62  ;;  %v3861_v45 = vld [vmem:[#allocation13 + $0x10] sm:$0xff] }
 0xde2   :  { %v3359_v15 = vadd.f32 %v3358_v1, %v2442_v2  ;;  %v3862_v2 = vld [vmem:[#allocation13 + $0x18] sm:$0xff] }
 0xde3   :  { %v6054_v1 = vpack.c.bf16 %v3862_v2, %v3861_v45 }
 0xde4   :  { %6278 = vtanh.f32 %v3359_v15  ;;  %v3863_v15 = vld [vmem:[#allocation13 + $0x20] sm:$0xff] }
 0xde5   :  { %6280 = vrcp.f32 %v3354_v54  ;;  %v3864_v54 = vld [vmem:[#allocation13 + $0x28] sm:$0xff] }
 0xdee   :  { %v6279_v22 = vpop.eup %6278 }
 0xdef   :  { %v3361_v48 = vsub.f32 %v7456_v19, %v6279_v22  ;;  %v6281_v53 = vpop.eup %6280 }
 0xdf1   :  { %v3362_v59 = vmul.f32 %v6281_v53, %v3361_v48  ;;  %v3865_v48 = vld [vmem:[#allocation13 + $0x30] sm:$0xff] }
 0xdf3   :  { %v7501_v36 = vadd.f32 %v6279_v22, %v3362_v59  ;;  %v6057_v22 = vpack.c.bf16 %v3864_v54, %v3863_v15  ;;  %v3867_v59 = vld [vmem:[#allocation13 + $0x40] sm:$0xff] }
 0xdf5   :  { %3432 = vmatmul.mubr.f32.vlgmr.msra.gmra.mrb[26].mxu0 %v7501_v36  ;;  %4919 = vmatmul.mubr.f32.vlgmr.msra.gmra.mrb[42].mxu1 %v7501_v36 }
 0xdf6   :  { %5941 = vmatpush1.bf16.msra.mxu0 %v7154_v43  ;;  %5972 = vmatpush3.bf16.msra.mxu1 %v7192_v35 }
 0xdf7   :  { %5943 = vmatprep.subr.bf16.mxu0 %v7158_v41  ;;  %5973 = vmatprep.subr.bf16.mxu1 %v6488_v40 }
 0xdf8   :  { %3596 = vmatprep.mubr.f32.mxu0 %v6487_v0  ;;  %4953 = vmatprep.mubr.msk.f32.mxu1 %vm6489_vm0, %v6487_v0 }
 0xdfa   :  { %5945 = vmatpush1.bf16.msra.mxu0 %v7160_v44  ;;  %5975 = vmatpush3.bf16.msra.mxu1 %v7203_v23 }
 0xdfb   :  { %5947 = vmatprep.subr.bf16.mxu0 %v7164_v14  ;;  %5976 = vmatprep.subr.bf16.mxu1 %v6488_v40 }
 0xdfe   :  { %5949 = vmatpush1.bf16.msra.mxu0 %v7166_v33  ;;  %5978 = vmatpush3.bf16.msra.mxu1 %v7209_v50 }
 0xdff   :  { %5951 = vmatprep.subr.bf16.mxu0 %v7170_v46  ;;  %5979 = vmatprep.subr.bf16.mxu1 %v6488_v40 }
 0xe02   :  { %5953 = vmatpush1.bf16.msra.mxu0 %v7172_v24  ;;  %5981 = vmatpush3.bf16.msra.mxu1 %v7212_v58 }
 0xe03   :  { %5955 = vmatprep.subr.bf16.mxu0 %v7176_v61  ;;  %5982 = vmatprep.subr.bf16.mxu1 %v6488_v40 }
 0xe06   :  { %5957 = vmatpush1.bf16.msra.mxu0 %v7178_v9  ;;  %5984 = vmatpush3.bf16.msra.mxu1 %v7216_v3 }
 0xe07   :  { %5959 = vmatprep.subr.bf16.mxu0 %v7182_v30  ;;  %5985 = vmatprep.subr.bf16.mxu1 %v6488_v40 }
 0xe0a   :  { %5961 = vmatpush1.bf16.msra.mxu0 %v7184_v8  ;;  %5987 = vmatpush3.bf16.msra.mxu1 %v7220_v28 }
 0xe0b   :  { %5963 = vmatprep.subr.bf16.mxu0 %v7187_v38  ;;  %5988 = vmatprep.subr.bf16.mxu1 %v6488_v40 }
 0xe0e   :  { %5965 = vmatpush1.bf16.msra.mxu0 %v7190_v34  ;;  %5990 = vmatpush3.bf16.msra.mxu1 %v7224_v55 }
 0xe0f   :  { %5967 = vmatprep.subr.bf16.mxu0 %v7198_v56  ;;  %5991 = vmatprep.subr.bf16.mxu1 %v6488_v40 }
 0xe12   :  { %5969 = vmatpush1.bf16.msra.mxu0 %v7200_v4  ;;  %5993 = vmatpush3.bf16.msra.mxu1 %v7228_v51 }
 0xe13   :  { %5995 = vmatprep.subr.bf16.mxu0 %v7152_v52  ;;  %6026 = vmatprep.subr.bf16.mxu1 %v6488_v40 }
 0xec8   :  { %v3433_v32 = vpop.f32.mrb[26].mxu0  ;;  %v3504_v37 = vpop.f32.mrb[42].mxu1 }
 0xec9   :  { %v6100_v11 = vadd.f32 %v3433_v32, %v7301_v26  ;;  %v3435_v7 = vpop.f32.mrb[27].mxu0  ;;  %v4920_v27 = vpop.f32.mrb[43].mxu1  ;;  %v3522_v52 = vadd.f32 %v7312_v63, %v3504_v37  ;;  %v3869_v32 = vld [vmem:[#allocation13 + $0x50] sm:$0xff] }
 0xeca   :  { %v6101_v29 = vadd.f32 %v3435_v7, %v7306_v42  ;;  %v3871_v27 = vld [vmem:[#allocation13 + $0x60] sm:$0xff] }
 0xecb   :  { %v3999_v13 = vmul.f32 -1.442695, %v6100_v11  ;;  %v3870_v11 = vld [vmem:[#allocation13 + $0x58] sm:$0xff] }
 0xecc   :  { %v4000_v5 = vmul.f32 -1.442695, %v6101_v29  ;;  %v6066_v7 = vpack.c.bf16 %v3870_v11, %v3869_v32 }
 0xecd   :  { %6282 = vpow2.f32 %v3999_v13  ;;  %v3872_v13 = vld [vmem:[#allocation13 + $0x68] sm:$0xff] }
 0xece   :  { %6284 = vpow2.f32 %v4000_v5  ;;  %v6069_v29 = vpack.c.bf16 %v3872_v13, %v3871_v27  ;;  %v3873_v5 = vld [vmem:[#allocation13 + $0x70] sm:$0xff] }
 0xed7   :  { %v6283_v19 = vpop.eup %6282 }
 0xed8   :  { %v3512_v20 = vadd.f32 1.0, %v6283_v19  ;;  %v6285_v39 = vpop.eup %6284  ;;  %v3874_v19 = vld [vmem:[#allocation13 + $0x78] sm:$0xff] }
 0xed9   :  { %v3519_v31 = vadd.f32 1.0, %v6285_v39 }
 0xeda   :  { %6286 = vrcp.f32 %v3512_v20  ;;  %v6072_v20 = vpack.c.bf16 %v3874_v19, %v3873_v5 }
 0xee4   :  { %v6287_v12 = vpop.eup %6286 }
 0xee5   :  { %v3523_v16 = vmul.f32 %v6287_v12, %v3522_v52 }
 0xee7   :  { %v3524_v57 = vadd.f32 %v3523_v16, %v2447_v10 }
 0xee9   :  { %6288 = vtanh.f32 %v3524_v57 }
 0xeea   :  { %6290 = vrcp.f32 %v3519_v31 }
 0xef3   :  { %v6289_v18 = vpop.eup %6288 }
 0xef4   :  { %v3526_v60 = vsub.f32 %v7501_v36, %v6289_v18  ;;  %v6291_v6 = vpop.eup %6290  ;;  %v3868_v36 = vld [vmem:[#allocation13 + $0x48] sm:$0xff] }
 0xef5   :  { %v6063_v37 = vpack.c.bf16 %v3868_v36, %v3867_v59 }
 0xef6   :  { %v3527_v25 = vmul.f32 %v6291_v6, %v3526_v60 }
 0xef8   :  { %v3528_v62 = vadd.f32 %v6289_v18, %v3527_v25 }
 0xefa   :  { %3597 = vmatmul.mubr.f32.vlgmr.msra.gmra.mrb[28].mxu0 %v3528_v62  ;;  %4954 = vmatmul.mubr.f32.vlgmr.msra.gmra.mrb[44].mxu1 %v3528_v62 }
 0xefb   :  { %5997 = vmatpush1.bf16.msra.mxu0 %v7154_v43  ;;  %6028 = vmatpush3.bf16.msra.mxu1 %v7192_v35  ;;  %v2452_v35 = vadd.f32 %v7297_v47, %v7316_v17 }
 0xefc   :  { %5999 = vmatprep.subr.bf16.mxu0 %v7158_v41  ;;  %6029 = vmatprep.subr.bf16.mxu1 %v6488_v40 }
 0xefd   :  { %3761 = vmatprep.mubr.f32.mxu0 %v6487_v0  ;;  %4988 = vmatprep.mubr.msk.f32.mxu1 %vm6489_vm0, %v6487_v0 }
 0xeff   :  { %6001 = vmatpush1.bf16.msra.mxu0 %v7160_v44  ;;  %6031 = vmatpush3.bf16.msra.mxu1 %v7203_v23 }
 0xf00   :  { %6003 = vmatprep.subr.bf16.mxu0 %v7164_v14  ;;  %6032 = vmatprep.subr.bf16.mxu1 %v6488_v40 }
 0xf03   :  { %6005 = vmatpush1.bf16.msra.mxu0 %v7166_v33  ;;  %6034 = vmatpush3.bf16.msra.mxu1 %v7209_v50 }
 0xf04   :  { %6007 = vmatprep.subr.bf16.mxu0 %v7170_v46  ;;  %6035 = vmatprep.subr.bf16.mxu1 %v6488_v40 }
 0xf07   :  { %6009 = vmatpush1.bf16.msra.mxu0 %v7172_v24  ;;  %6037 = vmatpush3.bf16.msra.mxu1 %v7212_v58 }
 0xf08   :  { %6011 = vmatprep.subr.bf16.mxu0 %v7176_v61  ;;  %6038 = vmatprep.subr.bf16.mxu1 %v6488_v40 }
 0xf0b   :  { %6013 = vmatpush1.bf16.msra.mxu0 %v7178_v9  ;;  %6040 = vmatpush3.bf16.msra.mxu1 %v7216_v3 }
 0xf0c   :  { %6015 = vmatprep.subr.bf16.mxu0 %v7182_v30  ;;  %6041 = vmatprep.subr.bf16.mxu1 %v6488_v40 }
 0xf0f   :  { %6017 = vmatpush1.bf16.msra.mxu0 %v7184_v8  ;;  %6043 = vmatpush3.bf16.msra.mxu1 %v7220_v28 }
 0xf10   :  { %6019 = vmatprep.subr.bf16.mxu0 %v7187_v38  ;;  %6044 = vmatprep.subr.bf16.mxu1 %v6488_v40 }
 0xf13   :  { %6021 = vmatpush1.bf16.msra.mxu0 %v7190_v34  ;;  %6046 = vmatpush3.bf16.msra.mxu1 %v7224_v55 }
 0xf14   :  { %6023 = vmatprep.subr.bf16.mxu0 %v7198_v56  ;;  %6047 = vmatprep.subr.bf16.mxu1 %v6488_v40 }
 0xf17   :  { %6025 = vmatpush1.bf16.msra.mxu0 %v7200_v4  ;;  %6049 = vmatpush3.bf16.msra.mxu1 %v7228_v51  ;;  %v3859_v51 = vld [vmem:[#allocation13] sm:$0xff] }
 0xf18   :  { %6050 = vmatprep.subr.bf16.mxu0 %v6488_v40  ;;  %v6051_v47 = vpack.c.bf16 %v3860_v49, %v3859_v51 }
 0xfcd   :  { %v3598_v43 = vpop.f32.mrb[28].mxu0  ;;  %v3669_v41 = vpop.f32.mrb[44].mxu1 }
 0xfce   :  { %v6102_v44 = vadd.f32 %v3598_v43, %v7301_v26  ;;  %v3600_v14 = vpop.f32.mrb[29].mxu0  ;;  %v4955_v33 = vpop.f32.mrb[45].mxu1  ;;  %v3687_v38 = vadd.f32 %v7312_v63, %v3669_v41  ;;  %v2457_v43 = vadd.f32 %v7295_v21, %v7316_v17 }
 0xfcf   :  { %v6103_v24 = vadd.f32 %v3600_v14, %v7306_v42 }
 0xfd0   :  { %v4001_v46 = vmul.f32 -1.442695, %v6102_v44 }
 0xfd1   :  { %v4002_v61 = vmul.f32 -1.442695, %v6103_v24 }
 0xfd2   :  { %6292 = vpow2.f32 %v4001_v46 }
 0xfd3   :  { %6294 = vpow2.f32 %v4002_v61 }
 0xfdc   :  { %v6293_v9 = vpop.eup %6292 }
 0xfdd   :  { %v3677_v30 = vadd.f32 1.0, %v6293_v9  ;;  %v6295_v8 = vpop.eup %6294 }
 0xfde   :  { %v3684_v23 = vadd.f32 1.0, %v6295_v8 }
 0xfdf   :  { %6296 = vrcp.f32 %v3677_v30 }
 0xfe9   :  { %v6297_v34 = vpop.eup %6296 }
 0xfea   :  { %v3688_v56 = vmul.f32 %v6297_v34, %v3687_v38 }
 0xfec   :  { %v3689_v4 = vadd.f32 %v3688_v56, %v2452_v35 }
 0xfee   :  { %6298 = vtanh.f32 %v3689_v4 }
 0xfef   :  { %6300 = vrcp.f32 %v3684_v23 }
 0xff8   :  { %v6299_v50 = vpop.eup %6298 }
 0xff9   :  { %v3691_v58 = vsub.f32 %v3528_v62, %v6299_v50  ;;  %v6301_v3 = vpop.eup %6300 }
 0xffb   :  { %v3692_v28 = vmul.f32 %v6301_v3, %v3691_v58 }
 0xffd   :  { %v7585_v55 = vadd.f32 %v6299_v50, %v3692_v28 }
 0xfff   :  { %3762 = vmatmul.mubr.f32.vlgmr.msra.gmra.mrb[30].mxu0 %v7585_v55  ;;  %4989 = vmatmul.mubr.f32.vlgmr.msra.gmra.mrb[46].mxu1 %v7585_v55 }
0x1000   :  { %5023 = vmatprep.mubr.msk.f32.mxu0 %vm6489_vm0, %v6487_v0  ;;  %6052 = vmatpush3.bf16.msra.mxu0 %v6051_v47  ;;  %v3866_v0 = vld [vmem:[#allocation13 + $0x38] sm:$0xff] }
0x1001   :  { %6053 = vmatprep.subr.bf16.mxu0 %v6488_v40  ;;  %v6060_v53 = vpack.c.bf16 %v3866_v0, %v3865_v48 }
0x1004   :  { %6055 = vmatpush3.bf16.msra.mxu0 %v6054_v1 }
0x1005   :  { %6056 = vmatprep.subr.bf16.mxu0 %v6488_v40 }
0x1008   :  { %6058 = vmatpush3.bf16.msra.mxu0 %v6057_v22 }
0x1009   :  { %6059 = vmatprep.subr.bf16.mxu0 %v6488_v40 }
0x100c   :  { %6061 = vmatpush3.bf16.msra.mxu0 %v6060_v53 }
0x100d   :  { %6062 = vmatprep.subr.bf16.mxu0 %v6488_v40 }
0x1010   :  { %6064 = vmatpush3.bf16.msra.mxu0 %v6063_v37 }
0x1011   :  { %6065 = vmatprep.subr.bf16.mxu0 %v6488_v40 }
0x1014   :  { %6067 = vmatpush3.bf16.msra.mxu0 %v6066_v7 }
0x1015   :  { %6068 = vmatprep.subr.bf16.mxu0 %v6488_v40 }
0x1018   :  { %6070 = vmatpush3.bf16.msra.mxu0 %v6069_v29 }
0x1019   :  { %6071 = vmatprep.subr.bf16.mxu0 %v6488_v40 }
0x101c   :  { %6073 = vmatpush3.bf16.msra.mxu0 %v6072_v20 }
0x10d2   :  { %v3763_v39 = vpop.f32.mrb[30].mxu0  ;;  %v3834_v52 = vpop.f32.mrb[46].mxu1 }
0x10d3   :  { %v6104_v12 = vadd.f32 %v3763_v39, %v7301_v26  ;;  %v3765_v10 = vpop.f32.mrb[31].mxu0  ;;  %v4990_v16 = vpop.f32.mrb[47].mxu1  ;;  %v3852_v62 = vadd.f32 %v7312_v63, %v3834_v52  ;;  %v4005_v63 = vld [vmem:[%s7629_s10] ss:$0 sm:$0xff] }
0x10d4   :  { %v6105_v31 = vadd.f32 %v3765_v10, %v7306_v42 }
0x10d5   :  { %v4003_v57 = vmul.f32 -1.442695, %v6104_v12 }
0x10d6   :  { %v4004_v18 = vmul.f32 -1.442695, %v6105_v31 }
0x10d7   :  { %6302 = vpow2.f32 %v4003_v57 }
0x10d8   :  { %6304 = vpow2.f32 %v4004_v18 }
0x10e1   :  { %v6303_v60 = vpop.eup %6302 }
0x10e2   :  { %v3842_v6 = vadd.f32 1.0, %v6303_v60  ;;  %v6305_v25 = vpop.eup %6304 }
0x10e3   :  { %v3849_v44 = vadd.f32 1.0, %v6305_v25 }
0x10e4   :  { %6306 = vrcp.f32 %v3842_v6 }
0x10ee   :  { %v6307_v40 = vpop.eup %6306 }
0x10ef   :  { %v3853_v41 = vmul.f32 %v6307_v40, %v3852_v62 }
0x10f1   :  { %v3854_v26 = vadd.f32 %v3853_v41, %v2457_v43 }
0x10f3   :  { %6308 = vtanh.f32 %v3854_v26 }
0x10f4   :  { %6310 = vrcp.f32 %v3849_v44 }
0x10fd   :  { %v6309_v14 = vpop.eup %6308 }
0x10fe   :  { %v3856_v42 = vsub.f32 %v7585_v55, %v6309_v14  ;;  %v6311_v33 = vpop.eup %6310 }
0x1100   :  { %v3857_v46 = vmul.f32 %v6311_v33, %v3856_v42 }
0x1102   :  { %v3858_v24 = vadd.f32 %v6309_v14, %v3857_v46 }
0x1104   :  { %5024 = vmatmul.mubr.f32.vlgmr.msra.gmra.mrb[32].mxu0 %v3858_v24 }
0x11d7   :  { %v3948_v61 = vpop.f32.mrb[32].mxu0 }
0x11d8   :  { %v3949_v21 = vadd.f32 %v4005_v63, %v3948_v61  ;;  %v5025_v17 = vpop.f32.mrb[33].mxu0 }
0x11da   :  { %3952 = vst [vmem:[#allocation15] sm:$0xff] %v3949_v21 }
0x11db   :  { %6456 = shalt.err (!%p6453_p10)
}
0x11dc   :  { %s6457_s25 = scalar_lea.hbm %s7630_s11, 128 }
0x11dd   :  { %p6458_p11 = scmp.ne.s32.totalorder %s7630_s11, %s6457_s25  ;;  %p6461_p12 = scmp.lt.u32.totalorder %s6457_s25, %s7630_s11 }
0x11df   :  { %p6463_p13 = pnand %p6461_p12, %p6458_p11 }
0x11e1   :  { %6466 = shalt.err (!%p6463_p13)
}
0x11e2   :  { %3962 = dma.vmem_to_hbm [thread:$0]  %s3960_s18, 128, %s7630_s11, [#allocation6]  }
0x11e3   :  { %6475 = dma.done.wait [#allocation6], 128  }
0x11e4   :  { %6476 = vsyncadd [#allocation6], 4294967168 }
0x11e5   :  { %3966 = vsyncpa [#allocation5], 1 }
0x11e6   :  { %3967 = vsyncpa [#allocation8], 1 }
0x11e7   :  { %3968 = vsyncpa [#allocation11], 1 }
0x11e8   :  { %3969 = vsyncpa [#allocation14], 1 }
0x11e9   :  { %3970 = vsyncpa [#allocation6], 1 }

</bundles_post_ra>
